<compile_context>
chip_gen: v6e
topology: v6e:2x2x1
jax: 0.10.0
libtpu: 0.0.40
codegen_flags: <defaults>
</compile_context>

<pallas_src>
import functools

import jax
import jax.numpy as jnp
from jax import lax
from jax.experimental import pallas as pl
from jax.experimental.pallas import tpu as pltpu

_LANES = 128


def _round_up(x, m):
    return (x + m - 1) // m * m


def _basic_block_kernel(x_ref, w1_ref, s1_ref, b1_ref, w2_ref, s2_ref, b2_ref,
                        *rest, stride, Ho, Wo, hasdownsample):
    """Fused conv3x3 -> BN -> ReLU -> conv3x3 -> BN -> (+identity) -> ReLU.

    x_ref:  (1, H+2, W+2, Cpi)  zero-padded NHWC input tile (one batch element), bf16
    w1/w2:  (9*Cp, Cpo)         im2col-layout 3x3 weights, bf16
    s*/b*:  (1, Cpo)            folded BN scale / shift, f32 (zero in the pad lanes)
    """
    if hasdownsample:
        wres_ref, sres_ref, bres_ref, out_ref = rest
    else:
        (out_ref,) = rest

    s = stride
    x = x_ref[0]                          # (H+2, W+2, Cpi) bf16
    Cpi = x.shape[-1]
    Cpo = out_ref.shape[-1]

    def im2col_3x3(src, st):
        # 9 shifted taps concatenated on the (lane-aligned) channel axis.
        taps = []
        for dy in range(3):
            for dx in range(3):
                taps.append(src[dy: dy + st * (Ho - 1) + 1: st,
                                dx: dx + st * (Wo - 1) + 1: st, :])
        col = jnp.concatenate(taps, axis=-1)            # (Ho, Wo, 9*C)
        return col.reshape(Ho * Wo, col.shape[-1])

    # ---- conv1: 3x3, stride s, pad 1 -> one big-K matmul (bf16 in, f32 acc) ----
    acc = jnp.dot(im2col_3x3(x, s), w1_ref[...],
                  preferred_element_type=jnp.float32)   # (Ho*Wo, Cpo) f32

    # ---- bn1 + relu1 (f32 elementwise) ----
    y1 = jnp.maximum(acc * s1_ref[...] + b1_ref[...], 0.0)

    # ---- in-register halo pad for conv2 (no VMEM scratch round-trip) ----
    y1f = y1.reshape(Ho, Wo, Cpo)                        # f32
    zcol = jnp.zeros((Ho, 1, Cpo), jnp.float32)
    yp = jnp.concatenate([zcol, y1f, zcol], axis=1)      # (Ho, Wo+2, Cpo)
    zrow = jnp.zeros((1, Wo + 2, Cpo), jnp.float32)
    yp = jnp.concatenate([zrow, yp, zrow], axis=0)       # (Ho+2, Wo+2, Cpo)
    yp = yp.astype(jnp.bfloat16)

    # ---- conv2: 3x3, stride 1, pad 1 ----
    acc2 = jnp.dot(im2col_3x3(yp, 1), w2_ref[...],
                   preferred_element_type=jnp.float32)
    y2 = acc2 * s2_ref[...] + b2_ref[...]

    # ---- residual path ----
    if hasdownsample:
        # conv1x1 (stride s) + bnres on the original (unpadded-in-space) input
        xc = x[1: 1 + s * (Ho - 1) + 1: s, 1: 1 + s * (Wo - 1) + 1: s, :]
        iden = jnp.dot(xc.reshape(Ho * Wo, Cpi), wres_ref[...],
                       preferred_element_type=jnp.float32)
        iden = iden * sres_ref[...] + bres_ref[...]
    else:
        iden = x[1:1 + Ho, 1:1 + Wo, :].astype(jnp.float32).reshape(Ho * Wo, Cpo)

    # ---- add + relu2, lane-dense store ----
    out = jnp.maximum(y2 + iden, 0.0)
    out_ref[...] = out.reshape(1, Ho, Wo, Cpo).astype(out_ref.dtype)


def _fold_bn(gamma, beta, mean, var, eps=1e-5):
    scale = (gamma / jnp.sqrt(var + eps)).astype(jnp.float32)
    shift = (beta - mean * scale).astype(jnp.float32)
    return scale, shift


def basic_block_forward(x_nchw, params, *, stride=1, hasdownsample=False):
    """BasicBlock forward. x_nchw: (N, Cin, H, W) f32. Returns (N, Cout, Ho, Wo) f32."""
    N, Cin, H, W = x_nchw.shape
    w1 = params["conv1_w"]                       # (Cout, Cin, 3, 3)  OIHW
    w2 = params["conv2_w"]                       # (Cout, Cout, 3, 3)
    Cout = w1.shape[0]
    Ho = (H + 2 - 3) // stride + 1
    Wo = (W + 2 - 3) // stride + 1
    if not hasdownsample:
        assert stride == 1 and Cin == Cout, "plain residual needs matching shapes"

    # lane-dense channel padding
    Cpi = _round_up(Cin, _LANES)
    Cpo = _round_up(Cout, _LANES)

    # glue: NCHW -> NHWC, zero-pad channels to lane width, halo-pad H/W, cast bf16
    x = jnp.transpose(x_nchw, (0, 2, 3, 1)).astype(jnp.float32)
    x_pad = jnp.pad(x, ((0, 0), (1, 1), (1, 1), (0, Cpi - Cin))).astype(jnp.bfloat16)

    def prep_conv3x3(w, cin, cpi):
        # OIHW -> HWIO -> pad channels -> im2col layout (9*cpi, Cpo), bf16
        w = jnp.transpose(w, (2, 3, 1, 0)).astype(jnp.float32)
        w = jnp.pad(w, ((0, 0), (0, 0), (0, cpi - cin), (0, Cpo - Cout)))
        return w.reshape(9 * cpi, Cpo).astype(jnp.bfloat16)

    def prep_bn(p):
        sc, sh = _fold_bn(*p)
        sc = jnp.pad(sc, (0, Cpo - Cout)).reshape(1, Cpo)
        sh = jnp.pad(sh, (0, Cpo - Cout)).reshape(1, Cpo)
        return sc, sh

    w1_p = prep_conv3x3(w1, Cin, Cpi)
    w2_p = prep_conv3x3(w2, Cout, Cpo)
    s1, b1 = prep_bn(params["bn1"])
    s2, b2 = prep_bn(params["bn2"])

    inputs = [x_pad, w1_p, s1, b1, w2_p, s2, b2]
    in_specs = [
        pl.BlockSpec((1, H + 2, W + 2, Cpi), lambda n: (n, 0, 0, 0)),
        pl.BlockSpec((9 * Cpi, Cpo), lambda n: (0, 0)),
        pl.BlockSpec((1, Cpo), lambda n: (0, 0)),
        pl.BlockSpec((1, Cpo), lambda n: (0, 0)),
        pl.BlockSpec((9 * Cpo, Cpo), lambda n: (0, 0)),
        pl.BlockSpec((1, Cpo), lambda n: (0, 0)),
        pl.BlockSpec((1, Cpo), lambda n: (0, 0)),
    ]
    if hasdownsample:
        wres = jnp.transpose(params["convres_w"][:, :, 0, 0], (1, 0)).astype(jnp.float32)
        wres = jnp.pad(wres, ((0, Cpi - Cin), (0, Cpo - Cout))).astype(jnp.bfloat16)
        sres, bres = prep_bn(params["bnres"])
        inputs += [wres, sres, bres]
        in_specs += [
            pl.BlockSpec((Cpi, Cpo), lambda n: (0, 0)),
            pl.BlockSpec((1, Cpo), lambda n: (0, 0)),
            pl.BlockSpec((1, Cpo), lambda n: (0, 0)),
        ]

    kernel = functools.partial(_basic_block_kernel, stride=stride, Ho=Ho, Wo=Wo,
                               hasdownsample=hasdownsample)

    out_nhwc = pl.pallas_call(
        kernel,
        out_shape=jax.ShapeDtypeStruct((N, Ho, Wo, Cpo), jnp.float32),
        grid_spec=pltpu.PrefetchScalarGridSpec(
            num_scalar_prefetch=0,
            grid=(N,),
            in_specs=in_specs,
            out_specs=pl.BlockSpec((1, Ho, Wo, Cpo), lambda n: (n, 0, 0, 0)),
        ),
        compiler_params=pltpu.CompilerParams(dimension_semantics=("parallel",)),
    )(*inputs)

    # un-pad channels, back to NCHW
    return jnp.transpose(out_nhwc[..., :Cout], (0, 3, 1, 2))


# ---------------- pure-JAX reference (semantics check, full f32) ----------------
def _ref_forward(x, params, *, stride=1, hasdownsample=False, eps=1e-5):
    def conv(x, w, s, pad):
        return lax.conv_general_dilated(
            x, w, (s, s), ((pad, pad), (pad, pad)),
            dimension_numbers=("NCHW", "OIHW", "NCHW"))

    def bn(x, p):
        g, b, m, v = p
        g, b, m, v = (t[None, :, None, None] for t in (g, b, m, v))
        return (x - m) / jnp.sqrt(v + eps) * g + b

    identity = x
    if hasdownsample:
        identity = bn(conv(x, params["convres_w"], stride, 0), params["bnres"])
    y = jax.nn.relu(bn(conv(x, params["conv1_w"], stride, 1), params["bn1"]))
    y = bn(conv(y, params["conv2_w"], 1, 1), params["bn2"])
    return jax.nn.relu(y + identity)


def _make_params(key, inplanes, outplanes):
    ks = jax.random.split(key, 8)

    def bn_params(k):
        k1, k2, k3, k4 = jax.random.split(k, 4)
        gamma = 0.5 + jax.random.uniform(k1, (outplanes,), jnp.float32)
        beta = 0.1 * jax.random.normal(k2, (outplanes,), jnp.float32)
        mean = 0.1 * jax.random.normal(k3, (outplanes,), jnp.float32)
        var = 0.5 + jax.random.uniform(k4, (outplanes,), jnp.float32)
        return (gamma, beta, mean, var)

    return {
        "conv1_w": 0.1 * jax.random.normal(ks[0], (outplanes, inplanes, 3, 3), jnp.float32),
        "conv2_w": 0.1 * jax.random.normal(ks[1], (outplanes, outplanes, 3, 3), jnp.float32),
        "convres_w": 0.1 * jax.random.normal(ks[2], (outplanes, inplanes, 1, 1), jnp.float32),
        "bn1": bn_params(ks[3]),
        "bn2": bn_params(ks[4]),
        "bnres": bn_params(ks[5]),
    }


if __name__ == "__main__":
    key = jax.random.PRNGKey(0)
    kx, kp1, kp2 = jax.random.split(key, 3)

    N, H, W = 2, 16, 16
    # Tolerances reflect bf16 MXU operands (f32 accumulation) vs. the full-f32 reference.
    ATOL = RTOL = 5e-2

    # Config A: channel-changing block with downsample path (4 -> 8, stride 1)
    x_a = jax.random.normal(kx, (N, 4, H, W), jnp.float32)
    p_a = _make_params(kp1, 4, 8)
    out_a = jax.block_until_ready(
        basic_block_forward(x_a, p_a, stride=1, hasdownsample=True))
    ref_a = _ref_forward(x_a, p_a, stride=1, hasdownsample=True)
    assert out_a.shape == (N, 8, H, W)
    assert jnp.allclose(out_a, ref_a, atol=ATOL, rtol=RTOL)

    # Config B: plain residual block (4 -> 4, stride 1, no downsample)
    p_b = _make_params(kp2, 4, 4)
    out_b = jax.block_until_ready(
        basic_block_forward(x_a, p_b, stride=1, hasdownsample=False))
    ref_b = _ref_forward(x_a, p_b, stride=1, hasdownsample=False)
    assert out_b.shape == (N, 4, H, W)
    assert jnp.allclose(out_b, ref_b, atol=ATOL, rtol=RTOL)

    print("KERNEL_OK")
</pallas_src>

<mosaic_0001>
module attributes {stable_mosaic.version = 11 : i64} {
  func.func @_basic_block_kernel(%arg0: i32, %arg1: memref<1x18x18x128xbf16, #tpu.memory_space<vmem>>, %arg2: memref<1152x128xbf16, #tpu.memory_space<vmem>>, %arg3: memref<1x128xf32, #tpu.memory_space<vmem>>, %arg4: memref<1x128xf32, #tpu.memory_space<vmem>>, %arg5: memref<1152x128xbf16, #tpu.memory_space<vmem>>, %arg6: memref<1x128xf32, #tpu.memory_space<vmem>>, %arg7: memref<1x128xf32, #tpu.memory_space<vmem>>, %arg8: memref<128x128xbf16, #tpu.memory_space<vmem>>, %arg9: memref<1x128xf32, #tpu.memory_space<vmem>>, %arg10: memref<1x128xf32, #tpu.memory_space<vmem>>, %arg11: memref<1x16x16x128xf32, #tpu.memory_space<vmem>>) attributes {dimension_semantics = [#tpu.dimension_semantics<parallel>], iteration_bounds = array<i64: 2>, scalar_prefetch = 0 : i64, scratch_operands = 0 : i64, tpu.core_type = #tpu.core_type<tc>, window_params = [{transform_indices = @transform_0, window_bounds = array<i64: 1, 18, 18, 128>}, {pipeline_mode = #tpu.pipeline_mode<synchronous>, transform_indices = @transform_1, window_bounds = array<i64: 1152, 128>}, {pipeline_mode = #tpu.pipeline_mode<synchronous>, transform_indices = @transform_2, window_bounds = array<i64: 1, 128>}, {pipeline_mode = #tpu.pipeline_mode<synchronous>, transform_indices = @transform_3, window_bounds = array<i64: 1, 128>}, {pipeline_mode = #tpu.pipeline_mode<synchronous>, transform_indices = @transform_4, window_bounds = array<i64: 1152, 128>}, {pipeline_mode = #tpu.pipeline_mode<synchronous>, transform_indices = @transform_5, window_bounds = array<i64: 1, 128>}, {pipeline_mode = #tpu.pipeline_mode<synchronous>, transform_indices = @transform_6, window_bounds = array<i64: 1, 128>}, {pipeline_mode = #tpu.pipeline_mode<synchronous>, transform_indices = @transform_7, window_bounds = array<i64: 128, 128>}, {pipeline_mode = #tpu.pipeline_mode<synchronous>, transform_indices = @transform_8, window_bounds = array<i64: 1, 128>}, {pipeline_mode = #tpu.pipeline_mode<synchronous>, transform_indices = @transform_9, window_bounds = array<i64: 1, 128>}, {transform_indices = @transform_10, window_bounds = array<i64: 1, 16, 16, 128>}]} {
    %c0 = arith.constant 0 : index
    %c0_0 = arith.constant 0 : index
    %c0_1 = arith.constant 0 : index
    %c0_2 = arith.constant 0 : index
    %0 = vector.load %arg1[%c0, %c0_0, %c0_1, %c0_2] : memref<1x18x18x128xbf16, #tpu.memory_space<vmem>>, vector<1x18x18x128xbf16>
    %1 = vector.shape_cast %0 : vector<1x18x18x128xbf16> to vector<18x18x128xbf16>
    %2 = vector.extract_strided_slice %1 {offsets = [0, 0, 0], sizes = [16, 16, 128], strides = [1, 1, 1]} : vector<18x18x128xbf16> to vector<16x16x128xbf16>
    %3 = vector.extract_strided_slice %1 {offsets = [0, 1, 0], sizes = [16, 16, 128], strides = [1, 1, 1]} : vector<18x18x128xbf16> to vector<16x16x128xbf16>
    %4 = vector.extract_strided_slice %1 {offsets = [0, 2, 0], sizes = [16, 16, 128], strides = [1, 1, 1]} : vector<18x18x128xbf16> to vector<16x16x128xbf16>
    %5 = vector.extract_strided_slice %1 {offsets = [1, 0, 0], sizes = [16, 16, 128], strides = [1, 1, 1]} : vector<18x18x128xbf16> to vector<16x16x128xbf16>
    %6 = vector.extract_strided_slice %1 {offsets = [1, 1, 0], sizes = [16, 16, 128], strides = [1, 1, 1]} : vector<18x18x128xbf16> to vector<16x16x128xbf16>
    %7 = vector.extract_strided_slice %1 {offsets = [1, 2, 0], sizes = [16, 16, 128], strides = [1, 1, 1]} : vector<18x18x128xbf16> to vector<16x16x128xbf16>
    %8 = vector.extract_strided_slice %1 {offsets = [2, 0, 0], sizes = [16, 16, 128], strides = [1, 1, 1]} : vector<18x18x128xbf16> to vector<16x16x128xbf16>
    %9 = vector.extract_strided_slice %1 {offsets = [2, 1, 0], sizes = [16, 16, 128], strides = [1, 1, 1]} : vector<18x18x128xbf16> to vector<16x16x128xbf16>
    %10 = vector.extract_strided_slice %1 {offsets = [2, 2, 0], sizes = [16, 16, 128], strides = [1, 1, 1]} : vector<18x18x128xbf16> to vector<16x16x128xbf16>
    %11 = tpu.concatenate %2, %3, %4, %5, %6, %7, %8, %9, %10 in 2 : vector<16x16x128xbf16>, vector<16x16x128xbf16>, vector<16x16x128xbf16>, vector<16x16x128xbf16>, vector<16x16x128xbf16>, vector<16x16x128xbf16>, vector<16x16x128xbf16>, vector<16x16x128xbf16>, vector<16x16x128xbf16> -> vector<16x16x1152xbf16>
    %12 = vector.shape_cast %11 : vector<16x16x1152xbf16> to vector<256x1152xbf16>
    %c0_3 = arith.constant 0 : index
    %c0_4 = arith.constant 0 : index
    %13 = vector.load %arg2[%c0_3, %c0_4] : memref<1152x128xbf16, #tpu.memory_space<vmem>>, vector<1152x128xbf16>
    %cst = arith.constant dense<0.000000e+00> : vector<256x128xf32>
    %14 = tpu.matmul %12, %13, %cst {dimension_numbers = #tpu.dot_dimension_numbers<[1], [0], [0], [1], [0, 0, 1, 1], [], []>} : vector<256x1152xbf16>, vector<1152x128xbf16>, vector<256x128xf32> -> vector<256x128xf32>
    %c0_5 = arith.constant 0 : index
    %c0_6 = arith.constant 0 : index
    %15 = vector.load %arg3[%c0_5, %c0_6] : memref<1x128xf32, #tpu.memory_space<vmem>>, vector<1x128xf32>
    %16 = vector.broadcast %15 : vector<1x128xf32> to vector<256x128xf32>
    %17 = arith.mulf %14, %16 : vector<256x128xf32>
    %c0_7 = arith.constant 0 : index
    %c0_8 = arith.constant 0 : index
    %18 = vector.load %arg4[%c0_7, %c0_8] : memref<1x128xf32, #tpu.memory_space<vmem>>, vector<1x128xf32>
    %19 = vector.broadcast %18 : vector<1x128xf32> to vector<256x128xf32>
    %20 = arith.addf %17, %19 : vector<256x128xf32>
    %cst_9 = arith.constant 0.000000e+00 : f32
    %21 = vector.broadcast %cst_9 : f32 to vector<256x128xf32>
    %22 = arith.maximumf %20, %21 : vector<256x128xf32>
    %23 = vector.shape_cast %22 : vector<256x128xf32> to vector<16x16x128xf32>
    %cst_10 = arith.constant 0.000000e+00 : f32
    %24 = vector.broadcast %cst_10 : f32 to vector<16x1x128xf32>
    %25 = tpu.concatenate %24, %23, %24 in 1 : vector<16x1x128xf32>, vector<16x16x128xf32>, vector<16x1x128xf32> -> vector<16x18x128xf32>
    %cst_11 = arith.constant 0.000000e+00 : f32
    %26 = vector.broadcast %cst_11 : f32 to vector<1x18x128xf32>
    %27 = tpu.concatenate %26, %25, %26 in 0 : vector<1x18x128xf32>, vector<16x18x128xf32>, vector<1x18x128xf32> -> vector<18x18x128xf32>
    %28 = arith.truncf %27 : vector<18x18x128xf32> to vector<18x18x128xbf16>
    %29 = vector.extract_strided_slice %28 {offsets = [0, 0, 0], sizes = [16, 16, 128], strides = [1, 1, 1]} : vector<18x18x128xbf16> to vector<16x16x128xbf16>
    %30 = vector.extract_strided_slice %28 {offsets = [0, 1, 0], sizes = [16, 16, 128], strides = [1, 1, 1]} : vector<18x18x128xbf16> to vector<16x16x128xbf16>
    %31 = vector.extract_strided_slice %28 {offsets = [0, 2, 0], sizes = [16, 16, 128], strides = [1, 1, 1]} : vector<18x18x128xbf16> to vector<16x16x128xbf16>
    %32 = vector.extract_strided_slice %28 {offsets = [1, 0, 0], sizes = [16, 16, 128], strides = [1, 1, 1]} : vector<18x18x128xbf16> to vector<16x16x128xbf16>
    %33 = vector.extract_strided_slice %28 {offsets = [1, 1, 0], sizes = [16, 16, 128], strides = [1, 1, 1]} : vector<18x18x128xbf16> to vector<16x16x128xbf16>
    %34 = vector.extract_strided_slice %28 {offsets = [1, 2, 0], sizes = [16, 16, 128], strides = [1, 1, 1]} : vector<18x18x128xbf16> to vector<16x16x128xbf16>
    %35 = vector.extract_strided_slice %28 {offsets = [2, 0, 0], sizes = [16, 16, 128], strides = [1, 1, 1]} : vector<18x18x128xbf16> to vector<16x16x128xbf16>
    %36 = vector.extract_strided_slice %28 {offsets = [2, 1, 0], sizes = [16, 16, 128], strides = [1, 1, 1]} : vector<18x18x128xbf16> to vector<16x16x128xbf16>
    %37 = vector.extract_strided_slice %28 {offsets = [2, 2, 0], sizes = [16, 16, 128], strides = [1, 1, 1]} : vector<18x18x128xbf16> to vector<16x16x128xbf16>
    %38 = tpu.concatenate %29, %30, %31, %32, %33, %34, %35, %36, %37 in 2 : vector<16x16x128xbf16>, vector<16x16x128xbf16>, vector<16x16x128xbf16>, vector<16x16x128xbf16>, vector<16x16x128xbf16>, vector<16x16x128xbf16>, vector<16x16x128xbf16>, vector<16x16x128xbf16>, vector<16x16x128xbf16> -> vector<16x16x1152xbf16>
    %39 = vector.shape_cast %38 : vector<16x16x1152xbf16> to vector<256x1152xbf16>
    %c0_12 = arith.constant 0 : index
    %c0_13 = arith.constant 0 : index
    %40 = vector.load %arg5[%c0_12, %c0_13] : memref<1152x128xbf16, #tpu.memory_space<vmem>>, vector<1152x128xbf16>
    %cst_14 = arith.constant dense<0.000000e+00> : vector<256x128xf32>
    %41 = tpu.matmul %39, %40, %cst_14 {dimension_numbers = #tpu.dot_dimension_numbers<[1], [0], [0], [1], [0, 0, 1, 1], [], []>} : vector<256x1152xbf16>, vector<1152x128xbf16>, vector<256x128xf32> -> vector<256x128xf32>
    %c0_15 = arith.constant 0 : index
    %c0_16 = arith.constant 0 : index
    %42 = vector.load %arg6[%c0_15, %c0_16] : memref<1x128xf32, #tpu.memory_space<vmem>>, vector<1x128xf32>
    %43 = vector.broadcast %42 : vector<1x128xf32> to vector<256x128xf32>
    %44 = arith.mulf %41, %43 : vector<256x128xf32>
    %c0_17 = arith.constant 0 : index
    %c0_18 = arith.constant 0 : index
    %45 = vector.load %arg7[%c0_17, %c0_18] : memref<1x128xf32, #tpu.memory_space<vmem>>, vector<1x128xf32>
    %46 = vector.broadcast %45 : vector<1x128xf32> to vector<256x128xf32>
    %47 = arith.addf %44, %46 : vector<256x128xf32>
    %48 = vector.extract_strided_slice %1 {offsets = [1, 1, 0], sizes = [16, 16, 128], strides = [1, 1, 1]} : vector<18x18x128xbf16> to vector<16x16x128xbf16>
    %49 = vector.shape_cast %48 : vector<16x16x128xbf16> to vector<256x128xbf16>
    %c0_19 = arith.constant 0 : index
    %c0_20 = arith.constant 0 : index
    %50 = vector.load %arg8[%c0_19, %c0_20] : memref<128x128xbf16, #tpu.memory_space<vmem>>, vector<128x128xbf16>
    %cst_21 = arith.constant dense<0.000000e+00> : vector<256x128xf32>
    %51 = tpu.matmul %49, %50, %cst_21 {dimension_numbers = #tpu.dot_dimension_numbers<[1], [0], [0], [1], [0, 0, 1, 1], [], []>} : vector<256x128xbf16>, vector<128x128xbf16>, vector<256x128xf32> -> vector<256x128xf32>
    %c0_22 = arith.constant 0 : index
    %c0_23 = arith.constant 0 : index
    %52 = vector.load %arg9[%c0_22, %c0_23] : memref<1x128xf32, #tpu.memory_space<vmem>>, vector<1x128xf32>
    %53 = vector.broadcast %52 : vector<1x128xf32> to vector<256x128xf32>
    %54 = arith.mulf %51, %53 : vector<256x128xf32>
    %c0_24 = arith.constant 0 : index
    %c0_25 = arith.constant 0 : index
    %55 = vector.load %arg10[%c0_24, %c0_25] : memref<1x128xf32, #tpu.memory_space<vmem>>, vector<1x128xf32>
    %56 = vector.broadcast %55 : vector<1x128xf32> to vector<256x128xf32>
    %57 = arith.addf %54, %56 : vector<256x128xf32>
    %58 = arith.addf %47, %57 : vector<256x128xf32>
    %cst_26 = arith.constant 0.000000e+00 : f32
    %59 = vector.broadcast %cst_26 : f32 to vector<256x128xf32>
    %60 = arith.maximumf %58, %59 : vector<256x128xf32>
    %61 = vector.shape_cast %60 : vector<256x128xf32> to vector<1x16x16x128xf32>
    %c0_27 = arith.constant 0 : index
    %c0_28 = arith.constant 0 : index
    %c0_29 = arith.constant 0 : index
    %c0_30 = arith.constant 0 : index
    %62 = vector.load %arg11[%c0_27, %c0_28, %c0_29, %c0_30] : memref<1x16x16x128xf32, #tpu.memory_space<vmem>>, vector<1x16x16x128xf32>
    tpu.vector_store %arg11[%c0_27, %c0_28, %c0_29, %c0_30], %61 {strides = array<i32>} : memref<1x16x16x128xf32, #tpu.memory_space<vmem>>, vector<1x16x16x128xf32>,
    return
  }
  func.func @transform_0(%arg0: i32) -> (i32, i32, i32, i32) {
    %c0_i32 = arith.constant 0 : i32
    %c0_i32_0 = arith.constant 0 : i32
    %c0_i32_1 = arith.constant 0 : i32
    %c0_i32_2 = arith.constant 0 : i32
    return %arg0, %c0_i32, %c0_i32_0, %c0_i32_1 : i32, i32, i32, i32
  }
  func.func @transform_1(%arg0: i32) -> (i32, i32) {
    %c0_i32 = arith.constant 0 : i32
    %c0_i32_0 = arith.constant 0 : i32
    %c0_i32_1 = arith.constant 0 : i32
    return %c0_i32, %c0_i32_0 : i32, i32
  }
  func.func @transform_2(%arg0: i32) -> (i32, i32) {
    %c0_i32 = arith.constant 0 : i32
    %c0_i32_0 = arith.constant 0 : i32
    %c0_i32_1 = arith.constant 0 : i32
    return %c0_i32, %c0_i32_0 : i32, i32
  }
  func.func @transform_3(%arg0: i32) -> (i32, i32) {
    %c0_i32 = arith.constant 0 : i32
    %c0_i32_0 = arith.constant 0 : i32
    %c0_i32_1 = arith.constant 0 : i32
    return %c0_i32, %c0_i32_0 : i32, i32
  }
  func.func @transform_4(%arg0: i32) -> (i32, i32) {
    %c0_i32 = arith.constant 0 : i32
    %c0_i32_0 = arith.constant 0 : i32
    %c0_i32_1 = arith.constant 0 : i32
    return %c0_i32, %c0_i32_0 : i32, i32
  }
  func.func @transform_5(%arg0: i32) -> (i32, i32) {
    %c0_i32 = arith.constant 0 : i32
    %c0_i32_0 = arith.constant 0 : i32
    %c0_i32_1 = arith.constant 0 : i32
    return %c0_i32, %c0_i32_0 : i32, i32
  }
  func.func @transform_6(%arg0: i32) -> (i32, i32) {
    %c0_i32 = arith.constant 0 : i32
    %c0_i32_0 = arith.constant 0 : i32
    %c0_i32_1 = arith.constant 0 : i32
    return %c0_i32, %c0_i32_0 : i32, i32
  }
  func.func @transform_7(%arg0: i32) -> (i32, i32) {
    %c0_i32 = arith.constant 0 : i32
    %c0_i32_0 = arith.constant 0 : i32
    %c0_i32_1 = arith.constant 0 : i32
    return %c0_i32, %c0_i32_0 : i32, i32
  }
  func.func @transform_8(%arg0: i32) -> (i32, i32) {
    %c0_i32 = arith.constant 0 : i32
    %c0_i32_0 = arith.constant 0 : i32
    %c0_i32_1 = arith.constant 0 : i32
    return %c0_i32, %c0_i32_0 : i32, i32
  }
  func.func @transform_9(%arg0: i32) -> (i32, i32) {
    %c0_i32 = arith.constant 0 : i32
    %c0_i32_0 = arith.constant 0 : i32
    %c0_i32_1 = arith.constant 0 : i32
    return %c0_i32, %c0_i32_0 : i32, i32
  }
  func.func @transform_10(%arg0: i32) -> (i32, i32, i32, i32) {
    %c0_i32 = arith.constant 0 : i32
    %c0_i32_0 = arith.constant 0 : i32
    %c0_i32_1 = arith.constant 0 : i32
    %c0_i32_2 = arith.constant 0 : i32
    return %arg0, %c0_i32, %c0_i32_0, %c0_i32_1 : i32, i32, i32, i32
  }
}

</mosaic_0001>

<bundles_post_ra>
// kernel: tpu_custom_call.1
= control target key start
LH: loop header
LB: loop body
LE: loop exit
PB: predicated region body
PF: predicated region fallthrough
CT: control target
= control target key end

     0   :  { %15 = vsyncpa [#allocation3], 0  ;;  %s9960_s0 = inlined_call_operand.vmem [shape: bf16[2,18,18,128], index: 0, kind: input, shape index: {}]   ;;  %s9961_s1 = inlined_call_operand.vmem [shape: bf16[1152,128], index: 1, kind: input, shape index: {}]   ;;  %s9962_s2 = inlined_call_operand.vmem [shape: f32[1,128], index: 2, kind: input, shape index: {}]   ;;  %s9963_s3 = inlined_call_operand.vmem [shape: f32[1,128], index: 3, kind: input, shape index: {}]   ;;  %s9964_s4 = inlined_call_operand.hbm [shape: bf16[1152,128], index: 4, kind: input, shape index: {}]   ;;  %s9965_s5 = inlined_call_operand.vmem [shape: f32[1,128], index: 5, kind: input, shape index: {}]   ;;  %s9966_s6 = inlined_call_operand.vmem [shape: f32[1,128], index: 6, kind: input, shape index: {}]   ;;  %s9967_s7 = inlined_call_operand.vmem [shape: bf16[128,128], index: 7, kind: input, shape index: {}]   ;;  %s9968_s8 = inlined_call_operand.vmem [shape: f32[1,128], index: 8, kind: input, shape index: {}]   ;;  %s9969_s9 = inlined_call_operand.vmem [shape: f32[1,128], index: 9, kind: input, shape index: {}]   ;;  %s9970_s10 = inlined_call_operand.hbm [shape: f32[2,16,16,128], index: 10, kind: output, shape index: {}]  }
   0x1   :  { %16 = vsyncpa [#allocation4], 0 }
   0x2   :  { %18 = vsyncpa [#allocation4 + $0x1], 0  ;;  %s7280_s13 = smov 0   ;;  %s7282_s14 = smov 0  }
   0x3   :  { %s7284_s15 = smov 0   ;;  %s7286_s16 = smov 0  }
   0x4 LB: > { %s7301_s17 = sadd.s32 4294967295, %s7214_s16   ;;  %s5297_s18 = sadd.s32 4294967294, %s7214_s16   ;;  %s7214_s16 = sphi %s7286_s16, %s10090_s16   ;;  %s7210_s15 = sphi %s7284_s15, %s10089_s15   ;;  %s7206_s14 = sphi %s7282_s14, %s10088_s14   ;;  %s7202_s13 = sphi %s7280_s13, %s10087_s13  }
   0x5   : > { %s7305_s19 = sadd.s32 1, %s7214_s16   ;;  %s246_s20 = sadd.s32 1, %s7210_s15 }
   0x6   : > { %s243_s21 = ssub.s32 %s7214_s16, %s7305_s19  ;;  %p256_p0 = scmp.ne.s32.totalorder %s7210_s15, %s7206_s14 }
   0x7   : > { %p244_p1 = scmp.eq.s32.totalorder %s243_s21, 0  ;;  %p257_p2 = scmp.eq.s32.totalorder %s7301_s17, 1 }
   0x8   : > { %p262_p3 = scmp.ne.s32.totalorder %s7206_s14, %s7202_s13  ;;  %p263_p4 = scmp.eq.s32.totalorder %s5297_s18, 1 }
   0x9   : > { %s7316_s22 = scalar_select %p244_p1, %s7210_s15, %s246_s20  }
   0xa   : > { %p7318_p5 = por %p257_p2, %p256_p0  ;;  %p7322_p6 = por %p263_p4, %p262_p3 }
   0xb   : > { %p5298_p7 = scmp.ge.s32.totalorder %s7214_s16, 1  ;;  %p270_p8 = scmp.lt.s32.totalorder %s7214_s16, 3 }
   0xc   : > { %s9999_s24 = scalar_select %p7322_p6, 1, 0 }
   0xd   : > { %p6848_p9 = scmp.eq.s32.totalorder %s7301_s17, 0  ;;  %p7329_p10 = pnand %p5298_p7, %p270_p8 }
   0xe   : > { %s7216_s26 = smov [#allocation2]  }
   0xf   : > { %s291_s27 = sshll.u32 %s7216_s26, 4  ;;  %p6840_p11 = pneg %p7329_p10  ;;  %s292_s27 = int_to_ptr.vmem [resolvable:$true] %s291_s27 }
  0x10   : > { %s7135_s28 = scalar_lea.vmem %s292_s27, 9216  ;;  %p7143_p3 = scmp.lt.s32.totalorder %s292_s27, %s292_s27 }
  0x11   : > { %p6841_p12 = pnand %p6848_p9, %p6840_p11  ;;  %p7136_p0 = scmp.ne.s32.totalorder %s292_s27, %s7135_s28 }
  0x12   : > { %p7144_p4 = scmp.lt.s32.totalorder %s7135_s28, %s7135_s28 }
  0x13   : > { %p7126_p13 = pneg %p6841_p12 }
  0x14   : > { %p7145_p6 = por %p7144_p4, %p7143_p3 }
  0x15   : > { %p7138_p1 = pnand %p7136_p0, %p7126_p13 }
  0x17   : > { %p7139_p2 = pneg %p7138_p1 }
  0x19   : > { %p7146_p7 = pnand %p7145_p6, %p7139_p2 }
  0x1b   : > { %7149 = shalt.err (!%p7146_p7)
}
  0x1c   : > { %s7217_s29 = smov 64   ;;  %s7218_s30 = smov 4  }
  0x1d   : > { %6843 = dma.hbm_to_vmem [thread:$0]  (!%p6841_p12), %s9964_s4, 9216, %s292_s27, [#allocation3], %s7217_s29, %s7217_s29, %s7218_s30  }
  0x1e   : > { %330 = sbr.rel (%p7329_p10) target bundleno = 1056 (0x420), region = 60 }
  0x23   : > { %7193 = dma.done.wait (%p6848_p9), [#allocation3], 9216  }
  0x24   : > { %7195 = vsyncadd (%p6848_p9), [#allocation3], 4294958080  ;;  %v6891_v0 = vld [vmem:[%s9961_s1 + $0x78] sm:$0xff]   ;;  %v6893_v2 = vld [vmem:[%s9961_s1 + $0x70] sm:$0xff]   ;;  %p368_p6 = scmp.lt.s32.totalorder %s7301_s17, 1  ;;  %vm781_vm4 = vcmask 1046528  }
  0x25   : > { %v6892_v1 = vld [vmem:[%s9961_s1 + $0x38] sm:$0xff]   ;;  %5705 = vmatprep.subr.bf16.mxu0 %v6891_v0  ;;  %6817 = vmatprep.subr.bf16.mxu1 %v6891_v0  ;;  %v6894_v3 = vld [vmem:[%s9961_s1 + $0x30] sm:$0xff]   ;;  %v6895_v4 = vld [vmem:[%s9961_s1 + $0x68] sm:$0xff]   ;;  %vm572_vm0 = vsmask.f32 7424  ;;  %vm2421_vm5 = vcmask 1040384  }
  0x26   : > { %5706 = vmatpush3.bf16.msra.mxu0 %v6892_v1  ;;  %6825 = vmatpush3.bf16.msra.mxu1 %v6892_v1  ;;  %s369_s12 = scalar_select %p368_p6, %s7301_s17, 1  ;;  %v6896_v5 = vld [vmem:[%s9961_s1 + $0x28] sm:$0xff]   ;;  %v6897_v6 = vld [vmem:[%s9961_s1 + $0x60] sm:$0xff]   ;;  %v6899_v8 = vld [vmem:[%s9961_s1 + $0x58] sm:$0xff]   ;;  %vm4359_vm1 = vsmask.f32 3328 }
  0x27   : > { %5707 = vmatprep.subr.bf16.mxu0 %v6893_v2  ;;  %6818 = vmatprep.subr.bf16.mxu1 %v6893_v2  ;;  %v6898_v7 = vld [vmem:[%s9961_s1 + $0x20] sm:$0xff]   ;;  %v6900_v9 = vld [vmem:[%s9961_s1 + $0x18] sm:$0xff]   ;;  %v6901_v10 = vld [vmem:[%s9961_s1 + $0x50] sm:$0xff]   ;;  %vm4360_vm2 = vsmask.f32 7440  ;;  %vm7221_vm7 = vmmov 1  }
  0x28   : > { %s6833_s25 = smul.u32 216, %s369_s12  ;;  %v6902_v16 = vld [vmem:[%s9961_s1 + $0x10] sm:$0xff]   ;;  %v6903_v20 = vld [vmem:[%s9961_s1 + $0x48] sm:$0xff]   ;;  %v6905_v29 = vld [vmem:[%s9961_s1 + $0x40] sm:$0xff]   ;;  %s365_s21 = sand.u32 1, %s7206_s14  }
  0x29   : > { %v6904_v25 = vld [vmem:[%s9961_s1 + $0x8] sm:$0xff]   ;;  %v6906_v33 = vld [vmem:[%s9961_s1] sm:$0xff]   ;;  %v6911_v36 = vld [vmem:[%s9961_s1 + $0xf8] sm:$0xff]   ;;  %s9920_s20 = scalar_lea.sflag [#allocation4], %s365_s21  ;;  %s7222_s26 = smov [#allocation5]  }
  0x2a   : > { %5708 = vmatpush3.bf16.msra.mxu0 %v6894_v3  ;;  %6826 = vmatpush3.bf16.msra.mxu1 %v6894_v3  ;;  %s7381_s12 = scalar_lea.vmem %s9960_s0, %s6833_s25  ;;  %v6912_v37 = vld [vmem:[%s9961_s1 + $0x178] sm:$0xff]   ;;  %v6915_v53 = vld [vmem:[%s9961_s1 + $0xf0] sm:$0xff]   ;;  %v6921_v2 = vld [vmem:[%s9961_s1 + $0xe8] sm:$0xff]   ;;  %s5303_s25 = sshll.u32 %s365_s21, 8 }
  0x2b   : > { %5709 = vmatprep.subr.bf16.mxu0 %v6895_v4  ;;  %6819 = vmatprep.subr.bf16.mxu1 %v6895_v4  ;;  %v7387_v11 = vld [vmem:[%s7381_s12] sm:$0xff]   ;;  %v7390_v12 = vld [vmem:[%s7381_s12 + $0x8] ss:$0 sps:$4 sm:$0x11]   ;;  %v410_v13 = vld [vmem:[%s7381_s12 + $0x90] sm:$0xf] }
  0x2c   : > { %v411_v14 = vld [vmem:[%s7381_s12 + $0x94] sm:$0xf]  ;;  %v412_v15 = vld [vmem:[%s7381_s12 + $0x98] sm:$0x1]  ;;  %v574_v17 = vshrl.u32 %v7387_v11, 16  ;;  %v576_v18 = vshll.u32 %v7387_v11, 16  ;;  %vm7507_vm3 = vmor %vm4359_vm1, %vm4360_vm2 }
  0x2d   : > { %v581_v19 = vshll.u32 %v7390_v12, 16  ;;  %v7404_v21 = vcombine.low %v410_v13, %v411_v14  ;;  %v7406_v22 = vcombine.low %v412_v15, %v412_v15  ;;  %v377_v38 = vld [vmem:[%s7381_s12 + $0xc] sm:$0xf]  ;;  %v378_v39 = vld [vmem:[%s7381_s12 + $0x10] sm:$0xf]  ;;  %v6913_v48 = vld [vmem:[%s9961_s1 + $0xb8] sm:$0xff]  }
  0x2e   : > { %5710 = vmatpush3.bf16.msra.mxu0 %v6896_v5  ;;  %6827 = vmatpush3.bf16.msra.mxu1 %v6896_v5  ;;  %v578_v23 = vrot.slane %v576_v18, 1  ;;  %v379_v40 = vld [vmem:[%s7381_s12 + $0x14] sm:$0x1]  ;;  %v7430_v41 = vcombine.low %v377_v38, %v378_v39  ;;  %v413_v42 = vld [vmem:[%s7381_s12 + $0x9c] sm:$0xf]  ;;  %vm8447_vm6 = vmneg %vm2421_vm5  ;;  %s9729_s28 = scalar_lea.vmem [#allocation5], %s5303_s25 }
  0x2f   : > { %5711 = vmatprep.subr.bf16.mxu0 %v6897_v6  ;;  %6820 = vmatprep.subr.bf16.mxu1 %v6897_v6  ;;  %v583_v24 = vrot.slane %v581_v19, 1  ;;  %v718_v26 = vshrl.u32 %v7404_v21, 16  ;;  %v720_v27 = vshll.u32 %v7404_v21, 16  ;;  %v725_v28 = vshll.u32 %v7406_v22, 16  ;;  %v414_v43 = vld [vmem:[%s7381_s12 + $0xa0] sm:$0xf]  ;;  %vm8471_vm8 = vmpackc.low %vm7221_vm7, %vm8447_vm6 }
  0x30   : > { %v579_v30 = vor.u32 %v578_v23, %v574_v17  ;;  %v7437_v45 = vcombine.low %v379_v40, %v379_v40  ;;  %v415_v46 = vld [vmem:[%s7381_s12 + $0xa4] sm:$0x1]  ;;  %v7440_v47 = vcombine.low %v413_v42, %v414_v43  ;;  %v6914_v49 = vld [vmem:[%s9961_s1 + $0x138] sm:$0xff]   ;;  %v586_v50 = vshrl.u32 %v7430_v41, 16  ;;  %v6916_v61 = vld [vmem:[%s9961_s1 + $0xb0] sm:$0xff]   ;;  %s5223_s29 = sshll.u32 %s9729_s28, 4  ;;  %s9914_s29 = int_to_ptr.vmem [resolvable:$true] %s5223_s29 }
  0x31   : > { %v722_v31 = vrot.slane %v720_v27, 1  ;;  %v727_v32 = vrot.slane %v725_v28, 1  ;;  %v588_v51 = vshll.u32 %v7430_v41, 16  ;;  %v7451_v52 = vcombine.low %v415_v46, %v415_v46  ;;  %v6924_v0 = vld [vmem:[%s9961_s1 + $0x170] sm:$0xff]   ;;  %v380_v5 = vld [vmem:[%s7381_s12 + $0x18] sm:$0xf] }
  0x32   : > { %5712 = vmatpush3.bf16.msra.mxu0 %v6898_v7  ;;  %6828 = vmatpush3.bf16.msra.mxu1 %v6898_v7  ;;  %v584_v34 = vsel %vm572_vm0, %v579_v30, %v583_v24  ;;  %v593_v54 = vshll.u32 %v7437_v45, 16  ;;  %v730_v55 = vshrl.u32 %v7440_v47, 16  ;;  %v732_v56 = vshll.u32 %v7440_v47, 16  ;;  %v6926_v4 = vld [vmem:[%s9961_s1 + $0x130] sm:$0xff]   ;;  %v381_v6 = vld [vmem:[%s7381_s12 + $0x1c] sm:$0xf] }
  0x33   : > { %5713 = vmatprep.subr.bf16.mxu0 %v6899_v8  ;;  %6821 = vmatprep.subr.bf16.mxu1 %v6899_v8  ;;  %v723_v35 = vor.u32 %v722_v31, %v718_v26  ;;  %v590_v57 = vrot.slane %v588_v51, 1  ;;  %v737_v58 = vshll.u32 %v7451_v52, 16  ;;  %v382_v8 = vld [vmem:[%s7381_s12 + $0x20] sm:$0x1]  ;;  %v4390_v13 = vshll.u32 %v380_v5, 16  ;;  %v6922_v27 = vld [vmem:[%s9961_s1 + $0xa8] sm:$0xff]  }
  0x34   : > { %1506 = vmatprep.mubr.bf16.mxu0 %v584_v34  ;;  %v595_v59 = vrot.slane %v593_v54, 1  ;;  %v734_v60 = vrot.slane %v732_v56, 1  ;;  %v416_v14 = vld [vmem:[%s7381_s12 + $0xa8] sm:$0xf]  ;;  %v7488_v15 = vcombine.low %v382_v8, %v382_v8  ;;  %v4400_v17 = vshrl.u32 %v381_v6, 16  ;;  %v6923_v31 = vld [vmem:[%s9961_s1 + $0xe0] sm:$0xff]  }
  0x35   : > { %v7435_v44 = vsel %vm572_vm0, %v723_v35, %v727_v32  ;;  %v591_v62 = vor.u32 %v590_v57, %v586_v50  ;;  %v739_v63 = vrot.slane %v737_v58, 1  ;;  %v4406_v18 = vshll.u32 %v382_v8, 16  ;;  %v417_v19 = vld [vmem:[%s7381_s12 + $0xac] sm:$0xf]  ;;  %v418_v26 = vld [vmem:[%s7381_s12 + $0xb0] sm:$0x1] }
  0x36   : > { %5714 = vmatpush3.bf16.msra.mxu0 %v6900_v9  ;;  %6829 = vmatpush3.bf16.msra.mxu1 %v6900_v9  ;;  %v735_v1 = vor.u32 %v734_v60, %v730_v55  ;;  %v7484_v9 = vcombine.low %v380_v5, %v381_v6  ;;  %v605_v28 = vshll.u32 %v7488_v15, 16  ;;  %v4402_v30 = vrot.slane %v4400_v17, 4  ;;  %v6931_v55 = vld [vmem:[%s9961_s1 + $0xd8] sm:$0xff]   ;;  %v383_v56 = vld [vmem:[%s7381_s12 + $0x24] sm:$0xf]  ;;  %s7154_s27 = sshll.u32 %s7222_s26, 4  ;;  %s7155_s27 = int_to_ptr.vmem [resolvable:$false] %s7154_s27 }
  0x37   : > { %5715 = vmatprep.subr.bf16.mxu0 %v6901_v10  ;;  %6822 = vmatprep.subr.bf16.mxu1 %v6901_v10  ;;  %v7472_v3 = vsel %vm572_vm0, %v591_v62, %v595_v59  ;;  %v4387_v10 = vshrl.u32 %v380_v5, 16  ;;  %v7501_v34 = vcombine.low %v416_v14, %v417_v19  ;;  %v7503_v35 = vcombine.low %v418_v26, %v418_v26  ;;  %v6932_v59 = vld [vmem:[%s9961_s1 + $0x98] sm:$0xff]   ;;  %v384_v60 = vld [vmem:[%s7381_s12 + $0x28] sm:$0xf]  ;;  %v6933_v14 = vld [vmem:[%s9961_s1 + $0xd0] sm:$0xff]   ;;  %s7156_s25 = scalar_lea.vmem %s7155_s27, 8192  ;;  %p7157_p11 = scmp.lt.s32.totalorder %s9914_s29, %s7155_s27 }
  0x38   : > { %1602 = vmatprep.mubr.bf16.mxu1 %v7435_v44  ;;  %v7481_v7 = vsel %vm572_vm0, %v735_v1, %v739_v63  ;;  %v600_v23 = vshll.u32 %v7484_v9, 16  ;;  %v4408_v39 = vrot.slane %v4406_v18, 5  ;;  %v6940_v62 = vld [vmem:[%s9961_s1 + $0x168] sm:$0xff]   ;;  %v7541_v1 = vcombine.low %v383_v56, %v384_v60  ;;  %v420_v5 = vld [vmem:[%s7381_s12 + $0xb8] sm:$0xf]  ;;  %v6934_v19 = vld [vmem:[%s9961_s1 + $0x90] sm:$0xff]  }
  0x39   : > { %v4389_v24 = vrot.slane %v4387_v10, 4  ;;  %v742_v43 = vshrl.u32 %v7501_v34, 16  ;;  %v744_v46 = vshll.u32 %v7501_v34, 16  ;;  %v749_v50 = vshll.u32 %v7503_v35, 16 }
  0x3a   : > { %5716 = vmatpush3.bf16.msra.mxu0 %v6902_v16  ;;  %6830 = vmatpush3.bf16.msra.mxu1 %v6902_v16  ;;  %v4396_v16 = vshll.u32 %v381_v6, 16  ;;  %v602_v32 = vrot.slane %v600_v23, 1  ;;  %v421_v6 = vld [vmem:[%s7381_s12 + $0xbc] sm:$0x1]  ;;  %v612_v17 = vshll.u32 %v7541_v1, 16 }
  0x3b   : > { %5717 = vmatprep.subr.bf16.mxu0 %v6903_v20  ;;  %6823 = vmatprep.subr.bf16.mxu1 %v6903_v20  ;;  %v598_v20 = vshrl.u32 %v7484_v9, 16  ;;  %v746_v54 = vrot.slane %v744_v46, 1  ;;  %v751_v58 = vrot.slane %v749_v50, 1  ;;  %v7550_v10 = vcombine.low %v421_v6, %v421_v6  ;;  %v6947_v50 = vld [vmem:[%s9961_s1 + $0x160] sm:$0xff]   ;;  %v394_v6 = vld [vmem:[%s7381_s12 + $0x50] sm:$0x1] }
  0x3c   : > { %v614_v26 = vrot.slane %v612_v17, 1 }
  0x3d   : > { %v603_v40 = vor.u32 %v602_v32, %v598_v20 }
  0x3e   : > { %5718 = vmatpush3.bf16.msra.mxu0 %v6904_v25  ;;  %6831 = vmatpush3.bf16.msra.mxu1 %v6904_v25  ;;  %v4392_v25 = vrot.slane %v4390_v13, 5 }
  0x3f   : > { %5719 = vmatprep.subr.bf16.mxu0 %v6905_v29  ;;  %6824 = vmatprep.subr.bf16.mxu1 %v6905_v29  ;;  %v4398_v29 = vrot.slane %v4396_v16, 5  ;;  %v610_v16 = vshrl.u32 %v7541_v1, 16 }
  0x41   : > { %v4403_v38 = vor.u32 %v4402_v30, %v4398_v29  ;;  %v615_v30 = vor.u32 %v614_v26, %v610_v16 }
  0x42   : > { %5720 = vmatpush3.bf16.msra.mxu0 %v6906_v33  ;;  %6832 = vmatpush3.bf16.msra.mxu1 %v6906_v33  ;;  %v4393_v33 = vor.u32 %v4392_v25, %v4389_v24  ;;  %v761_v24 = vshll.u32 %v7550_v10, 16  ;;  %v6942_v25 = vld [vmem:[%s9961_s1 + $0x128] sm:$0xff]  }
  0x43   : > { %5817 = vmatprep.subr.bf16.mxu1 %v6911_v36  ;;  %5929 = vmatprep.subr.bf16.mxu0 %v6912_v37  ;;  %v607_v36 = vrot.slane %v605_v28, 1  ;;  %v10001_v37 = vmov 0 }
  0x44   : > { %v10002_v37 = vsel %vm7507_vm3, 4294967295, %v10001_v37  ;;  %v4394_v42 = vrot.slane %v4393_v33, 4  ;;  %v6941_v33 = vld [vmem:[%s9961_s1 + $0x88] sm:$0xff]  }
  0x45   : > { %1507 = vmatmul.mubr.bf16.vlgmr.msra.gmra.mxu0 %v7387_v11  ;;  %1603 = vmatmul.mubr.bf16.vlgmr.msra.gmra.mxu1 %v7404_v21  ;;  %10003 = vst [vmem:[#allocation8_spill] sm:$0xff] %v10002_v37  ;;  %v7520_v51 = vsel %vm572_vm0, %v603_v40, %v607_v36  ;;  %v386_v36 = vld [vmem:[%s7381_s12 + $0x30] sm:$0xf]  ;;  %v387_v40 = vld [vmem:[%s7381_s12 + $0x34] sm:$0xf] }
  0x46   : > { %5818 = vmatpush3.bf16.msra.mxu1 %v6913_v48  ;;  %5930 = vmatpush3.bf16.msra.mxu0 %v6914_v49  ;;  %v6925_v48 = vld [vmem:[%s9961_s1 + $0xa0] sm:$0xff]   ;;  %v4404_v49 = vrot.slane %v4403_v38, 4 }
  0x47   : > { %5819 = vmatprep.subr.bf16.mxu1 %v6915_v53  ;;  %1514 = vmatprep.mubr.bf16.mxu0 %v7472_v3  ;;  %v4399_v53 = vsel %vm7507_vm3, %v4394_v42, %v4398_v29  ;;  %v763_v29 = vrot.slane %v761_v24, 1  ;;  %v388_v42 = vld [vmem:[%s7381_s12 + $0x38] sm:$0x1] }
  0x48   : > { %1610 = vmatprep.mubr.bf16.mxu1 %v7481_v7  ;;  %5931 = vmatprep.subr.bf16.mxu0 %v6924_v0  ;;  %v4409_v57 = vsel %vm7507_vm3, %v4404_v49, %v4408_v39  ;;  %v747_v0 = vor.u32 %v746_v54, %v742_v43  ;;  %v6943_v39 = vld [vmem:[%s9961_s1 + $0xc0] sm:$0xff]   ;;  %v783_v43 = vrot.slane %v7390_v12, 1  ;;  %v7595_v49 = vcombine.low %v388_v42, %v388_v42  ;;  %v389_v54 = vld [vmem:[%s7381_s12 + $0x3c] sm:$0xf] }
  0x49   : > { %v7539_v63 = vcombine.low %v4399_v53, %v4409_v57  ;;  %v782_v12 = vrot.slane %v7387_v11, 1  ;;  %v6948_v53 = vld [vmem:[%s9961_s1 + $0x120] sm:$0xff]  }
  0x4a   : > { %5820 = vmatpush3.bf16.msra.mxu1 %v6916_v61  ;;  %5932 = vmatpush3.bf16.msra.mxu0 %v6926_v4  ;;  %v385_v61 = vld [vmem:[%s7381_s12 + $0x2c] sm:$0x1]  ;;  %v419_v4 = vld [vmem:[%s7381_s12 + $0xb4] sm:$0xf]  ;;  %v7553_v13 = vsel %vm572_vm0, %v747_v0, %v751_v58  ;;  %v629_v58 = vshll.u32 %v7595_v49, 16 }
  0x4b   : > { %5821 = vmatprep.subr.bf16.mxu1 %v6921_v2  ;;  %10004 = vst [vmem:[#allocation9_spill] sm:$0xff] %v7539_v63  ;;  %v7543_v2 = vcombine.low %v385_v61, %v385_v61  ;;  %v7548_v8 = vcombine.low %v419_v4, %v420_v5  ;;  %5933 = vmatprep.subr.bf16.mxu0 %v6940_v62  ;;  %v391_v11 = vld [vmem:[%s7381_s12 + $0x44] sm:$0x1]  ;;  %v392_v61 = vld [vmem:[%s7381_s12 + $0x48] sm:$0xf] }
  0x4c   : > { %v393_v62 = vld [vmem:[%s7381_s12 + $0x4c] sm:$0xf]  ;;  %v631_v4 = vrot.slane %v629_v58, 1  ;;  %v7621_v5 = vcombine.low %v391_v11, %v391_v11  ;;  %v399_v11 = vld [vmem:[%s7381_s12 + $0x64] sm:$0xf] }
  0x4d   : > { %1515 = vmatmul.mubr.bf16.gmra.mxu0 %v7430_v41  ;;  %1611 = vmatmul.mubr.bf16.gmra.mxu1 %v7440_v47  ;;  %v617_v18 = vshll.u32 %v7543_v2, 16  ;;  %v754_v20 = vshrl.u32 %v7548_v8, 16  ;;  %v756_v23 = vshll.u32 %v7548_v8, 16 }
  0x4e   : > { %5822 = vmatpush3.bf16.msra.mxu1 %v6922_v27  ;;  %1522 = vmatprep.mubr.bf16.mxu0 %v7520_v51 }
  0x4f   : > { %5823 = vmatprep.subr.bf16.mxu1 %v6923_v31  ;;  %1618 = vmatprep.mubr.bf16.mxu1 %v7553_v13  ;;  %v619_v27 = vrot.slane %v617_v18, 1  ;;  %v758_v28 = vrot.slane %v756_v23, 1  ;;  %v6939_v31 = vld [vmem:[%s9961_s1 + $0xc8] sm:$0xff]   ;;  %v7628_v18 = vcombine.low %v394_v6, %v394_v6  ;;  %v641_v23 = vshll.u32 %v7621_v5, 16 }
  0x50   : > { %5934 = vmatpush3.bf16.msra.mxu0 %v6942_v25  ;;  %v6954_v25 = vld [vmem:[%s9961_s1 + $0x118] sm:$0xff]  }
  0x51   : > { %v759_v32 = vor.u32 %v758_v28, %v754_v20  ;;  %v7581_v38 = vsel %vm572_vm0, %v615_v30, %v619_v27  ;;  %5935 = vmatprep.subr.bf16.mxu0 %v6947_v50  ;;  %v643_v30 = vrot.slane %v641_v23, 1  ;;  %v6957_v50 = vld [vmem:[%s9961_s1 + $0x150] sm:$0xff]   ;;  %v789_v23 = vrot.slane %v7488_v15, 1  ;;  %v6971_v15 = vld [vmem:[%s9961_s1 + $0x1f8] sm:$0xff]  }
  0x52   : > { %5824 = vmatpush3.bf16.msra.mxu1 %v6925_v48  ;;  %v7593_v48 = vcombine.low %v386_v36, %v387_v40  ;;  %v397_v40 = vld [vmem:[%s7381_s12 + $0x5c] sm:$0x1] }
  0x53   : > { %5825 = vmatprep.subr.bf16.mxu1 %v6931_v55  ;;  %v7591_v46 = vsel %vm572_vm0, %v759_v32, %v763_v29  ;;  %v6944_v55 = vld [vmem:[%s9961_s1 + $0x80] sm:$0xff]   ;;  %v784_v29 = vsel %vm781_vm4, %v782_v12, %v783_v43  ;;  %v395_v32 = vld [vmem:[%s7381_s12 + $0x54] sm:$0xf] }
  0x54   : > { %v622_v56 = vshrl.u32 %v7593_v48, 16  ;;  %v624_v57 = vshll.u32 %v7593_v48, 16  ;;  %5936 = vmatpush3.bf16.msra.mxu0 %v6948_v53  ;;  %v6958_v12 = vld [vmem:[%s9961_s1 + $0x110] sm:$0xff]   ;;  %v785_v53 = vrot.slane %v7430_v41, 1 }
  0x55   : > { %1523 = vmatmul.mubr.bf16.gmra.mxu0 %v7484_v9  ;;  %1619 = vmatmul.mubr.bf16.gmra.mxu1 %v7501_v34 }
  0x56   : > { %5826 = vmatpush3.bf16.msra.mxu1 %v6932_v59  ;;  %1530 = vmatprep.mubr.bf16.mxu0 %v7581_v38  ;;  %v390_v59 = vld [vmem:[%s7381_s12 + $0x40] sm:$0xf]  ;;  %v626_v0 = vrot.slane %v624_v57, 1 }
  0x57   : > { %5827 = vmatprep.subr.bf16.mxu1 %v6933_v14  ;;  %1626 = vmatprep.mubr.bf16.mxu1 %v7591_v46  ;;  %v7616_v60 = vcombine.low %v389_v54, %v390_v59  ;;  %v7624_v14 = vcombine.low %v392_v61, %v393_v62  ;;  %v786_v54 = vrot.slane %v7437_v45, 1  ;;  %v398_v59 = vld [vmem:[%s7381_s12 + $0x60] sm:$0xf]  ;;  %v6963_v61 = vld [vmem:[%s9961_s1 + $0x148] sm:$0xff]  }
  0x58   : > { %v627_v20 = vor.u32 %v626_v0, %v622_v56  ;;  %v6964_v0 = vld [vmem:[%s9961_s1 + $0x108] sm:$0xff]  }
  0x59   : > { %v634_v16 = vshrl.u32 %v7616_v60, 16  ;;  %v636_v17 = vshll.u32 %v7616_v60, 16  ;;  %v648_v24 = vshll.u32 %v7624_v14, 16  ;;  %v646_v27 = vshrl.u32 %v7624_v14, 16 }
  0x5a   : > { %5828 = vmatpush3.bf16.msra.mxu1 %v6934_v19  ;;  %v6953_v19 = vld [vmem:[%s9961_s1 + $0x158] sm:$0xff]   ;;  %v7640_v28 = vsel %vm572_vm0, %v627_v20, %v631_v4  ;;  %v788_v20 = vrot.slane %v7484_v9, 1 }
  0x5b   : > { %5829 = vmatprep.subr.bf16.mxu1 %v6939_v31  ;;  %v638_v26 = vrot.slane %v636_v17, 1  ;;  %5937 = vmatprep.subr.bf16.mxu0 %v6953_v19  ;;  %v653_v31 = vshll.u32 %v7628_v18, 16  ;;  %v7684_v17 = vcombine.low %v398_v59, %v399_v11  ;;  %v6967_v19 = vld [vmem:[%s9961_s1 + $0x140] sm:$0xff]   ;;  %v795_v59 = vrot.slane %v7595_v49, 1 }
  0x5c   : > { %5938 = vmatpush3.bf16.msra.mxu0 %v6954_v25  ;;  %v6968_v25 = vld [vmem:[%s9961_s1 + $0x100] sm:$0xff]  }
  0x5d   : > { %1531 = vmatmul.mubr.bf16.gmra.mxu0 %v7541_v1  ;;  %1627 = vmatmul.mubr.bf16.gmra.mxu1 %v7548_v8  ;;  %v639_v36 = vor.u32 %v638_v26, %v634_v16  ;;  %v655_v57 = vrot.slane %v653_v31, 1  ;;  %v400_v16 = vld [vmem:[%s7381_s12 + $0x68] sm:$0x1]  ;;  %v672_v31 = vshll.u32 %v7684_v17, 16 }
  0x5e   : > { %5830 = vmatpush3.bf16.msra.mxu1 %v6941_v33  ;;  %1667 = vmatprep.mubr.bf16.mxu1 %v7430_v41  ;;  %v396_v33 = vld [vmem:[%s7381_s12 + $0x58] sm:$0xf]  ;;  %v7673_v41 = vsel %vm781_vm4, %v785_v53, %v786_v54  ;;  %v7699_v26 = vcombine.low %v400_v16, %v400_v16  ;;  %v405_v16 = vld [vmem:[%s7381_s12 + $0x7c] sm:$0xf] }
  0x5f   : > { %5831 = vmatprep.subr.bf16.mxu1 %v6943_v39  ;;  %1538 = vmatprep.mubr.bf16.mxu0 %v7640_v28  ;;  %v650_v39 = vrot.slane %v648_v24, 1  ;;  %v7648_v42 = vcombine.low %v395_v32, %v396_v33  ;;  %v7655_v43 = vsel %vm572_vm0, %v639_v36, %v643_v30  ;;  %v401_v24 = vld [vmem:[%s7381_s12 + $0x6c] sm:$0xf]  ;;  %v403_v32 = vld [vmem:[%s7381_s12 + $0x74] sm:$0x1]  ;;  %v7710_v36 = vsel %vm781_vm4, %v788_v20, %v789_v23  ;;  %v6972_v54 = vld [vmem:[%s9961_s1 + $0x1b8] sm:$0xff]  }
  0x60   : > { %5939 = vmatprep.subr.bf16.mxu0 %v6957_v50  ;;  %v670_v50 = vshrl.u32 %v7684_v17, 16  ;;  %v7717_v53 = vcombine.low %v403_v32, %v403_v32  ;;  %v6977_v20 = vld [vmem:[%s9961_s1 + $0x1e8] sm:$0xff]   ;;  %v6980_v32 = vld [vmem:[%s9961_s1 + $0x1e0] sm:$0xff]  }
  0x61   : > { %v651_v56 = vor.u32 %v650_v39, %v646_v27  ;;  %v660_v58 = vshll.u32 %v7648_v42, 16  ;;  %5940 = vmatpush3.bf16.msra.mxu0 %v6958_v12  ;;  %v658_v45 = vshrl.u32 %v7648_v42, 16  ;;  %v402_v27 = vld [vmem:[%s7381_s12 + $0x70] sm:$0xf]  ;;  %v677_v39 = vshll.u32 %v7699_v26, 16 }
  0x62   : > { %5832 = vmatpush3.bf16.msra.mxu1 %v6944_v55  ;;  %v7664_v55 = vcombine.low %v397_v40, %v397_v40  ;;  %5941 = vmatprep.subr.bf16.mxu0 %v6963_v61  ;;  %v7707_v33 = vcombine.low %v401_v24, %v402_v27  ;;  %v674_v12 = vrot.slane %v672_v31, 1  ;;  %v7732_v61 = vld [vmem:[%s9961_s1 + $0x238] sm:$0xff]   ;;  %v689_v49 = vshll.u32 %v7717_v53, 16  ;;  %v406_v24 = vld [vmem:[%s7381_s12 + $0x80] sm:$0x1] }
  0x63   : > { %v7681_v4 = vsel %vm572_vm0, %v651_v56, %v655_v57  ;;  %v662_v6 = vrot.slane %v660_v58, 1  ;;  %6041 = vmatprep.subr.bf16.mxu1 %v6971_v15  ;;  %v791_v56 = vrot.slane %v7541_v1, 1  ;;  %v792_v57 = vrot.slane %v7543_v2, 1  ;;  %v407_v15 = vld [vmem:[%s7381_s12 + $0x84] sm:$0xf] }
  0x64   : > { %v665_v62 = vshll.u32 %v7664_v55, 16  ;;  %v794_v58 = vrot.slane %v7593_v48, 1  ;;  %v684_v11 = vshll.u32 %v7707_v33, 16  ;;  %v679_v2 = vrot.slane %v677_v39, 1  ;;  %v408_v39 = vld [vmem:[%s7381_s12 + $0x88] sm:$0xf] }
  0x65   : > { %1539 = vmatmul.mubr.bf16.gmra.mxu0 %v7593_v48  ;;  %1668 = vmatmul.mubr.bf16.vlgmr.msra.gmra.mxu1 %v784_v29  ;;  %v663_v29 = vor.u32 %v662_v6, %v658_v45  ;;  %v6974_v45 = vld [vmem:[%s9961_s1 + $0x1f0] sm:$0xff]   ;;  %v7751_v23 = vsel %vm781_vm4, %v791_v56, %v792_v57  ;;  %v691_v31 = vrot.slane %v689_v49, 1  ;;  %v6981_v57 = vld [vmem:[%s9961_s1 + $0x1a0] sm:$0xff]  }
  0x66   : > { %1546 = vmatprep.mubr.bf16.mxu0 %v7655_v43  ;;  %1675 = vmatprep.mubr.bf16.mxu1 %v7484_v9  ;;  %v667_v30 = vrot.slane %v665_v62, 1  ;;  %v675_v62 = vor.u32 %v674_v12, %v670_v50  ;;  %v6975_v6 = vld [vmem:[%s9961_s1 + $0x1b0] sm:$0xff]   ;;  %v686_v27 = vrot.slane %v684_v11, 1  ;;  %v409_v50 = vld [vmem:[%s7381_s12 + $0x8c] sm:$0x1]  ;;  %v6982_v11 = vld [vmem:[%s9961_s1 + $0x1d8] sm:$0xff]  }
  0x67   : > { %5942 = vmatpush3.bf16.msra.mxu0 %v6964_v0  ;;  %v404_v0 = vld [vmem:[%s7381_s12 + $0x78] sm:$0xf]  ;;  %6042 = vmatpush3.bf16.msra.mxu1 %v6972_v54  ;;  %v7772_v54 = vcombine.low %v406_v24, %v406_v24  ;;  %v7787_v49 = vcombine.low %v409_v50, %v409_v50  ;;  %v800_v24 = vrot.slane %v7624_v14, 1  ;;  %v6988_v50 = vld [vmem:[%s9961_s1 + $0x1c8] sm:$0xff]  }
  0x68   : > { %5943 = vmatprep.subr.bf16.mxu0 %v6967_v19  ;;  %v7714_v40 = vsel %vm572_vm0, %v663_v29, %v667_v30  ;;  %6043 = vmatprep.subr.bf16.mxu1 %v6974_v45  ;;  %v682_v19 = vshrl.u32 %v7707_v33, 16  ;;  %v7757_v29 = vcombine.low %v404_v0, %v405_v16  ;;  %v6978_v30 = vld [vmem:[%s9961_s1 + $0x1a8] sm:$0xff]   ;;  %v7784_v45 = vsel %vm781_vm4, %v794_v58, %v795_v59  ;;  %v6985_v59 = vld [vmem:[%s9961_s1 + $0x1d0] sm:$0xff]  }
  0x69   : > { %v798_v58 = vrot.slane %v7621_v5, 1  ;;  %v713_v5 = vshll.u32 %v7787_v49, 16 }
  0x6a   : > { %v687_v12 = vor.u32 %v686_v27, %v682_v19  ;;  %v696_v56 = vshll.u32 %v7757_v29, 16  ;;  %v701_v19 = vshll.u32 %v7772_v54, 16 }
  0x6b   : > { %5944 = vmatpush3.bf16.msra.mxu0 %v6968_v25  ;;  %v7755_v25 = vsel %vm572_vm0, %v675_v62, %v679_v2  ;;  %6044 = vmatpush3.bf16.msra.mxu1 %v6975_v6  ;;  %v7781_v2 = vcombine.low %v407_v15, %v408_v39  ;;  %v797_v62 = vrot.slane %v7616_v60, 1  ;;  %v694_v6 = vshrl.u32 %v7757_v29, 16 }
  0x6c   : > { %6673 = vmatprep.subr.bf16.mxu0 %v7732_v61  ;;  %6045 = vmatprep.subr.bf16.mxu1 %v6977_v20  ;;  %v7790_v0 = vsel %vm572_vm0, %v687_v12, %v691_v31  ;;  %v698_v16 = vrot.slane %v696_v56, 1  ;;  %v6984_v20 = vld [vmem:[%s9961_s1 + $0x198] sm:$0xff]   ;;  %v703_v15 = vrot.slane %v701_v19, 1 }
  0x6d   : > { %1547 = vmatmul.mubr.bf16.gmra.mxu0 %v7616_v60  ;;  %1676 = vmatmul.mubr.bf16.gmra.mxu1 %v7673_v41  ;;  %v708_v27 = vshll.u32 %v7781_v2, 16  ;;  %v706_v39 = vshrl.u32 %v7781_v2, 16  ;;  %v7820_v56 = vsel %vm781_vm4, %v797_v62, %v798_v58  ;;  %v803_v58 = vrot.slane %v7648_v42, 1 }
  0x6e   : > { %1554 = vmatprep.mubr.bf16.mxu0 %v7681_v4  ;;  %1683 = vmatprep.mubr.bf16.mxu1 %v7541_v1  ;;  %v699_v31 = vor.u32 %v698_v16, %v694_v6  ;;  %v6991_v16 = vld [vmem:[%s9961_s1 + $0x180] sm:$0xff]  }
  0x6f   : > { %6046 = vmatpush3.bf16.msra.mxu1 %v6978_v30  ;;  %v801_v30 = vrot.slane %v7628_v18, 1  ;;  %v710_v12 = vrot.slane %v708_v27, 1  ;;  %v6989_v18 = vld [vmem:[%s9961_s1 + $0x188] sm:$0xff]   ;;  %v806_v27 = vrot.slane %v7684_v17, 1 }
  0x70   : > { %6047 = vmatprep.subr.bf16.mxu1 %v6980_v32  ;;  %v6986_v32 = vld [vmem:[%s9961_s1 + $0x190] sm:$0xff]   ;;  %v7826_v6 = vsel %vm572_vm0, %v699_v31, %v703_v15  ;;  %v812_v15 = vrot.slane %v7757_v29, 1 }
  0x71   : > { %v711_v62 = vor.u32 %v710_v12, %v706_v39  ;;  %v7836_v19 = vsel %vm781_vm4, %v800_v24, %v801_v30  ;;  %v807_v24 = vrot.slane %v7699_v26, 1  ;;  %v809_v30 = vrot.slane %v7707_v33, 1  ;;  %v6993_v12 = vld [vmem:[%s9961_s1 + $0x210] sm:$0xff]  }
  0x72   : > { %v815_v39 = vrot.slane %v7781_v2, 1  ;;  %v819_v26 = vrot.slane %v7406_v22, 1 }
  0x73   : > { %6048 = vmatpush3.bf16.msra.mxu1 %v6981_v57  ;;  %v715_v57 = vrot.slane %v713_v5, 1  ;;  %v810_v5 = vrot.slane %v7717_v53, 1  ;;  %v6976_v53 = vld [vmem:[%s9961_s1 + $0x230] sm:$0xff]  }
  0x74   : > { %6049 = vmatprep.subr.bf16.mxu1 %v6982_v11  ;;  %v6990_v11 = vld [vmem:[%s9961_s1 + $0x1c0] sm:$0xff]  }
  0x75   : > { %1555 = vmatmul.mubr.bf16.gmra.mxu0 %v7624_v14  ;;  %1684 = vmatmul.mubr.bf16.gmra.mxu1 %v7710_v36  ;;  %v7879_v22 = vsel %vm781_vm4, %v809_v30, %v810_v5  ;;  %v422_v30 = vld [vmem:[%s7381_s12 + $0xc0] sm:$0xf]  ;;  %v423_v5 = vld [vmem:[%s7381_s12 + $0xc4] sm:$0xf] }
  0x76   : > { %1562 = vmatprep.mubr.bf16.mxu0 %v7714_v40  ;;  %1691 = vmatprep.mubr.bf16.mxu1 %v7593_v48 }
  0x77   : > { %6050 = vmatpush3.bf16.msra.mxu1 %v6984_v20  ;;  %v7839_v20 = vsel %vm572_vm0, %v711_v62, %v715_v57  ;;  %v821_v62 = vrot.slane %v7440_v47, 1 }
  0x78   : > { %6051 = vmatprep.subr.bf16.mxu1 %v6985_v59  ;;  %v804_v59 = vrot.slane %v7664_v55, 1  ;;  %v818_v55 = vrot.slane %v7404_v21, 1 }
  0x7a   : > { %v7852_v31 = vsel %vm781_vm4, %v803_v58, %v804_v59  ;;  %v822_v58 = vrot.slane %v7451_v52, 1  ;;  %v7937_v52 = vcombine.low %v422_v30, %v423_v5 }
  0x7b   : > { %6052 = vmatpush3.bf16.msra.mxu1 %v6986_v32  ;;  %v813_v32 = vrot.slane %v7772_v54, 1  ;;  %v7868_v54 = vsel %vm781_vm4, %v806_v27, %v807_v24  ;;  %v824_v27 = vrot.slane %v7501_v34, 1  ;;  %v825_v24 = vrot.slane %v7503_v35, 1 }
  0x7c   : > { %6053 = vmatprep.subr.bf16.mxu1 %v6988_v50  ;;  %v816_v50 = vrot.slane %v7787_v49, 1  ;;  %v6979_v49 = vld [vmem:[%s9961_s1 + $0x228] sm:$0xff]   ;;  %v7924_v59 = vsel %vm781_vm4, %v821_v62, %v822_v58  ;;  %v868_v58 = vrot.slane %v7937_v52, 1 }
  0x7d   : > { %1563 = vmatmul.mubr.bf16.gmra.mxu0 %v7648_v42  ;;  %1692 = vmatmul.mubr.bf16.gmra.mxu1 %v7751_v23 }
  0x7e   : > { %1570 = vmatprep.mubr.bf16.mxu0 %v7755_v25  ;;  %1699 = vmatprep.mubr.bf16.mxu1 %v7616_v60  ;;  %v7905_v57 = vsel %vm781_vm4, %v815_v39, %v816_v50  ;;  %v828_v39 = vrot.slane %v7550_v10, 1 }
  0x7f   : > { %6054 = vmatpush3.bf16.msra.mxu1 %v6989_v18  ;;  %v6994_v18 = vld [vmem:[%s9961_s1 + $0x208] sm:$0xff]  }
  0x80   : > { %6055 = vmatprep.subr.bf16.mxu1 %v6990_v11  ;;  %v6995_v11 = vld [vmem:[%s9961_s1 + $0x200] sm:$0xff]  }
  0x83   : > { %6056 = vmatpush3.bf16.msra.mxu1 %v6991_v16  ;;  %v7915_v16 = vsel %vm781_vm4, %v818_v55, %v819_v26  ;;  %v7001_v55 = vld [vmem:[#allocation2 + $0x70] sm:$0xff]  }
  0x85   : > { %1571 = vmatmul.mubr.bf16.gmra.mxu0 %v7684_v17  ;;  %1700 = vmatmul.mubr.bf16.gmra.mxu1 %v7784_v45 }
  0x86   : > { %1578 = vmatprep.mubr.bf16.mxu0 %v7790_v0  ;;  %1707 = vmatprep.mubr.bf16.mxu1 %v7624_v14 }
  0x8d   : > { %1579 = vmatmul.mubr.bf16.gmra.mxu0 %v7707_v33  ;;  %1708 = vmatmul.mubr.bf16.gmra.mxu1 %v7820_v56 }
  0x8e   : > { %1586 = vmatprep.mubr.bf16.mxu0 %v7826_v6  ;;  %1715 = vmatprep.mubr.bf16.mxu1 %v7648_v42 }
  0x95   : > { %1587 = vmatmul.mubr.bf16.gmra.mxu0 %v7757_v29  ;;  %1716 = vmatmul.mubr.bf16.gmra.mxu1 %v7836_v19 }
  0x96   : > { %1594 = vmatprep.mubr.bf16.mxu0 %v7839_v20  ;;  %1723 = vmatprep.mubr.bf16.mxu1 %v7684_v17 }
  0x9d   : > { %1595 = vmatmul.mubr.bf16.gmra.mxu0 %v7781_v2  ;;  %1724 = vmatmul.mubr.bf16.gmra.mxu1 %v7852_v31 }
  0x9e   : > { %1731 = vmatprep.mubr.bf16.mxu1 %v7707_v33  ;;  %1828 = vmatprep.mubr.bf16.mxu0 %v7673_v41  ;;  %v6983_v41 = vld [vmem:[%s9961_s1 + $0x220] sm:$0xff]  }
  0xa5   : > { %1732 = vmatmul.mubr.bf16.gmra.mxu1 %v7868_v54  ;;  %1829 = vmatmul.mubr.bf16.vlgmr.msra.gmra.mxu0 %v7472_v3  ;;  %v6992_v3 = vld [vmem:[%s9961_s1 + $0x218] sm:$0xff]  }
  0xa6   : > { %6674 = vmatpush3.bf16.msra.mxu0 %v7732_v61  ;;  %1739 = vmatprep.mubr.bf16.mxu1 %v7757_v29  ;;  %v7892_v61 = vsel %vm781_vm4, %v812_v15, %v813_v32  ;;  %v7935_v15 = vsel %vm781_vm4, %v824_v27, %v825_v24  ;;  %v827_v32 = vrot.slane %v7548_v8, 1 }
  0xa7   : > { %1836 = vmatprep.mubr.bf16.mxu0 %v7710_v36  ;;  %6675 = vmatprep.subr.bf16.mxu0 %v6976_v53 }
  0xa8   : > { %v7946_v35 = vsel %vm781_vm4, %v827_v32, %v828_v39 }
  0xaa   : > { %6676 = vmatpush3.bf16.msra.mxu0 %v6976_v53 }
  0xab   : > { %6677 = vmatprep.subr.bf16.mxu0 %v6979_v49 }
  0xad   : > { %1740 = vmatmul.mubr.bf16.gmra.mxu1 %v7879_v22  ;;  %1837 = vmatmul.mubr.bf16.gmra.mxu0 %v7520_v51 }
  0xae   : > { %1747 = vmatprep.mubr.bf16.mxu1 %v7781_v2  ;;  %1844 = vmatprep.mubr.bf16.mxu0 %v7751_v23 }
  0xaf   : > { %6678 = vmatpush3.bf16.msra.mxu0 %v6979_v49 }
  0xb0   : > { %6679 = vmatprep.subr.bf16.mxu0 %v6983_v41 }
  0xb3   : > { %6680 = vmatpush3.bf16.msra.mxu0 %v6983_v41  ;;  %v7002_v41 = vld [vmem:[#allocation2 + $0x30] sm:$0xff]  }
  0xb4   : > { %6681 = vmatprep.subr.bf16.mxu0 %v6992_v3 }
  0xb5   : > { %1748 = vmatmul.mubr.bf16.gmra.mxu1 %v7892_v61  ;;  %1845 = vmatmul.mubr.bf16.gmra.mxu0 %v7581_v38 }
  0xb6   : > { %1755 = vmatprep.mubr.bf16.mxu1 %v7404_v21  ;;  %1852 = vmatprep.mubr.bf16.mxu0 %v7784_v45 }
  0xb7   : > { %6682 = vmatpush3.bf16.msra.mxu0 %v6992_v3 }
  0xb8   : > { %6683 = vmatprep.subr.bf16.mxu0 %v6993_v12 }
  0xbb   : > { %6684 = vmatpush3.bf16.msra.mxu0 %v6993_v12 }
  0xbc   : > { %6685 = vmatprep.subr.bf16.mxu0 %v6994_v18 }
  0xbd   : > { %1756 = vmatmul.mubr.bf16.gmra.mxu1 %v7905_v57  ;;  %1853 = vmatmul.mubr.bf16.gmra.mxu0 %v7640_v28 }
  0xbe   : > { %1763 = vmatprep.mubr.bf16.mxu1 %v7440_v47  ;;  %1860 = vmatprep.mubr.bf16.mxu0 %v7820_v56 }
  0xbf   : > { %6686 = vmatpush3.bf16.msra.mxu0 %v6994_v18  ;;  %v858_v18 = vshll.u32 %v7937_v52, 16 }
  0xc0   : > { %6687 = vmatprep.subr.bf16.mxu0 %v6995_v11 }
  0xc1   : > { %v860_v39 = vrot.slane %v858_v18, 1  ;;  %v7003_v18 = vld [vmem:[#allocation2 + $0x68] sm:$0xff]  }
  0xc3   : > { %6688 = vmatpush3.bf16.msra.mxu0 %v6995_v11 }
  0xc5   : > { %1764 = vmatmul.mubr.bf16.gmra.mxu1 %v7915_v16  ;;  %1861 = vmatmul.mubr.bf16.gmra.mxu0 %v7655_v43 }
  0xc6   : > { %1771 = vmatprep.mubr.bf16.mxu1 %v7501_v34  ;;  %1868 = vmatprep.mubr.bf16.mxu0 %v7836_v19 }
  0xcd   : > { %1772 = vmatmul.mubr.bf16.gmra.mxu1 %v7924_v59  ;;  %1869 = vmatmul.mubr.bf16.gmra.mxu0 %v7681_v4 }
  0xce   : > { %1779 = vmatprep.mubr.bf16.mxu1 %v7548_v8  ;;  %1876 = vmatprep.mubr.bf16.mxu0 %v7852_v31 }
  0xd5   : > { %1780 = vmatmul.mubr.bf16.gmra.mxu1 %v7935_v15  ;;  %1877 = vmatmul.mubr.bf16.gmra.mxu0 %v7714_v40 }
  0xd6   : > { %1787 = vmatprep.mubr.bf16.mxu1 %v7937_v52  ;;  %1884 = vmatprep.mubr.bf16.mxu0 %v7868_v54 }
  0xdd   : > { %1788 = vmatmul.mubr.bf16.gmra.mxu1 %v7946_v35  ;;  %1885 = vmatmul.mubr.bf16.gmra.mxu0 %v7755_v25 }
  0xde   : > { %1892 = vmatprep.mubr.bf16.mxu0 %v7879_v22  ;;  %1989 = vmatprep.mubr.bf16.mxu1 %v7520_v51  ;;  %v7000_v51 = vld [vmem:[#allocation2 + $0x38] sm:$0xff]  }
  0xe5   : > { %1893 = vmatmul.mubr.bf16.gmra.mxu0 %v7790_v0  ;;  %1990 = vmatmul.mubr.bf16.vlgmr.msra.gmra.mxu1 %v7484_v9  ;;  %v6999_v9 = vld [vmem:[#allocation2 + $0x78] sm:$0xff]  }
  0xe6   : > { %1900 = vmatprep.mubr.bf16.mxu0 %v7892_v61  ;;  %1997 = vmatprep.mubr.bf16.mxu1 %v7581_v38 }
  0xe7   : > { %6177 = vmatprep.subr.bf16.mxu1 %v6999_v9 }
  0xe8   : > { %6178 = vmatpush3.bf16.msra.mxu1 %v7000_v51 }
  0xe9   : > { %6179 = vmatprep.subr.bf16.mxu1 %v7001_v55 }
  0xec   : > { %6180 = vmatpush3.bf16.msra.mxu1 %v7002_v41 }
  0xed   : > { %1901 = vmatmul.mubr.bf16.gmra.mxu0 %v7826_v6  ;;  %1998 = vmatmul.mubr.bf16.gmra.mxu1 %v7541_v1 }
  0xee   : > { %1908 = vmatprep.mubr.bf16.mxu0 %v7905_v57  ;;  %2005 = vmatprep.mubr.bf16.mxu1 %v7640_v28 }
  0xef   : > { %6181 = vmatprep.subr.bf16.mxu1 %v7003_v18 }
  0xf5   : > { %1909 = vmatmul.mubr.bf16.gmra.mxu0 %v7839_v20  ;;  %2006 = vmatmul.mubr.bf16.gmra.mxu1 %v7593_v48 }
  0xf6   : > { %1916 = vmatprep.mubr.bf16.mxu0 %v7915_v16  ;;  %2013 = vmatprep.mubr.bf16.mxu1 %v7655_v43  ;;  %v424_v43 = vld [vmem:[%s7381_s12 + $0xc8] sm:$0x1] }
  0xf7   : > { %v5338_v49 = vcombine.low %v424_v43, %v424_v43 }
  0xf9   : > { %v869_v27 = vrot.slane %v5338_v49, 1  ;;  %v863_v9 = vshll.u32 %v5338_v49, 16 }
  0xfd   : > { %1917 = vmatmul.mubr.bf16.gmra.mxu0 %v7435_v44  ;;  %2014 = vmatmul.mubr.bf16.gmra.mxu1 %v7616_v60 }
  0xfe   : > { %1924 = vmatprep.mubr.bf16.mxu0 %v7924_v59  ;;  %2021 = vmatprep.mubr.bf16.mxu1 %v7681_v4 }
 0x105   : > { %v5721_v1 = vpop.f32.mrf.mxu0  ;;  %v5793_v10 = vpop.f32.mrf.mxu1  ;;  %1925 = vmatmul.mubr.bf16.gmra.mxu0 %v7481_v7  ;;  %2022 = vmatmul.mubr.bf16.gmra.mxu1 %v7624_v14 }
 0x106   : > { %1932 = vmatprep.mubr.bf16.mxu0 %v7935_v15  ;;  %2029 = vmatprep.mubr.bf16.mxu1 %v7714_v40 }
 0x107   : > { %v5722_v38 = vpop.f32.mrf.mxu0  ;;  %v5794_v48 = vpop.f32.mrf.mxu1 }
 0x108   : > { %v7972_v28 = vadd.f32 %v5722_v38, %v5721_v1  ;;  %v7974_v60 = vadd.f32 %v5794_v48, %v5793_v10  ;;  %v7993_v1 = vsel %vm781_vm4, %v868_v58, %v869_v27 }
 0x109   : > { %v5724_v50 = vpop.f32.mrf.mxu0  ;;  %v5796_v4 = vpop.f32.mrf.mxu1 }
 0x10b   : > { %v5725_v26 = vpop.f32.mrf.mxu0  ;;  %v5797_v53 = vpop.f32.mrf.mxu1 }
 0x10c   : > { %v7977_v3 = vadd.f32 %v5725_v26, %v5724_v50  ;;  %v7979_v14 = vadd.f32 %v5797_v53, %v5796_v4  ;;  %v865_v4 = vrot.slane %v863_v9, 1 }
 0x10d   : > { %v5727_v40 = vpop.f32.mrf.mxu0  ;;  %v5799_v12 = vpop.f32.mrf.mxu1  ;;  %1933 = vmatmul.mubr.bf16.gmra.mxu0 %v7553_v13  ;;  %2030 = vmatmul.mubr.bf16.gmra.mxu1 %v7648_v42  ;;  %v856_v42 = vshrl.u32 %v7937_v52, 16 }
 0x10e   : > { %1940 = vmatprep.mubr.bf16.mxu0 %v7946_v35  ;;  %2037 = vmatprep.mubr.bf16.mxu1 %v7755_v25 }
 0x10f   : > { %v5728_v11 = vpop.f32.mrf.mxu0  ;;  %v5800_v62 = vpop.f32.mrf.mxu1  ;;  %v861_v50 = vor.u32 %v860_v39, %v856_v42 }
 0x110   : > { %v7987_v24 = vadd.f32 %v5728_v11, %v5727_v40  ;;  %v7989_v30 = vadd.f32 %v5800_v62, %v5799_v12  ;;  %v7004_v62 = vld [vmem:[#allocation2 + $0x28] sm:$0xff]  }
 0x111   : > { %v5730_v5 = vpop.f32.mrf.mxu0  ;;  %v5802_v32 = vpop.f32.mrf.mxu1  ;;  %v8008_v12 = vsel %vm572_vm0, %v861_v50, %v865_v4  ;;  %6182 = vmatpush3.bf16.msra.mxu1 %v7004_v62 }
 0x113   : > { %v5731_v51 = vpop.f32.mrf.mxu0  ;;  %v5803_v25 = vpop.f32.mrf.mxu1 }
 0x114   : > { %v7995_v10 = vadd.f32 %v5731_v51, %v5730_v5  ;;  %v7997_v38 = vadd.f32 %v5803_v25, %v5802_v32 }
 0x115   : > { %v5733_v48 = vpop.f32.mrf.mxu0  ;;  %v5805_v43 = vpop.f32.mrf.mxu1  ;;  %1941 = vmatmul.mubr.bf16.gmra.mxu0 %v7591_v46  ;;  %2038 = vmatmul.mubr.bf16.gmra.mxu1 %v7684_v17 }
 0x116   : > { %1948 = vmatprep.mubr.bf16.mxu0 %v7993_v1  ;;  %2045 = vmatprep.mubr.bf16.mxu1 %v7790_v0 }
 0x117   : > { %v5734_v55 = vpop.f32.mrf.mxu0  ;;  %v5806_v26 = vpop.f32.mrf.mxu1 }
 0x118   : > { %v8003_v53 = vadd.f32 %v5734_v55, %v5733_v48  ;;  %v8005_v49 = vadd.f32 %v5806_v26, %v5805_v43 }
 0x119   : > { %v5736_v41 = vpop.f32.mrf.mxu0  ;;  %v5808_v40 = vpop.f32.mrf.mxu1 }
 0x11b   : > { %v5737_v11 = vpop.f32.mrf.mxu0  ;;  %v5809_v17 = vpop.f32.mrf.mxu1 }
 0x11c   : > { %v8010_v58 = vadd.f32 %v5737_v11, %v5736_v41  ;;  %v8012_v0 = vadd.f32 %v5809_v17, %v5808_v40  ;;  %v7005_v17 = vld [vmem:[#allocation2 + $0x60] sm:$0xff]  }
 0x11d   : > { %v5739_v27 = vpop.f32.mrf.mxu0  ;;  %v5811_v5 = vpop.f32.mrf.mxu1  ;;  %1949 = vmatmul.mubr.bf16.gmra.mxu0 %v8008_v12  ;;  %2046 = vmatmul.mubr.bf16.gmra.mxu1 %v7707_v33 }
 0x11e   : > { %2053 = vmatprep.mubr.bf16.mxu1 %v7826_v6  ;;  %6689 = vmatprep.mubr.bf16.mxu0 %v7710_v36 }
 0x11f   : > { %v5740_v32 = vpop.f32.mrf.mxu0  ;;  %v5812_v42 = vpop.f32.mrf.mxu1  ;;  %6183 = vmatprep.subr.bf16.mxu1 %v7005_v17 }
 0x120   : > { %v8018_v39 = vadd.f32 %v5740_v32, %v5739_v27  ;;  %v8020_v9 = vadd.f32 %v5812_v42, %v5811_v5 }
 0x121   : > { %v5742_v51 = vpop.f32.mrf.mxu0  ;;  %v5814_v25 = vpop.f32.mrf.mxu1 }
 0x123   : > { %v5743_v48 = vpop.f32.mrf.mxu0  ;;  %v5815_v43 = vpop.f32.mrf.mxu1 }
 0x124   : > { %v8022_v50 = vadd.f32 %v5743_v48, %v5742_v51  ;;  %v8024_v4 = vadd.f32 %v5815_v43, %v5814_v25 }
 0x125   : > { %v5745_v33 = vpop.f32.mrf.mxu0  ;;  %v5833_v55 = vpop.f32.mrf.mxu1  ;;  %2054 = vmatmul.mubr.bf16.gmra.mxu1 %v7757_v29  ;;  %6690 = vmatmul.mubr.bf16.vlgmr.msra.gmra.mxu0 %v7751_v23  ;;  %v7006_v29 = vld [vmem:[#allocation2 + $0x20] sm:$0xff]  }
 0x126   : > { %2061 = vmatprep.mubr.bf16.mxu1 %v7839_v20  ;;  %6693 = vmatprep.mubr.bf16.mxu0 %v7784_v45 }
 0x127   : > { %v5746_v36 = vpop.f32.mrf.mxu0  ;;  %v5834_v6 = vpop.f32.mrf.mxu1  ;;  %6184 = vmatpush3.bf16.msra.mxu1 %v7006_v29  ;;  %v7008_v29 = vld [vmem:[#allocation2 + $0x18] sm:$0xff]  }
 0x128   : > { %v8030_v26 = vadd.f32 %v5746_v36, %v5745_v33  ;;  %v5835_v41 = vadd.f32 %v5834_v6, %v5833_v55 }
 0x129   : > { %v5748_v40 = vpop.f32.mrf.mxu0  ;;  %v5836_v18 = vpop.f32.mrf.mxu1 }
 0x12a   : > { %v8033_v11 = vadd.f32 %v5835_v41, %v7972_v28 }
 0x12b   : > { %v5749_v62 = vpop.f32.mrf.mxu0  ;;  %v5837_v27 = vpop.f32.mrf.mxu1 }
 0x12c   : > { %v8035_v5 = vadd.f32 %v5749_v62, %v5748_v40  ;;  %v5838_v23 = vadd.f32 %v5837_v27, %v5836_v18 }
 0x12d   : > { %v5751_v20 = vpop.f32.mrf.mxu0  ;;  %v5839_v45 = vpop.f32.mrf.mxu1  ;;  %2062 = vmatmul.mubr.bf16.gmra.mxu1 %v7781_v2  ;;  %6694 = vmatmul.mubr.bf16.gmra.mxu0 %v7820_v56 }
 0x12e   : > { %v8040_v32 = vadd.f32 %v5838_v23, %v7977_v3  ;;  %2069 = vmatprep.mubr.bf16.mxu1 %v7435_v44  ;;  %6697 = vmatprep.mubr.bf16.mxu0 %v7836_v19 }
 0x12f   : > { %v5752_v28 = vpop.f32.mrf.mxu0  ;;  %v5840_v42 = vpop.f32.mrf.mxu1 }
 0x130   : > { %v8044_v51 = vadd.f32 %v5752_v28, %v5751_v20  ;;  %v5841_v25 = vadd.f32 %v5840_v42, %v5839_v45  ;;  %v7010_v45 = vld [vmem:[#allocation2 + $0xb8] sm:$0xff]  }
 0x131   : > { %v5754_v48 = vpop.f32.mrf.mxu0  ;;  %v5842_v43 = vpop.f32.mrf.mxu1 }
 0x132   : > { %v8047_v33 = vadd.f32 %v5841_v25, %v7987_v24 }
 0x133   : > { %v5755_v2 = vpop.f32.mrf.mxu0  ;;  %v5843_v56 = vpop.f32.mrf.mxu1 }
 0x134   : > { %v8049_v55 = vadd.f32 %v5755_v2, %v5754_v48  ;;  %v5844_v3 = vadd.f32 %v5843_v56, %v5842_v43  ;;  %v8078_v2 = vld [vmem:[%s7381_s12 + $0xcc] sm:$0xff]  }
 0x135   : > { %v5757_v36 = vpop.f32.mrf.mxu0  ;;  %v5845_v44 = vpop.f32.mrf.mxu1  ;;  %2070 = vmatmul.mubr.bf16.gmra.mxu1 %v7404_v21  ;;  %6698 = vmatmul.mubr.bf16.gmra.mxu0 %v7852_v31  ;;  %v7007_v21 = vld [vmem:[#allocation2 + $0x58] sm:$0xff]  }
 0x136   : > { %v8054_v19 = vadd.f32 %v5844_v3, %v7995_v10  ;;  %2077 = vmatprep.mubr.bf16.mxu1 %v7481_v7  ;;  %6701 = vmatprep.mubr.bf16.mxu0 %v7868_v54 }
 0x137   : > { %v5758_v24 = vpop.f32.mrf.mxu0  ;;  %v5846_v6 = vpop.f32.mrf.mxu1  ;;  %6185 = vmatprep.subr.bf16.mxu1 %v7007_v21 }
 0x138   : > { %v8058_v41 = vadd.f32 %v5758_v24, %v5757_v36  ;;  %v5847_v40 = vadd.f32 %v5846_v6, %v5845_v44  ;;  %6186 = vmatpush3.bf16.msra.mxu1 %v7008_v29  ;;  %v7012_v24 = vld [vmem:[#allocation2 + $0xb0] sm:$0xff]   ;;  %v882_v29 = vshrl.u32 %v8078_v2, 16 }
 0x139   : > { %v5760_v18 = vpop.f32.mrf.mxu0  ;;  %v5848_v17 = vpop.f32.mrf.mxu1 }
 0x13a   : > { %v8061_v62 = vadd.f32 %v5847_v40, %v8003_v53  ;;  %v7009_v53 = vld [vmem:[#allocation2 + $0xf8] sm:$0xff]  }
 0x13b   : > { %v5761_v27 = vpop.f32.mrf.mxu0  ;;  %v5849_v31 = vpop.f32.mrf.mxu1  ;;  %6289 = vmatprep.subr.bf16.mxu0 %v7009_v53 }
 0x13c   : > { %v8063_v10 = vadd.f32 %v5761_v27, %v5760_v18  ;;  %v5850_v23 = vadd.f32 %v5849_v31, %v5848_v17  ;;  %6290 = vmatpush3.bf16.msra.mxu0 %v7010_v45  ;;  %v8090_v18 = vld [vmem:[%s7381_s12 + $0xd4] ss:$0 sps:$4 sm:$0x11]   ;;  %v884_v17 = vshll.u32 %v8078_v2, 16 }
 0x13d   : > { %v5763_v7 = vpop.f32.mrf.mxu0  ;;  %v5851_v54 = vpop.f32.mrf.mxu1  ;;  %2078 = vmatmul.mubr.bf16.gmra.mxu1 %v7440_v47  ;;  %6702 = vmatmul.mubr.bf16.gmra.mxu0 %v7879_v22 }
 0x13e   : > { %v8068_v20 = vadd.f32 %v5850_v23, %v8010_v58  ;;  %2085 = vmatprep.mubr.bf16.mxu1 %v7553_v13  ;;  %6705 = vmatprep.mubr.bf16.mxu0 %v7892_v61  ;;  %v886_v23 = vrot.slane %v884_v17, 1  ;;  %v895_v17 = vrot.slane %v8090_v18, 1 }
 0x13f   : > { %v5764_v28 = vpop.f32.mrf.mxu0  ;;  %v5852_v42 = vpop.f32.mrf.mxu1 }
 0x140   : > { %v8072_v25 = vadd.f32 %v5764_v28, %v5763_v7  ;;  %v5853_v48 = vadd.f32 %v5852_v42, %v5851_v54  ;;  %v889_v7 = vshll.u32 %v8090_v18, 16  ;;  %v7014_v54 = vld [vmem:[#allocation2 + $0x10] sm:$0xff]   ;;  %v7015_v42 = vld [vmem:[#allocation2 + $0xe8] sm:$0xff]  }
 0x141   : > { %v5766_v47 = vpop.f32.mrf.mxu0  ;;  %v5854_v43 = vpop.f32.mrf.mxu1 }
 0x142   : > { %v8075_v22 = vadd.f32 %v5853_v48, %v8018_v39  ;;  %v7011_v39 = vld [vmem:[#allocation2 + $0xf0] sm:$0xff]   ;;  %v7016_v48 = vld [vmem:[#allocation2 + $0xa8] sm:$0xff]  }
 0x143   : > { %v5767_v58 = vpop.f32.mrf.mxu0  ;;  %v5855_v13 = vpop.f32.mrf.mxu1  ;;  %6291 = vmatprep.subr.bf16.mxu0 %v7011_v39 }
 0x144   : > { %v8080_v61 = vadd.f32 %v5767_v58, %v5766_v47  ;;  %v5856_v56 = vadd.f32 %v5855_v13, %v5854_v43  ;;  %6292 = vmatpush3.bf16.msra.mxu0 %v7012_v24  ;;  %v887_v58 = vor.u32 %v886_v23, %v882_v29  ;;  %v891_v13 = vrot.slane %v889_v7, 1  ;;  %v7019_v7 = vld [vmem:[#allocation2 + $0x48] sm:$0xff]  }
 0x145   : > { %v5769_v3 = vpop.f32.mrf.mxu0  ;;  %v5857_v36 = vpop.f32.mrf.mxu1  ;;  %2086 = vmatmul.mubr.bf16.gmra.mxu1 %v7501_v34  ;;  %6706 = vmatmul.mubr.bf16.gmra.mxu0 %v7905_v57 }
 0x146   : > { %v8085_v44 = vadd.f32 %v5856_v56, %v8022_v50  ;;  %2093 = vmatprep.mubr.bf16.mxu1 %v7591_v46  ;;  %6709 = vmatprep.mubr.bf16.mxu0 %v7915_v16  ;;  %v7013_v16 = vld [vmem:[#allocation2 + $0x50] sm:$0xff]  }
 0x147   : > { %v5770_v6 = vpop.f32.mrf.mxu0  ;;  %v5858_v40 = vpop.f32.mrf.mxu1  ;;  %6187 = vmatprep.subr.bf16.mxu1 %v7013_v16  ;;  %6293 = vmatprep.subr.bf16.mxu0 %v7015_v42 }
 0x148   : > { %v8093_v21 = vadd.f32 %v5770_v6, %v5769_v3  ;;  %v5859_v34 = vadd.f32 %v5858_v40, %v5857_v36  ;;  %6188 = vmatpush3.bf16.msra.mxu1 %v7014_v54  ;;  %6294 = vmatpush3.bf16.msra.mxu0 %v7016_v48  ;;  %v892_v36 = vsel %vm572_vm0, %v887_v58, %v891_v13  ;;  %v7020_v54 = vld [vmem:[#allocation2 + $0x8] sm:$0xff]  }
 0x149   : > { %v8095_v57 = vpop.f32.mrf.mxu0  ;;  %v5860_v50 = vpop.f32.mrf.mxu1  ;;  %6189 = vmatprep.subr.bf16.mxu1 %v7019_v7 }
 0x14a   : > { %v8098_v46 = vadd.f32 %v5859_v34, %v8030_v26  ;;  %v7017_v34 = vld [vmem:[#allocation2 + $0xe0] sm:$0xff]  }
 0x14b   : > { %v8100_v27 = vpop.f32.mrf.mxu0  ;;  %v5861_v31 = vpop.f32.mrf.mxu1  ;;  %6295 = vmatprep.subr.bf16.mxu0 %v7017_v34  ;;  %v7024_v34 = vld [vmem:[#allocation2 + $0x90] sm:$0xff]  }
 0x14c   : > { %v5862_v53 = vadd.f32 %v5861_v31, %v5860_v50  ;;  %v7018_v50 = vld [vmem:[#allocation2 + $0xa0] sm:$0xff]   ;;  %6190 = vmatpush3.bf16.msra.mxu1 %v7020_v54 }
 0x14d   : > { %v5775_v45 = vpop.f32.mrf.mxu0  ;;  %v5863_v28 = vpop.f32.mrf.mxu1  ;;  %2094 = vmatmul.mubr.bf16.gmra.mxu1 %v7548_v8  ;;  %6710 = vmatmul.mubr.bf16.gmra.mxu0 %v7924_v59 }
 0x14e   : > { %v8107_v26 = vadd.f32 %v5862_v53, %v8035_v5  ;;  %2101 = vmatprep.mubr.bf16.mxu1 %v8008_v12  ;;  %6713 = vmatprep.mubr.bf16.mxu0 %v7935_v15 }
 0x14f   : > { %v5776_v47 = vpop.f32.mrf.mxu0  ;;  %v5864_v43 = vpop.f32.mrf.mxu1  ;;  %6296 = vmatpush3.bf16.msra.mxu0 %v7018_v50 }
 0x150   : > { %v8111_v56 = vadd.f32 %v5776_v47, %v5775_v45  ;;  %v5865_v3 = vadd.f32 %v5864_v43, %v5863_v28  ;;  %v7022_v47 = vld [vmem:[#allocation2 + $0x98] sm:$0xff]  }
 0x151   : > { %v8113_v8 = vpop.f32.mrf.mxu0  ;;  %v5866_v59 = vpop.f32.mrf.mxu1 }
 0x152   : > { %v8116_v5 = vadd.f32 %v5865_v3, %v8044_v51  ;;  %v894_v51 = vrot.slane %v8078_v2, 1 }
 0x153   : > { %v8118_v12 = vpop.f32.mrf.mxu0  ;;  %v5867_v15 = vpop.f32.mrf.mxu1 }
 0x154   : > { %v5868_v39 = vadd.f32 %v5867_v15, %v5866_v59 }
 0x155   : > { %v5781_v24 = vpop.f32.mrf.mxu0  ;;  %v5869_v6 = vpop.f32.mrf.mxu1  ;;  %2102 = vmatmul.mubr.bf16.gmra.mxu1 %v7937_v52  ;;  %6714 = vmatmul.mubr.bf16.gmra.mxu0 %v7946_v35 }
 0x156   : > { %v8124_v40 = vadd.f32 %v5868_v39, %v8049_v55  ;;  %2109 = vmatprep.mubr.bf16.mxu1 %v892_v36  ;;  %6717 = vmatprep.mubr.bf16.mxu0 %v7993_v1  ;;  %v896_v1 = vsel %vm781_vm4, %v894_v51, %v895_v17  ;;  %v7023_v17 = vld [vmem:[#allocation2 + $0xd0] sm:$0xff]  }
 0x157   : > { %v5782_v16 = vpop.f32.mrf.mxu0  ;;  %v5870_v31 = vpop.f32.mrf.mxu1 }
 0x158   : > { %v8129_v29 = vadd.f32 %v5782_v16, %v5781_v24  ;;  %v5871_v23 = vadd.f32 %v5870_v31, %v5869_v6 }
 0x159   : > { %v8131_v52 = vpop.f32.mrf.mxu0  ;;  %v5872_v35 = vpop.f32.mrf.mxu1 }
 0x15a   : > { %v8134_v55 = vadd.f32 %v5871_v23, %v8058_v41  ;;  %v7021_v41 = vld [vmem:[#allocation2 + $0xd8] sm:$0xff]  }
 0x15b   : > { %v8137_v18 = vpop.f32.mrf.mxu0  ;;  %v5873_v53 = vpop.f32.mrf.mxu1  ;;  %6297 = vmatprep.subr.bf16.mxu0 %v7021_v41 }
 0x15c   : > { %v5874_v45 = vadd.f32 %v5873_v53, %v5872_v35  ;;  %6298 = vmatpush3.bf16.msra.mxu0 %v7022_v47  ;;  %v7025_v47 = vld [vmem:[#allocation2 + $0x40] sm:$0xff]  }
 0x15d   : > { %v5787_v28 = vpop.f32.mrf.mxu0  ;;  %v5875_v42 = vpop.f32.mrf.mxu1  ;;  %2110 = vmatmul.mubr.bf16.gmra.mxu1 %v8078_v2  ;;  %6718 = vmatmul.mubr.bf16.gmra.mxu0 %v896_v1 }
 0x15e   : > { %v8141_v48 = vadd.f32 %v5874_v45, %v8063_v10  ;;  %6299 = vmatprep.subr.bf16.mxu0 %v7023_v17  ;;  %6191 = vmatprep.subr.bf16.mxu1 %v7025_v47 }
 0x15f   : > { %v5788_v43 = vpop.f32.mrf.mxu0  ;;  %v5876_v58 = vpop.f32.mrf.mxu1 }
 0x160   : > { %v8143_v13 = vadd.f32 %v5788_v43, %v5787_v28  ;;  %v5877_v3 = vadd.f32 %v5876_v58, %v5875_v42  ;;  %6300 = vmatpush3.bf16.msra.mxu0 %v7024_v34 }
 0x161   : > { %v8145_v59 = vpop.f32.mrf.mxu0  ;;  %v5878_v15 = vpop.f32.mrf.mxu1 }
 0x162   : > { %v8148_v36 = vadd.f32 %v5877_v3, %v8072_v25 }
 0x163   : > { %v8150_v2 = vpop.f32.mrf.mxu0  ;;  %v5879_v10 = vpop.f32.mrf.mxu1 }
 0x164   : > { %v5880_v39 = vadd.f32 %v5879_v10, %v5878_v15 }
 0x165   : > { %v5881_v24 = vpop.f32.mrf.mxu1  ;;  %v5945_v6 = vpop.f32.mrf.mxu0 }
 0x166   : > { %v8153_v51 = vadd.f32 %v5880_v39, %v8080_v61  ;;  %v5774_v61 = vadd.f32 %v8100_v27, %v8095_v57  ;;  %v7027_v57 = vld [vmem:[#allocation2 + $0xc8] sm:$0xff]   ;;  %v7219_v27 = vmov 0  }
 0x167   : > { %v5882_v50 = vpop.f32.mrf.mxu1  ;;  %v5946_v16 = vpop.f32.mrf.mxu0  ;;  %6301 = vmatprep.subr.bf16.mxu0 %v7027_v57 }
 0x168   : > { %v5883_v31 = vadd.f32 %v5882_v50, %v5881_v24  ;;  %v5947_v23 = vadd.f32 %v5946_v16, %v5945_v6  ;;  %v8168_v6 = vrot.slane %v7219_v27, 1 }
 0x169   : > { %v5884_v35 = vpop.f32.mrf.mxu1  ;;  %v5948_v1 = vpop.f32.mrf.mxu0 }
 0x16a   : > { %v8156_v25 = vadd.f32 %v5883_v31, %v8093_v21  ;;  %v8159_v7 = vadd.f32 %v5947_v23, %v8033_v11  ;;  %v7026_v21 = vld [vmem:[#allocation2] sm:$0xff]   ;;  %10005 = vst [vmem:[#allocation10_spill] sm:$0xff] %v8168_v6  ;;  %3508 = vmatprep.mubr.bf16.mxu1 %v8168_v6  ;;  %v5780_v31 = vadd.f32 %v8118_v12, %v8113_v8 }
 0x16b   : > { %v5885_v54 = vpop.f32.mrf.mxu1  ;;  %v5949_v53 = vpop.f32.mrf.mxu0  ;;  %6192 = vmatpush3.bf16.msra.mxu1 %v7026_v21 }
 0x16c   : > { %v5886_v45 = vadd.f32 %v5885_v54, %v5884_v35  ;;  %v5950_v28 = vadd.f32 %v5949_v53, %v5948_v1  ;;  %v9971_v1 = vmov 0.0|0.0   ;;  %v7029_v53 = vld [vmem:[#allocation2 + $0xc0] sm:$0xff]  }
 0x16d   : > { %v5887_v42 = vpop.f32.mrf.mxu1  ;;  %v5951_v41 = vpop.f32.mrf.mxu0 }
 0x16e   : > { %v8163_v43 = vadd.f32 %v5886_v45, %v5774_v61  ;;  %v8166_v58 = vadd.f32 %v5950_v28, %v8040_v32  ;;  %v7028_v32 = vld [vmem:[#allocation2 + $0x88] sm:$0xff]   ;;  %3509 = vmatmul.mubr.bf16.vlgmr.msra.gmra.mxu1 %v9971_v1  ;;  %v7030_v45 = vld [vmem:[#allocation2 + $0x80] sm:$0xff]  }
 0x16f   : > { %v5888_v3 = vpop.f32.mrf.mxu1  ;;  %v5952_v15 = vpop.f32.mrf.mxu0  ;;  %6302 = vmatpush3.bf16.msra.mxu0 %v7028_v32 }
 0x170   : > { %v5889_v11 = vadd.f32 %v5888_v3, %v5887_v42  ;;  %v5953_v10 = vadd.f32 %v5952_v15, %v5951_v41  ;;  %6303 = vmatprep.subr.bf16.mxu0 %v7029_v53 }
 0x171   : > { %v5890_v39 = vpop.f32.mrf.mxu1  ;;  %v5954_v24 = vpop.f32.mrf.mxu0 }
 0x172   : > { %v8171_v17 = vadd.f32 %v5889_v11, %v8111_v56  ;;  %v8174_v34 = vadd.f32 %v5953_v10, %v8047_v33 }
 0x173   : > { %v5891_v50 = vpop.f32.mrf.mxu1  ;;  %v5955_v16 = vpop.f32.mrf.mxu0  ;;  %6304 = vmatpush3.bf16.msra.mxu0 %v7030_v45 }
 0x174   : > { %v5892_v23 = vadd.f32 %v5891_v50, %v5890_v39  ;;  %v5956_v35 = vadd.f32 %v5955_v16, %v5954_v24 }
 0x175   : > { %v5893_v56 = vpop.f32.mrf.mxu1  ;;  %v5957_v54 = vpop.f32.mrf.mxu0 }
 0x176   : > { %v8180_v33 = vadd.f32 %v5892_v23, %v5780_v31  ;;  %v8183_v61 = vadd.f32 %v5956_v35, %v8054_v19  ;;  %v5786_v19 = vadd.f32 %v8137_v18, %v8131_v52 }
 0x177   : > { %v5894_v28 = vpop.f32.mrf.mxu1  ;;  %v5958_v42 = vpop.f32.mrf.mxu0 }
 0x178   : > { %v5895_v41 = vadd.f32 %v5894_v28, %v5893_v56  ;;  %v5959_v8 = vadd.f32 %v5958_v42, %v5957_v54  ;;  %v5792_v54 = vadd.f32 %v8150_v2, %v8145_v59  ;;  %v7031_v42 = vld [vmem:[#allocation2 + $0x178] sm:$0xff]  }
 0x179   : > { %v5896_v12 = vpop.f32.mrf.mxu1  ;;  %v5960_v47 = vpop.f32.mrf.mxu0  ;;  %6401 = vmatprep.subr.bf16.mxu1 %v7031_v42 }
 0x17a   : > { %v8186_v21 = vadd.f32 %v5895_v41, %v8129_v29  ;;  %v8189_v3 = vadd.f32 %v5959_v8, %v8061_v62  ;;  %v7032_v41 = vld [vmem:[#allocation2 + $0x138] sm:$0xff]  }
 0x17b   : > { %v5897_v15 = vpop.f32.mrf.mxu1  ;;  %v5961_v11 = vpop.f32.mrf.mxu0  ;;  %6402 = vmatpush3.bf16.msra.mxu1 %v7032_v41 }
 0x17c   : > { %v5898_v10 = vadd.f32 %v5897_v15, %v5896_v12  ;;  %v5962_v39 = vadd.f32 %v5961_v11, %v5960_v47 }
 0x17d   : > { %v5899_v24 = vpop.f32.mrf.mxu1  ;;  %v5963_v57 = vpop.f32.mrf.mxu0 }
 0x17e   : > { %v8193_v27 = vadd.f32 %v5898_v10, %v5786_v19  ;;  %v8196_v32 = vadd.f32 %v5962_v39, %v8068_v20 }
 0x17f   : > { %v5900_v50 = vpop.f32.mrf.mxu1  ;;  %v5964_v29 = vpop.f32.mrf.mxu0 }
 0x180   : > { %v5901_v16 = vadd.f32 %v5900_v50, %v5899_v24  ;;  %v5965_v31 = vadd.f32 %v5964_v29, %v5963_v57 }
 0x181   : > { %v5902_v62 = vpop.f32.mrf.mxu1  ;;  %v5966_v23 = vpop.f32.mrf.mxu0 }
 0x182   : > { %v8199_v35 = vadd.f32 %v5901_v16, %v8143_v13  ;;  %v8202_v52 = vadd.f32 %v5965_v31, %v8075_v22  ;;  %v7033_v22 = vld [vmem:[#allocation2 + $0x1f8] sm:$0xff]  }
 0x183   : > { %v5903_v18 = vpop.f32.mrf.mxu1  ;;  %v5967_v56 = vpop.f32.mrf.mxu0  ;;  %6513 = vmatprep.subr.bf16.mxu0 %v7033_v22 }
 0x184   : > { %v5904_v53 = vadd.f32 %v5903_v18, %v5902_v62  ;;  %v5968_v20 = vadd.f32 %v5967_v56, %v5966_v23 }
 0x185   : > { %v5905_v45 = vpop.f32.mrf.mxu1  ;;  %v5969_v28 = vpop.f32.mrf.mxu0 }
 0x186   : > { %v8206_v8 = vadd.f32 %v5904_v53, %v5792_v54  ;;  %v8209_v12 = vadd.f32 %v5968_v20, %v8085_v44 }
 0x187   : > { %v5906_v13 = vpop.f32.mrf.mxu1  ;;  %v5970_v47 = vpop.f32.mrf.mxu0 }
 0x188   : > { %v5907_v15 = vadd.f32 %v5906_v13, %v5905_v45  ;;  %v5971_v11 = vadd.f32 %v5970_v47, %v5969_v28 }
 0x189   : > { %v5908_v19 = vpop.f32.mrf.mxu1  ;;  %v5972_v59 = vpop.f32.mrf.mxu0 }
 0x18a   : > { %v8212_v2 = vadd.f32 %v5907_v15, %v7974_v60  ;;  %v8215_v10 = vadd.f32 %v5971_v11, %v8098_v46 }
 0x18b   : > { %v5909_v39 = vpop.f32.mrf.mxu1  ;;  %v5973_v24 = vpop.f32.mrf.mxu0 }
 0x18c   : > { %v5910_v44 = vadd.f32 %v5909_v39, %v5908_v19  ;;  %v5974_v57 = vadd.f32 %v5973_v24, %v5972_v59  ;;  %v7035_v39 = vld [vmem:[#allocation2 + $0x170] sm:$0xff]  }
 0x18d   : > { %v5911_v50 = vpop.f32.mrf.mxu1  ;;  %v5975_v29 = vpop.f32.mrf.mxu0  ;;  %v7036_v24 = vld [vmem:[#allocation2 + $0x130] sm:$0xff]   ;;  %6403 = vmatprep.subr.bf16.mxu1 %v7035_v39 }
 0x18e   : > { %v8218_v16 = vadd.f32 %v5910_v44, %v7979_v14  ;;  %v8221_v31 = vadd.f32 %v5974_v57, %v8107_v26  ;;  %6404 = vmatpush3.bf16.msra.mxu1 %v7036_v24 }
 0x18f   : > { %v5912_v62 = vpop.f32.mrf.mxu1  ;;  %v5976_v23 = vpop.f32.mrf.mxu0 }
 0x190   : > { %v5913_v18 = vadd.f32 %v5912_v62, %v5911_v50  ;;  %v5977_v60 = vadd.f32 %v5976_v23, %v5975_v29 }
 0x191   : > { %v5914_v56 = vpop.f32.mrf.mxu1  ;;  %v5978_v54 = vpop.f32.mrf.mxu0 }
 0x192   : > { %v8224_v46 = vadd.f32 %v5913_v18, %v7989_v30  ;;  %v8227_v53 = vadd.f32 %v5977_v60, %v8116_v5 }
 0x193   : > { %v5915_v20 = vpop.f32.mrf.mxu1  ;;  %v5979_v45 = vpop.f32.mrf.mxu0 }
 0x194   : > { %v5916_v28 = vadd.f32 %v5915_v20, %v5914_v56  ;;  %v5980_v14 = vadd.f32 %v5979_v45, %v5978_v54 }
 0x195   : > { %v5917_v42 = vpop.f32.mrf.mxu1  ;;  %v5981_v41 = vpop.f32.mrf.mxu0 }
 0x196   : > { %v8230_v26 = vadd.f32 %v5916_v28, %v7997_v38  ;;  %v8233_v13 = vadd.f32 %v5980_v14, %v8124_v40 }
 0x197   : > { %v5918_v47 = vpop.f32.mrf.mxu1  ;;  %v5982_v22 = vpop.f32.mrf.mxu0 }
 0x198   : > { %v5919_v15 = vadd.f32 %v5918_v47, %v5917_v42  ;;  %v5983_v30 = vadd.f32 %v5982_v22, %v5981_v41 }
 0x199   : > { %v5920_v11 = vpop.f32.mrf.mxu1  ;;  %v5984_v19 = vpop.f32.mrf.mxu0 }
 0x19a   : > { %v8236_v5 = vadd.f32 %v5919_v15, %v8005_v49  ;;  %v8239_v59 = vadd.f32 %v5983_v30, %v8134_v55 }
 0x19b   : > { %v5921_v44 = vpop.f32.mrf.mxu1  ;;  %v5985_v38 = vpop.f32.mrf.mxu0 }
 0x19c   : > { %v5922_v57 = vadd.f32 %v5921_v44, %v5920_v11  ;;  %v5986_v50 = vadd.f32 %v5985_v38, %v5984_v19 }
 0x19d   : > { %v5923_v40 = vpop.f32.mrf.mxu1  ;;  %v5987_v29 = vpop.f32.mrf.mxu0 }
 0x19e   : > { %v8242_v62 = vadd.f32 %v5922_v57, %v8012_v0  ;;  %v8245_v23 = vadd.f32 %v5986_v50, %v8141_v48 }
 0x19f   : > { %v5924_v49 = vpop.f32.mrf.mxu1  ;;  %v5988_v18 = vpop.f32.mrf.mxu0 }
 0x1a0   : > { %v5925_v55 = vadd.f32 %v5924_v49, %v5923_v40  ;;  %v5989_v60 = vadd.f32 %v5988_v18, %v5987_v29  ;;  %v7039_v40 = vld [vmem:[#allocation2 + $0x168] sm:$0xff]  }
 0x1a1   : > { %v5926_v56 = vpop.f32.mrf.mxu1  ;;  %v5990_v54 = vpop.f32.mrf.mxu0  ;;  %v7040_v29 = vld [vmem:[#allocation2 + $0x128] sm:$0xff]   ;;  %6405 = vmatprep.subr.bf16.mxu1 %v7039_v40  ;;  %v7043_v40 = vld [vmem:[#allocation2 + $0x160] sm:$0xff]  }
 0x1a2   : > { %v8248_v20 = vadd.f32 %v5925_v55, %v8020_v9  ;;  %v8251_v45 = vadd.f32 %v5989_v60, %v8148_v36  ;;  %6406 = vmatpush3.bf16.msra.mxu1 %v7040_v29  ;;  %v7044_v29 = vld [vmem:[#allocation2 + $0x120] sm:$0xff]  }
 0x1a3   : > { %v5927_v28 = vpop.f32.mrf.mxu1  ;;  %v5991_v14 = vpop.f32.mrf.mxu0  ;;  %6407 = vmatprep.subr.bf16.mxu1 %v7043_v40  ;;  %v7047_v40 = vld [vmem:[#allocation2 + $0x158] sm:$0xff]  }
 0x1a4   : > { %v5928_v42 = vadd.f32 %v5927_v28, %v5926_v56  ;;  %v5992_v0 = vadd.f32 %v5991_v14, %v5990_v54 }
 0x1a5   : > { %v5993_v41 = vpop.f32.mrf.mxu0  ;;  %v8253_v47 = vpop.f32.mrf.mxu1 }
 0x1a6   : > { %v8256_v48 = vadd.f32 %v5928_v42, %v8024_v4  ;;  %v8259_v22 = vadd.f32 %v5992_v0, %v8153_v51  ;;  %6408 = vmatpush3.bf16.msra.mxu1 %v7044_v29 }
 0x1a7   : > { %v5994_v15 = vpop.f32.mrf.mxu0  ;;  %v8261_v30 = vpop.f32.mrf.mxu1  ;;  %6409 = vmatprep.subr.bf16.mxu1 %v7047_v40 }
 0x1a8   : > { %v5995_v9 = vadd.f32 %v5994_v15, %v5993_v41 }
 0x1a9   : > { %v5996_v11 = vpop.f32.mrf.mxu0  ;;  %v8263_v36 = vpop.f32.mrf.mxu1 }
 0x1aa   : > { %v8266_v19 = vadd.f32 %v5995_v9, %v8156_v25 }
 0x1ab   : > { %v5997_v39 = vpop.f32.mrf.mxu0  ;;  %v8268_v24 = vpop.f32.mrf.mxu1 }
 0x1ac   : > { %v5998_v44 = vadd.f32 %v5997_v39, %v5996_v11 }
 0x1ad   : > { %v5999_v38 = vpop.f32.mrf.mxu0  ;;  %v8270_v4 = vpop.f32.mrf.mxu1 }
 0x1ae   : > { %v8273_v51 = vadd.f32 %v5998_v44, %v8163_v43 }
 0x1af   : > { %v6000_v57 = vpop.f32.mrf.mxu0  ;;  %v8275_v50 = vpop.f32.mrf.mxu1 }
 0x1b0   : > { %10006 = vst [vmem:[#allocation11_spill] sm:$0xff] %v8273_v51  ;;  %v6001_v49 = vadd.f32 %v6000_v57, %v5999_v38 }
 0x1b1   : > { %v6002_v18 = vpop.f32.mrf.mxu0  ;;  %v8277_v55 = vpop.f32.mrf.mxu1 }
 0x1b2   : > { %v8280_v25 = vadd.f32 %v6001_v49, %v8171_v17 }
 0x1b3   : > { %v6003_v60 = vpop.f32.mrf.mxu0  ;;  %v8282_v56 = vpop.f32.mrf.mxu1 }
 0x1b4   : > { %10007 = vst [vmem:[#allocation12_spill] sm:$0xff] %v8280_v25  ;;  %v6004_v54 = vadd.f32 %v6003_v60, %v6002_v18 }
 0x1b5   : > { %v6005_v43 = vpop.f32.mrf.mxu0  ;;  %v8284_v28 = vpop.f32.mrf.mxu1 }
 0x1b6   : > { %v8287_v14 = vadd.f32 %v6004_v54, %v8180_v33 }
 0x1b7   : > { %v6006_v42 = vpop.f32.mrf.mxu0  ;;  %v8289_v0 = vpop.f32.mrf.mxu1 }
 0x1b8   : > { %10008 = vst [vmem:[#allocation13_spill] sm:$0xff] %v8287_v14  ;;  %v6007_v41 = vadd.f32 %v6006_v42, %v6005_v43 }
 0x1b9   : > { %v6008_v15 = vpop.f32.mrf.mxu0  ;;  %v8291_v9 = vpop.f32.mrf.mxu1 }
 0x1ba   : > { %v8294_v17 = vadd.f32 %v6007_v41, %v8186_v21 }
 0x1bb   : > { %v6009_v11 = vpop.f32.mrf.mxu0  ;;  %v8296_v39 = vpop.f32.mrf.mxu1 }
 0x1bc   : > { %10009 = vst [vmem:[#allocation14_spill] sm:$0xff] %v8294_v17  ;;  %v6010_v44 = vadd.f32 %v6009_v11, %v6008_v15 }
 0x1bd   : > { %v6011_v38 = vpop.f32.mrf.mxu0  ;;  %v8298_v57 = vpop.f32.mrf.mxu1 }
 0x1be   : > { %v8301_v33 = vadd.f32 %v6010_v44, %v8193_v27 }
 0x1bf   : > { %v6012_v49 = vpop.f32.mrf.mxu0  ;;  %v8303_v18 = vpop.f32.mrf.mxu1 }
 0x1c0   : > { %10010 = vst [vmem:[#allocation15_spill] sm:$0xff] %v8301_v33  ;;  %v6013_v60 = vadd.f32 %v6012_v49, %v6011_v38 }
 0x1c1   : > { %v6014_v54 = vpop.f32.mrf.mxu0  ;;  %v8305_v21 = vpop.f32.mrf.mxu1 }
 0x1c2   : > { %v8308_v43 = vadd.f32 %v6013_v60, %v8199_v35 }
 0x1c3   : > { %v6015_v42 = vpop.f32.mrf.mxu0  ;;  %v8310_v41 = vpop.f32.mrf.mxu1 }
 0x1c4   : > { %10011 = vst [vmem:[#allocation16_spill] sm:$0xff] %v8308_v43  ;;  %v6016_v15 = vadd.f32 %v6015_v42, %v6014_v54  ;;  %v7048_v42 = vld [vmem:[#allocation2 + $0x118] sm:$0xff]  }
 0x1c5   : > { %v6017_v27 = vpop.f32.mrf.mxu0  ;;  %v8312_v11 = vpop.f32.mrf.mxu1  ;;  %6410 = vmatpush3.bf16.msra.mxu1 %v7048_v42 }
 0x1c6   : > { %v8315_v44 = vadd.f32 %v6016_v15, %v8206_v8 }
 0x1c7   : > { %v6018_v1 = vpop.f32.mrf.mxu0  ;;  %v8317_v38 = vpop.f32.mrf.mxu1 }
 0x1c8   : > { %10012 = vst [vmem:[#allocation17_spill] sm:$0xff] %v8315_v44  ;;  %v6019_v49 = vadd.f32 %v6018_v1, %v6017_v27 }
 0x1c9   : > { %v6020_v63 = vpop.f32.mrf.mxu0  ;;  %v8319_v29 = vpop.f32.mrf.mxu1 }
 0x1ca   : > { %v8322_v35 = vadd.f32 %v6019_v49, %v8212_v2 }
 0x1cb   : > { %v6021_v60 = vpop.f32.mrf.mxu0  ;;  %v6085_v54 = vpop.f32.mrf.mxu1 }
 0x1cc   : > { %10013 = vst [vmem:[#allocation18_spill] sm:$0xff] %v8322_v35  ;;  %v6022_v6 = vadd.f32 %v6021_v60, %v6020_v63 }
 0x1cd   : > { %v6023_v37 = vpop.f32.mrf.mxu0  ;;  %v6087_v33 = vpop.f32.mrf.mxu1 }
 0x1ce   : > { %v8325_v8 = vadd.f32 %v6022_v6, %v8218_v16  ;;  %v7051_v16 = vld [vmem:[#allocation2 + $0x150] sm:$0xff]  }
 0x1cf   : > { %v6024_v15 = vpop.f32.mrf.mxu0  ;;  %v6088_v44 = vpop.f32.mrf.mxu1  ;;  %6411 = vmatprep.subr.bf16.mxu1 %v7051_v16 }
 0x1d0   : > { %10014 = vst [vmem:[#allocation19_spill] sm:$0xff] %v8325_v8  ;;  %v6025_v1 = vadd.f32 %v6024_v15, %v6023_v37 }
 0x1d1   : > { %v6026_v27 = vpop.f32.mrf.mxu0  ;;  %v8327_v17 = vpop.f32.mrf.mxu1 }
 0x1d2   : > { %v8330_v40 = vadd.f32 %v6025_v1, %v8224_v46 }
 0x1d3   : > { %v6027_v2 = vpop.f32.mrf.mxu0  ;;  %v6091_v49 = vpop.f32.mrf.mxu1 }
 0x1d4   : > { %10015 = vst [vmem:[#allocation20_spill] sm:$0xff] %v8330_v40  ;;  %v6028_v35 = vadd.f32 %v6027_v2, %v6026_v27  ;;  %v7052_v40 = vld [vmem:[#allocation2 + $0x110] sm:$0xff]  }
 0x1d5   : > { %v6029_v43 = vpop.f32.mrf.mxu0  ;;  %v6093_v63 = vpop.f32.mrf.mxu1  ;;  %6412 = vmatpush3.bf16.msra.mxu1 %v7052_v40 }
 0x1d6   : > { %v8333_v60 = vadd.f32 %v6028_v35, %v8230_v26 }
 0x1d7   : > { %v6030_v42 = vpop.f32.mrf.mxu0  ;;  %v6094_v6 = vpop.f32.mrf.mxu1 }
 0x1d8   : > { %10016 = vst [vmem:[#allocation21_spill] sm:$0xff] %v8333_v60  ;;  %v6031_v8 = vadd.f32 %v6030_v42, %v6029_v43  ;;  %v6065_v43 = vadd.f32 %v8275_v50, %v8270_v4  ;;  %v6071_v4 = vadd.f32 %v8289_v0, %v8284_v28  ;;  %v6074_v50 = vadd.f32 %v8296_v39, %v8291_v9 }
 0x1d9   : > { %v6032_v14 = vpop.f32.mrf.mxu0  ;;  %v6096_v37 = vpop.f32.mrf.mxu1  ;;  %v6083_v0 = vadd.f32 %v8317_v38, %v8312_v11  ;;  %v7055_v38 = vld [vmem:[#allocation2 + $0x148] sm:$0xff]  }
 0x1da   : > { %v8336_v15 = vadd.f32 %v6031_v8, %v8236_v5  ;;  %v6059_v5 = vadd.f32 %v8261_v30, %v8253_v47  ;;  %v2000_v47 = vadd.f32 %v6065_v43, %v8174_v34  ;;  %v6080_v30 = vadd.f32 %v8310_v41, %v8305_v21  ;;  %v8379_v21 = vld [vmem:[%s9963_s3] ss:$0 sm:$0xff]  ;;  %6413 = vmatprep.subr.bf16.mxu1 %v7055_v38 }
 0x1db   : > { %v6033_v46 = vpop.f32.mrf.mxu0  ;;  %v6097_v1 = vpop.f32.mrf.mxu1 }
 0x1dc   : > { %v6034_v25 = vadd.f32 %v6033_v46, %v6032_v14  ;;  %v6062_v14 = vadd.f32 %v8268_v24, %v8263_v36  ;;  %v1992_v39 = vadd.f32 %v6059_v5, %v8159_v7  ;;  %v2008_v7 = vadd.f32 %v6071_v4, %v8189_v3 }
 0x1dd   : > { %v6035_v27 = vpop.f32.mrf.mxu0  ;;  %v6099_v2 = vpop.f32.mrf.mxu1  ;;  %v8394_v3 = vadd.f32 %v6083_v0, %v8215_v10 }
 0x1de   : > { %v8339_v26 = vadd.f32 %v6034_v25, %v8242_v62  ;;  %v6068_v62 = vadd.f32 %v8282_v56, %v8277_v55  ;;  %v8364_v55 = vld [vmem:[%s9962_s2] ss:$0 sm:$0xff]  ;;  %v10017_v56 = vmov 0.0|0.0   ;;  %v1995_v11 = vadd.f32 %v6062_v14, %v8166_v58 }
 0x1df   : > { %v6036_v35 = vpop.f32.mrf.mxu0  ;;  %v6100_v60 = vpop.f32.mrf.mxu1  ;;  %v8367_v28 = vrot.slane %v10017_v56, 1  ;;  %v7049_v56 = vld [vmem:[#allocation2 + $0x1d8] sm:$0xff]  }
 0x1e0   : > { %v6037_v42 = vadd.f32 %v6036_v35, %v6035_v27  ;;  %v2003_v35 = vadd.f32 %v6068_v62, %v8183_v61  ;;  %v2019_v61 = vadd.f32 %v6080_v30, %v8209_v12  ;;  %v6101_v62 = vadd.f32 %v6100_v60, %v6099_v2 }
 0x1e1   : > { %v6038_v16 = vpop.f32.mrf.mxu0  ;;  %v6102_v51 = vpop.f32.mrf.mxu1  ;;  %10018 = vst [vmem:[#allocation22_spill] sm:$0xff] %v8367_v28 }
 0x1e2   : > { %v8346_v8 = vadd.f32 %v6037_v42, %v8248_v20  ;;  %v6077_v20 = vadd.f32 %v8303_v18, %v8298_v57  ;;  %v6086_v57 = vadd.f32 %v6085_v54, %v8319_v29  ;;  %v6089_v18 = vadd.f32 %v6088_v44, %v6087_v33 }
 0x1e3   : > { %v6039_v25 = vpop.f32.mrf.mxu0  ;;  %v6103_v40 = vpop.f32.mrf.mxu1  ;;  %v8386_v33 = vadd.f32 %v6074_v50, %v8196_v32  ;;  %v6092_v44 = vadd.f32 %v6091_v49, %v8327_v17  ;;  %v6095_v29 = vadd.f32 %v6094_v6, %v6093_v63  ;;  %v6098_v32 = vadd.f32 %v6097_v1, %v6096_v37 }
 0x1e4   : > { %v6040_v46 = vadd.f32 %v6039_v25, %v6038_v16  ;;  %v2016_v16 = vadd.f32 %v6077_v20, %v8202_v52  ;;  %v2032_v49 = vadd.f32 %v6089_v18, %v8227_v53  ;;  %v8398_v63 = vadd.f32 %v6086_v57, %v8221_v31  ;;  %v7056_v52 = vld [vmem:[#allocation2 + $0x108] sm:$0xff]  }
 0x1e5   : > { %v6105_v36 = vpop.f32.mrf.mxu1  ;;  %v6691_v24 = vpop.f32.mrf.mxu0  ;;  %v6104_v12 = vadd.f32 %v6103_v40, %v6102_v51  ;;  %v8403_v60 = vadd.f32 %v6092_v44, %v8233_v13  ;;  %v8406_v37 = vadd.f32 %v6095_v29, %v8239_v59  ;;  %6414 = vmatpush3.bf16.msra.mxu1 %v7056_v52  ;;  %v8416_v13 = vadd.f32 %v6098_v32, %v8245_v23 }
 0x1e6   : > { %v8372_v34 = vadd.f32 %v6040_v46, %v8256_v48  ;;  %v2161_v9 = vadd.f32 %v6691_v24, %v2000_v47  ;;  %v8413_v24 = vadd.f32 %v6101_v62, %v8251_v45 }
 0x1e7   : > { %v6106_v41 = vpop.f32.mrf.mxu1  ;;  %v2152_v27 = vpop.f32.mrf.mxu0 }
 0x1e8   : > { %v2288_v48 = vmul.f32 %v8364_v55, %v2161_v9  ;;  %v2153_v43 = vadd.f32 %v2152_v27, %v1992_v39  ;;  %v6107_v46 = vadd.f32 %v6106_v41, %v6105_v36  ;;  %v8420_v39 = vadd.f32 %v6104_v12, %v8259_v22 }
 0x1e9   : > { %v6108_v54 = vpop.f32.mrf.mxu1  ;;  %v6692_v42 = vpop.f32.mrf.mxu0 }
 0x1ea   : > { %v2327_v58 = vadd.f32 %v8379_v21, %v2288_v48  ;;  %v2286_v5 = vmul.f32 %v8364_v55, %v2153_v43  ;;  %v2164_v14 = vadd.f32 %v6692_v42, %v2003_v35  ;;  %v10019_v48 = vld [vmem:[#allocation11_spill] sm:$0xff] }
 0x1eb   : > { %v6109_v25 = vpop.f32.mrf.mxu1  ;;  %v2155_v17 = vpop.f32.mrf.mxu0 }
 0x1ec   : > { %v2359_v6 = vmax.f32 %v2327_v58, 0.0  ;;  %v2325_v4 = vadd.f32 %v8379_v21, %v2286_v5  ;;  %v2289_v50 = vmul.f32 %v8364_v55, %v2164_v14  ;;  %v2156_v47 = vadd.f32 %v2155_v17, %v1995_v11  ;;  %v10020_v5 = vld [vmem:[#allocation12_spill] sm:$0xff] }
 0x1ed   : > { %v6111_v10 = vpop.f32.mrf.mxu1  ;;  %v6695_v20 = vpop.f32.mrf.mxu0  ;;  %v6110_v51 = vadd.f32 %v6109_v25, %v6108_v54  ;;  %v8424_v11 = vadd.f32 %v6107_v46, %v8266_v19 }
 0x1ee   : > { %v2357_v31 = vmax.f32 %v2325_v4, 0.0  ;;  %v2328_v53 = vadd.f32 %v8379_v21, %v2289_v50  ;;  %v2177_v1 = vadd.f32 %v6695_v20, %v2016_v16  ;;  %v8409_v2 = vrot.slane %v2359_v6, 7 }
 0x1ef   : > { %v2287_v40 = vmul.f32 %v8364_v55, %v2156_v47  ;;  %v6112_v30 = vpop.f32.mrf.mxu1  ;;  %v2168_v36 = vpop.f32.mrf.mxu0  ;;  %v8428_v43 = vadd.f32 %v6110_v51, %v10019_v48  ;;  %v7059_v51 = vld [vmem:[#allocation2 + $0x140] sm:$0xff]  }
 0x1f0   : > { %v2422_v59 = vrot.slane %v2357_v31, 7  ;;  %v2360_v0 = vmax.f32 %v2328_v53, 0.0  ;;  %v2292_v9 = vmul.f32 %v8364_v55, %v2177_v1  ;;  %v6113_v18 = vadd.f32 %v6112_v30, %v6111_v10  ;;  %6415 = vmatprep.subr.bf16.mxu1 %v7059_v51 }
 0x1f1   : > { %v2326_v57 = vadd.f32 %v8379_v21, %v2287_v40  ;;  %v2169_v41 = vadd.f32 %v2168_v36, %v2008_v7  ;;  %v6114_v27 = vpop.f32.mrf.mxu1  ;;  %v6696_v35 = vpop.f32.mrf.mxu0  ;;  %v2519_v22 = vsel %vm2421_vm5, 0.0, %v8409_v2 }
 0x1f2   : > { %v2426_v45 = vrot.slane %v2360_v0, 7  ;;  %v2331_v23 = vadd.f32 %v8379_v21, %v2292_v9  ;;  %v2180_v38 = vadd.f32 %v6696_v35, %v2019_v61  ;;  %v2518_v44 = vsel %vm2421_vm5, 0.0, %v2422_v59 }
 0x1f3   : > { %v2358_v29 = vmax.f32 %v2326_v57, 0.0  ;;  %v2290_v7 = vmul.f32 %v8364_v55, %v2169_v41  ;;  %v6115_v54 = vpop.f32.mrf.mxu1  ;;  %v2171_v42 = vpop.f32.mrf.mxu0  ;;  %v8437_v61 = vadd.f32 %v6113_v18, %v10020_v5 }
 0x1f4   : > { %v2535_v19 = vsel %vm2421_vm5, %v2426_v45, 0.0  ;;  %v2363_v16 = vmax.f32 %v2331_v23, 0.0  ;;  %v2293_v58 = vmul.f32 %v8364_v55, %v2180_v38  ;;  %v8440_v62 = vadd.f32 %v6115_v54, %v6114_v27 }
 0x1f5   : > { %v2423_v14 = vrot.slane %v2358_v29, 7  ;;  %v2329_v32 = vadd.f32 %v8379_v21, %v2290_v7  ;;  %v2172_v25 = vadd.f32 %v2171_v42, %v8386_v33  ;;  %v6117_v17 = vpop.f32.mrf.mxu1  ;;  %v6699_v52 = vpop.f32.mrf.mxu0  ;;  %v2427_v46 = vsel %vm2421_vm5, %v8409_v2, %v2426_v45 }
 0x1f6   : > { %v8443_v12 = vrot.slane %v2363_v16, 7  ;;  %v2332_v6 = vadd.f32 %v8379_v21, %v2293_v58  ;;  %v2193_v4 = vadd.f32 %v6699_v52, %v2032_v49  ;;  %v8453_v47 = vpack.c.bf16 %v2535_v19, %v2535_v19  ;;  %v7037_v19 = vld [vmem:[#allocation2 + $0x1f0] sm:$0xff]   ;;  %v7060_v16 = vld [vmem:[#allocation2 + $0x100] sm:$0xff]  }
 0x1f7   : > { %v2361_v10 = vmax.f32 %v2329_v32, 0.0  ;;  %v2291_v33 = vmul.f32 %v8364_v55, %v2172_v25  ;;  %v6118_v20 = vpop.f32.mrf.mxu1  ;;  %v2184_v31 = vpop.f32.mrf.mxu0  ;;  %v2424_v53 = vsel %vm2421_vm5, %v2422_v59, %v2423_v14  ;;  %v2534_v49 = vsel %vm2421_vm5, %v2423_v14, 0.0  ;;  %6416 = vmatpush3.bf16.msra.mxu1 %v7060_v16 }
 0x1f8   : > { %v8460_v1 = vsel %vm2421_vm5, 0.0, %v8443_v12  ;;  %v2364_v40 = vmax.f32 %v2332_v6, 0.0  ;;  %v2296_v30 = vmul.f32 %v8364_v55, %v2193_v4  ;;  %v2185_v9 = vadd.f32 %v2184_v31, %v8394_v3  ;;  %v7034_v3 = vld [vmem:[#allocation2 + $0x1b8] sm:$0xff]  }
 0x1f9   : > { %v8463_v36 = vrot.slane %v2361_v10, 7  ;;  %v2330_v0 = vadd.f32 %v8379_v21, %v2291_v33  ;;  %v6120_v57 = vpop.f32.mrf.mxu1  ;;  %v6700_v18 = vpop.f32.mrf.mxu0  ;;  %v8467_v41 = vpack.c.bf16 %v2424_v53, %v2518_v44  ;;  %v8479_v38 = vpack.c.bf16 %v2424_v53, %v2422_v59  ;;  %v7038_v33 = vld [vmem:[#allocation2 + $0x1b0] sm:$0xff]  }
 0x1fa   : > { %v8475_v35 = vrot.slane %v2364_v40, 7  ;;  %v2335_v45 = vadd.f32 %v8379_v21, %v2296_v30  ;;  %v2196_v23 = vadd.f32 %v6700_v18, %v8403_v60  ;;  %v8481_v44 = vadd.f32 %v6118_v20, %v6117_v17  ;;  %v7041_v30 = vld [vmem:[#allocation2 + $0x1e8] sm:$0xff]  }
 0x1fb   : > { %v2362_v48 = vmax.f32 %v2330_v0, 0.0  ;;  %v2294_v29 = vmul.f32 %v8364_v55, %v2185_v9  ;;  %v6121_v7 = vpop.f32.mrf.mxu1  ;;  %v2187_v54 = vpop.f32.mrf.mxu0  ;;  %v8484_v42 = vpack.c.bf16 %v2427_v46, %v2519_v22  ;;  %v8488_v58 = vsel %vm2421_vm5, 0.0, %v8463_v36  ;;  %5550 = vmatprep.mubr.msk.bf16.mxu0 %vm8471_vm8, %v8479_v38 }
 0x1fc   : > { %v2537_v60 = vsel %vm2421_vm5, %v8475_v35, 0.0  ;;  %v2367_v59 = vmax.f32 %v2335_v45, 0.0  ;;  %v2297_v5 = vmul.f32 %v8364_v55, %v2196_v23  ;;  %3670 = vmatmul.mubr.bf16.vlgmr.msra.gmra.mxu0 %v8367_v28  ;;  %v8500_v32 = vadd.f32 %v6121_v7, %v6120_v57 }
 0x1fd   : > { %v8496_v14 = vrot.slane %v2362_v48, 7  ;;  %v2333_v22 = vadd.f32 %v8379_v21, %v2294_v29  ;;  %v2188_v25 = vadd.f32 %v2187_v54, %v8398_v63  ;;  %v6123_v17 = vpop.f32.mrf.mxu1  ;;  %v6703_v52 = vpop.f32.mrf.mxu0  ;;  %v8507_v50 = vpack.c.bf16 %v2427_v46, %v8409_v2  ;;  %6514 = vmatpush3.bf16.msra.mxu0 %v7034_v3  ;;  %v7042_v54 = vld [vmem:[#allocation2 + $0x1a8] sm:$0xff]  }
 0x1fe   : > { %v8503_v6 = vrot.slane %v2367_v59, 7  ;;  %v2336_v4 = vadd.f32 %v8379_v21, %v2297_v5  ;;  %v2209_v10 = vadd.f32 %v6703_v52, %v8413_v24  ;;  %v8510_v20 = vpack.c.bf16 %v2537_v60, %v2537_v60  ;;  %6515 = vmatprep.subr.bf16.mxu0 %v7037_v19 }
 0x1ff   : > { %10025 = vst [vmem:[#allocation11_spill] sm:$0xff] %v8507_v50  ;;  %v2365_v31 = vmax.f32 %v2333_v22, 0.0  ;;  %v2295_v53 = vmul.f32 %v8364_v55, %v2188_v25  ;;  %v6124_v63 = vpop.f32.mrf.mxu1  ;;  %v2200_v51 = vpop.f32.mrf.mxu0  ;;  %v8513_v40 = vpack.c.bf16 %v2534_v49, %v2534_v49  ;;  %v8517_v0 = vsel %vm2421_vm5, %v8496_v14, 0.0  ;;  %5554 = vmatprep.mubr.msk.bf16.mxu0 %vm8471_vm8, %v8507_v50  ;;  %v7045_v22 = vld [vmem:[#allocation2 + $0x1e0] sm:$0xff]  }
 0x200   : > { %v8521_v2 = vsel %vm2421_vm5, 0.0, %v8503_v6  ;;  %v2368_v24 = vmax.f32 %v2336_v4, 0.0  ;;  %v2300_v46 = vmul.f32 %v8364_v55, %v2209_v10  ;;  %v8530_v57 = vadd.f32 %v6124_v63, %v6123_v17 }
 0x201   : > { %v8527_v9 = vrot.slane %v2365_v31, 7  ;;  %v2334_v49 = vadd.f32 %v8379_v21, %v2295_v53  ;;  %v2201_v18 = vadd.f32 %v2200_v51, %v8406_v37  ;;  %v6126_v45 = vpop.f32.mrf.mxu1  ;;  %v6704_v23 = vpop.f32.mrf.mxu0  ;;  %v2594_v29 = vshll.u32 %v8467_v41, 16  ;;  %6516 = vmatpush3.bf16.msra.mxu0 %v7038_v33 }
 0x202   : > { %v8533_v3 = vrot.slane %v2368_v24, 7  ;;  %v2339_v48 = vadd.f32 %v8379_v21, %v2300_v46  ;;  %v2599_v7 = vshll.u32 %v8513_v40, 16  ;;  %v2592_v60 = vshrl.u32 %v8467_v41, 16  ;;  %6517 = vmatprep.subr.bf16.mxu0 %v7041_v30 }
 0x203   : > { %v2366_v19 = vmax.f32 %v2334_v49, 0.0  ;;  %v2298_v16 = vmul.f32 %v8364_v55, %v2201_v18  ;;  %v2212_v59 = vadd.f32 %v6704_v23, %v8420_v39  ;;  %v6127_v37 = vpop.f32.mrf.mxu1  ;;  %v2203_v5 = vpop.f32.mrf.mxu0  ;;  %v8543_v25 = vsel %vm2421_vm5, 0.0, %v8527_v9 }
 0x204   : > { %v2539_v17 = vsel %vm2421_vm5, %v8533_v3, 0.0  ;;  %v2371_v52 = vmax.f32 %v2339_v48, 0.0  ;;  %v2596_v4 = vrot.slane %v2594_v29, 1  ;;  %v2601_v31 = vrot.slane %v2599_v7, 1 }
 0x205   : > { %v8547_v10 = vrot.slane %v2366_v19, 7  ;;  %v2337_v33 = vadd.f32 %v8379_v21, %v2298_v16  ;;  %v2301_v39 = vmul.f32 %v8364_v55, %v2212_v59  ;;  %v6129_v53 = vpop.f32.mrf.mxu1  ;;  %v6707_v63 = vpop.f32.mrf.mxu0  ;;  %v8551_v51 = vpack.c.bf16 %v2539_v17, %v2539_v17  ;;  %6518 = vmatpush3.bf16.msra.mxu0 %v7042_v54  ;;  %v7046_v19 = vld [vmem:[#allocation2 + $0x1a0] sm:$0xff]   ;;  %v8559_v16 = vld [vmem:[#allocation2 + $0x238] sm:$0xff]  }
 0x206   : > { %v8553_v30 = vrot.slane %v2371_v52, 7  ;;  %v2597_v24 = vor.u32 %v2596_v4, %v2592_v60  ;;  %v2606_v46 = vshll.u32 %v8484_v42, 16  ;;  %v2604_v23 = vshrl.u32 %v8484_v42, 16  ;;  %6519 = vmatprep.subr.bf16.mxu0 %v7045_v22  ;;  %10026 = vst [vmem:[#allocation12_spill] sm:$0xff] %v8559_v16  ;;  %6721 = vmatprep.subr.bf16.mxu1 %v8559_v16 }
 0x207   : > { %v2369_v49 = vmax.f32 %v2337_v33, 0.0  ;;  %v2340_v18 = vadd.f32 %v8379_v21, %v2301_v39  ;;  %v2611_v48 = vshll.u32 %v8453_v47, 16  ;;  %v6130_v29 = vpop.f32.mrf.mxu1  ;;  %v2216_v7 = vpop.f32.mrf.mxu0  ;;  %v8563_v59 = vsel %vm2421_vm5, %v8547_v10, 0.0 }
 0x208   : > { %v8566_v60 = vsel %vm572_vm0, %v2597_v24, %v2601_v31  ;;  %v2608_v54 = vrot.slane %v2606_v46, 1  ;;  %v2820_v17 = vrot.slane %v8467_v41, 1  ;;  %v8571_v52 = vsel %vm2421_vm5, 0.0, %v8553_v30 }
 0x209   : > { %10027 = vst [vmem:[#allocation23_spill] sm:$0xff] %v8566_v60  ;;  %10028 = vst [vmem:[#allocation24_spill] sm:$0xff] %v8571_v52  ;;  %v8573_v4 = vrot.slane %v2369_v49, 7  ;;  %3516 = vmatprep.mubr.bf16.mxu1 %v8566_v60  ;;  %v2372_v22 = vmax.f32 %v2340_v18, 0.0  ;;  %v2821_v33 = vrot.slane %v8513_v40, 1  ;;  %v8577_v39 = vpop.f32.mrf.mxu1  ;;  %v6708_v28 = vpop.f32.mrf.mxu0  ;;  %v2613_v31 = vrot.slane %v2611_v48, 1  ;;  %6520 = vmatpush3.bf16.msra.mxu0 %v7046_v19 }
 0x20a   : > { %5490 = vmatmul.mubr.msk.bf16.gmra.mxu1 %vm8471_vm8, %v8479_v38  ;;  %v2609_v41 = vor.u32 %v2608_v54, %v2604_v23  ;;  %v2204_v24 = vadd.f32 %v2203_v5, %v8416_v13  ;;  %v2430_v46 = vsel %vm2421_vm5, %v8463_v36, %v8496_v14  ;;  %v8592_v18 = vadd.f32 %v6127_v37, %v6126_v45  ;;  %v7050_v23 = vld [vmem:[#allocation2 + $0x198] sm:$0xff]   ;;  %v7053_v37 = vld [vmem:[#allocation2 + $0x1d0] sm:$0xff]   ;;  %v10032_v54 = vld [vmem:[#allocation13_spill] sm:$0xff] }
 0x20b   : > { %v8587_v49 = vrot.slane %v2372_v22, 7  ;;  %v8590_v40 = vsel %vm781_vm4, %v2820_v17, %v2821_v33  ;;  %v8595_v16 = vpack.c.bf16 %v2430_v46, %v8488_v58  ;;  %v6133_v60 = vpop.f32.mrf.mxu1  ;;  %v2219_v38 = vpop.f32.mrf.mxu0  ;;  %v8603_v5 = vpack.c.bf16 %v2430_v46, %v8463_v36  ;;  %6521 = vmatprep.subr.bf16.mxu0 %v7049_v56  ;;  %v7054_v46 = vld [vmem:[#allocation2 + $0x190] sm:$0xff]  }
 0x20c   : > { %10029 = vst [vmem:[#allocation25_spill] sm:$0xff] %v8590_v40  ;;  %v8598_v13 = vsel %vm572_vm0, %v2609_v41, %v2613_v31  ;;  %3678 = vmatmul.mubr.bf16.gmra.mxu0 %v8590_v40  ;;  %v2299_v14 = vmul.f32 %v8364_v55, %v2204_v24  ;;  %v2225_v45 = vadd.f32 %v6707_v63, %v8437_v61  ;;  %v8608_v58 = vsel %vm2421_vm5, 0.0, %v8573_v4 }
 0x20d   : > { %10030 = vst [vmem:[#allocation26_spill] sm:$0xff] %v8598_v13  ;;  %10031 = vst [vmem:[#allocation27_spill] sm:$0xff] %v8603_v5  ;;  %v2541_v48 = vsel %vm2421_vm5, %v8587_v49, 0.0  ;;  %3524 = vmatprep.mubr.bf16.mxu1 %v8598_v13  ;;  %v2217_v19 = vadd.f32 %v2216_v7, %v8424_v11  ;;  %v2067_v17 = vadd.f32 %v8440_v62, %v10032_v54  ;;  %v6135_v22 = vpop.f32.mrf.mxu1  ;;  %v8616_v36 = vpop.f32.mrf.mxu0  ;;  %5558 = vmatprep.mubr.msk.bf16.mxu0 %vm8471_vm8, %v8603_v5 }
 0x20e   : > { %v2338_v61 = vadd.f32 %v8379_v21, %v2299_v14  ;;  %v2304_v63 = vmul.f32 %v8364_v55, %v2225_v45  ;;  %v8623_v33 = vadd.f32 %v6130_v29, %v6129_v53  ;;  %v8627_v11 = vpack.c.bf16 %v8517_v0, %v8517_v0  ;;  %6522 = vmatpush3.bf16.msra.mxu0 %v7050_v23  ;;  %v7057_v0 = vld [vmem:[#allocation2 + $0x1c8] sm:$0xff]  }
 0x20f   : > { %v2302_v62 = vmul.f32 %v8364_v55, %v2217_v19  ;;  %v2228_v7 = vadd.f32 %v6708_v28, %v2067_v17  ;;  %v2616_v41 = vshrl.u32 %v8595_v16, 16  ;;  %v2618_v56 = vshll.u32 %v8595_v16, 16  ;;  %v6136_v31 = vpop.f32.mrf.mxu1  ;;  %v2232_v24 = vpop.f32.mrf.mxu0  ;;  %6523 = vmatprep.subr.bf16.mxu0 %v7053_v37 }
 0x210   : > { %v2370_v14 = vmax.f32 %v2338_v61, 0.0  ;;  %v2343_v45 = vadd.f32 %v8379_v21, %v2304_v63  ;;  %v2623_v53 = vshll.u32 %v8627_v11, 16  ;;  %v2823_v29 = vrot.slane %v8484_v42, 1 }
 0x211   : > { %v2341_v19 = vadd.f32 %v8379_v21, %v2302_v62  ;;  %v2305_v28 = vmul.f32 %v8364_v55, %v2228_v7  ;;  %v2620_v54 = vrot.slane %v2618_v56, 1  ;;  %v2824_v17 = vrot.slane %v8453_v47, 1  ;;  %v8638_v13 = vpop.f32.mrf.mxu1  ;;  %v6712_v23 = vpop.f32.mrf.mxu0 }
 0x212   : > { %v8640_v40 = vpack.c.bf16 %v2541_v48, %v2541_v48  ;;  %v8642_v61 = vrot.slane %v2370_v14, 7  ;;  %v2375_v63 = vmax.f32 %v2343_v45, 0.0  ;;  %5494 = vmatmul.mubr.msk.bf16.gmra.mxu1 %vm8471_vm8, %v8507_v50  ;;  %v2625_v42 = vrot.slane %v2623_v53, 1  ;;  %6524 = vmatpush3.bf16.msra.mxu0 %v7054_v46  ;;  %v7058_v48 = vld [vmem:[#allocation2 + $0x188] sm:$0xff]  }
 0x213   : > { %v2373_v37 = vmax.f32 %v2341_v19, 0.0  ;;  %v2344_v62 = vadd.f32 %v8379_v21, %v2305_v28  ;;  %v2621_v7 = vor.u32 %v2620_v54, %v2616_v41  ;;  %v8649_v56 = vsel %vm781_vm4, %v2823_v29, %v2824_v17  ;;  %v8651_v47 = vpop.f32.mrf.mxu1  ;;  %v8653_v52 = vpop.f32.mrf.mxu0  ;;  %6525 = vmatprep.subr.bf16.mxu0 %v7057_v0  ;;  %v7061_v29 = vld [vmem:[#allocation2 + $0x1c0] sm:$0xff]  }
 0x214   : > { %10033 = vst [vmem:[#allocation13_spill] sm:$0xff] %v8649_v56  ;;  %v8655_v14 = vrot.slane %v2375_v63, 7  ;;  %3686 = vmatmul.mubr.bf16.gmra.mxu0 %v8649_v56  ;;  %v8659_v45 = vadd.f32 %v6133_v60, %v8577_v39  ;;  %v2220_v53 = vadd.f32 %v2219_v38, %v8428_v43  ;;  %v2433_v41 = vsel %vm2421_vm5, %v8443_v12, %v8475_v35  ;;  %v10036_v38 = vld [vmem:[#allocation16_spill] sm:$0xff] }
 0x215   : > { %v8665_v19 = vrot.slane %v2373_v37, 7  ;;  %v2376_v28 = vmax.f32 %v2344_v62, 0.0  ;;  %v8668_v46 = vsel %vm572_vm0, %v2621_v7, %v2625_v42  ;;  %v8671_v54 = vpack.c.bf16 %v2433_v41, %v8460_v1  ;;  %v8673_v17 = vpop.f32.mrf.mxu1  ;;  %v8675_v60 = vpop.f32.mrf.mxu0  ;;  %v10037_v37 = vld [vmem:[#allocation14_spill] sm:$0xff] }
 0x216   : > { %10034 = vst [vmem:[#allocation28_spill] sm:$0xff] %v8668_v46  ;;  %v8679_v43 = vsel %vm2421_vm5, %v8642_v61, 0.0  ;;  %3532 = vmatprep.mubr.bf16.mxu1 %v8668_v46  ;;  %v2303_v35 = vmul.f32 %v8364_v55, %v2220_v53  ;;  %v8684_v39 = vpack.c.bf16 %v2433_v41, %v8443_v12  ;;  %v2080_v0 = vadd.f32 %v8530_v57, %v10036_v38  ;;  %v7062_v46 = vld [vmem:[#allocation2 + $0x180] sm:$0xff]   ;;  %v10038_v41 = vld [vmem:[#allocation17_spill] sm:$0xff] }
 0x217   : > { %v8690_v1 = vsel %vm2421_vm5, 0.0, %v8655_v14  ;;  %v8692_v63 = vrot.slane %v2376_v28, 7  ;;  %v6137_v42 = vadd.f32 %v6136_v31, %v6135_v22  ;;  %v2072_v62 = vadd.f32 %v8481_v44, %v10037_v37  ;;  %v6142_v7 = vpop.f32.mrf.mxu1  ;;  %6526 = vmatpush3.bf16.msra.mxu0 %v7058_v48  ;;  %v8710_v44 = vld [vmem:[%s9967_s7 + $0x38] sm:$0xff]   ;;  %v2248_v38 = vpop.f32.mrf.mxu0 }
 0x218   : > { %10035 = vst [vmem:[#allocation29_spill] sm:$0xff] %v8684_v39  ;;  %v8698_v12 = vsel %vm2421_vm5, 0.0, %v8665_v19  ;;  %v2342_v53 = vadd.f32 %v8379_v21, %v2303_v35  ;;  %5562 = vmatprep.mubr.msk.bf16.mxu0 %vm8471_vm8, %v8684_v39  ;;  %v2241_v57 = vadd.f32 %v8616_v36, %v2080_v0  ;;  %v2083_v22 = vadd.f32 %v8592_v18, %v10038_v41 }
 0x219   : > { %6527 = vmatprep.subr.bf16.mxu0 %v7061_v29  ;;  %10039 = vst [vmem:[#allocation16_spill] sm:$0xff] %v8710_v44  ;;  %v2543_v31 = vsel %vm2421_vm5, %v8692_v63, 0.0  ;;  %v2233_v48 = vadd.f32 %v2232_v24, %v2072_v62  ;;  %v2630_v28 = vshll.u32 %v8671_v54, 16  ;;  %v2635_v35 = vshll.u32 %v8510_v20, 16  ;;  %v8721_v29 = vpop.f32.mrf.mxu1 }
 0x21a   : > { %v2374_v37 = vmax.f32 %v2342_v53, 0.0  ;;  %v2308_v36 = vmul.f32 %v8364_v55, %v2241_v57  ;;  %v2244_v0 = vadd.f32 %v6712_v23, %v2083_v22  ;;  %5498 = vmatmul.mubr.msk.bf16.gmra.mxu1 %vm8471_vm8, %v8603_v5  ;;  %v2628_v18 = vshrl.u32 %v8671_v54, 16 }
 0x21b   : > { %v8723_v41 = vpack.c.bf16 %v2543_v31, %v2543_v31  ;;  %v2306_v24 = vmul.f32 %v8364_v55, %v2233_v48  ;;  %v2632_v62 = vrot.slane %v2630_v28, 1  ;;  %v2826_v50 = vrot.slane %v8595_v16, 1  ;;  %6528 = vmatpush3.bf16.msra.mxu0 %v7062_v46  ;;  %v6716_v28 = vpop.f32.mrf.mxu0 }
 0x21c   : > { %v2347_v53 = vadd.f32 %v8379_v21, %v2308_v36  ;;  %v2309_v23 = vmul.f32 %v8364_v55, %v2244_v0  ;;  %v2637_v57 = vrot.slane %v2635_v35, 1  ;;  %v2827_v22 = vrot.slane %v8627_v11, 1  ;;  %6769 = vmatprep.subr.bf16.mxu0 %v8710_v44  ;;  %v6145_v35 = vpop.f32.mrf.mxu1 }
 0x21d   : > { %10040 = vst [vmem:[#allocation14_spill] sm:$0xff] %v8723_v41  ;;  %v8731_v5 = vrot.slane %v2374_v37, 7  ;;  %v2345_v31 = vadd.f32 %v8379_v21, %v2306_v24  ;;  %v2633_v56 = vor.u32 %v2632_v62, %v2628_v18  ;;  %v10041_v41 = vld [vmem:[#allocation15_spill] sm:$0xff]  ;;  %v6140_v11 = vadd.f32 %v8651_v47, %v8638_v13 }
 0x21e   : > { %v2075_v48 = vadd.f32 %v8500_v32, %v10041_v41  ;;  %v2379_v16 = vmax.f32 %v2347_v53, 0.0  ;;  %v2348_v46 = vadd.f32 %v8379_v21, %v2309_v23  ;;  %v8738_v36 = vsel %vm781_vm4, %v2826_v50, %v2827_v22  ;;  %v2251_v53 = vpop.f32.mrf.mxu0  ;;  %v10047_v22 = vld [vmem:[#allocation21_spill] sm:$0xff] }
 0x21f   : > { %10042 = vst [vmem:[#allocation17_spill] sm:$0xff] %v8738_v36  ;;  %v2377_v0 = vmax.f32 %v2345_v31, 0.0  ;;  %v8743_v37 = vsel %vm572_vm0, %v2633_v56, %v2637_v57  ;;  %3694 = vmatmul.mubr.bf16.gmra.mxu0 %v8738_v36  ;;  %v2436_v32 = vsel %vm2421_vm5, %v8527_v9, %v8547_v10  ;;  %v8761_v56 = vsel %vm2421_vm5, %v8731_v5, 0.0  ;;  %v10045_v10 = vld [vmem:[#allocation20_spill] sm:$0xff] }
 0x220   : > { %10043 = vst [vmem:[#allocation15_spill] sm:$0xff] %v8743_v37  ;;  %v2236_v18 = vadd.f32 %v8653_v52, %v2075_v48  ;;  %v8750_v41 = vrot.slane %v2379_v16, 7  ;;  %v2380_v50 = vmax.f32 %v2348_v46, 0.0  ;;  %3540 = vmatprep.mubr.bf16.mxu1 %v8743_v37  ;;  %v8754_v13 = vpack.c.bf16 %v2436_v32, %v8543_v25  ;;  %v10046_v25 = vld [vmem:[#allocation18_spill] sm:$0xff]  ;;  %v6147_v48 = vpop.f32.mrf.mxu1 }
 0x221   : > { %v8757_v47 = vpack.c.bf16 %v2436_v32, %v8527_v9  ;;  %v8763_v52 = vrot.slane %v2377_v0, 7  ;;  %v2096_v62 = vadd.f32 %v6137_v42, %v10045_v10  ;;  %v6143_v9 = vadd.f32 %v6142_v7, %v8673_v17 }
 0x222   : > { %v2307_v24 = vmul.f32 %v8364_v55, %v2236_v18  ;;  %v8767_v23 = vrot.slane %v2380_v50, 7  ;;  %v2088_v57 = vadd.f32 %v8623_v33, %v10046_v25  ;;  %v2099_v31 = vadd.f32 %v6140_v11, %v10047_v22  ;;  %5502 = vmatmul.mubr.msk.bf16.gmra.mxu1 %vm8471_vm8, %v8684_v39  ;;  %v6148_v22 = vpop.f32.mrf.mxu1 }
 0x223   : > { %10044 = vst [vmem:[#allocation30_spill] sm:$0xff] %v8757_v47  ;;  %5566 = vmatprep.mubr.msk.bf16.mxu0 %vm8471_vm8, %v8757_v47  ;;  %v8781_v42 = vsel %vm2421_vm5, 0.0, %v8750_v41  ;;  %v2257_v46 = vadd.f32 %v8675_v60, %v2096_v62  ;;  %v8787_v17 = vpack.c.bf16 %v8563_v59, %v8563_v59  ;;  %v8791_v33 = vsel %vm2421_vm5, 0.0, %v8763_v52 }
 0x224   : > { %v2346_v16 = vadd.f32 %v8379_v21, %v2307_v24  ;;  %v2545_v7 = vsel %vm2421_vm5, %v8767_v23, 0.0  ;;  %v2249_v11 = vadd.f32 %v2248_v38, %v2088_v57  ;;  %v2260_v0 = vadd.f32 %v6716_v28, %v2099_v31  ;;  %v6719_v24 = vpop.f32.mrf.mxu0 }
 0x225   : > { %v2312_v32 = vmul.f32 %v8364_v55, %v2257_v46  ;;  %v2640_v50 = vshrl.u32 %v8754_v13, 16  ;;  %v2642_v60 = vshll.u32 %v8754_v13, 16  ;;  %v2647_v62 = vshll.u32 %v8787_v17, 16 }
 0x226   : > { %v2378_v18 = vmax.f32 %v2346_v16, 0.0  ;;  %v2310_v59 = vmul.f32 %v8364_v55, %v2249_v11  ;;  %v2313_v10 = vmul.f32 %v8364_v55, %v2260_v0  ;;  %v2829_v25 = vrot.slane %v8671_v54, 1 }
 0x227   : > { %v8802_v39 = vpack.c.bf16 %v2545_v7, %v2545_v7  ;;  %v2351_v38 = vadd.f32 %v8379_v21, %v2312_v32  ;;  %v2644_v28 = vrot.slane %v2642_v60, 1  ;;  %v2830_v57 = vrot.slane %v8510_v20, 1  ;;  %v2264_v7 = vpop.f32.mrf.mxu0  ;;  %v10048_v20 = vld [vmem:[#allocation19_spill] sm:$0xff] }
 0x228   : > { %v8806_v31 = vrot.slane %v2378_v18, 7  ;;  %v2349_v16 = vadd.f32 %v8379_v21, %v2310_v59  ;;  %v2352_v46 = vadd.f32 %v8379_v21, %v2313_v10  ;;  %v2649_v11 = vrot.slane %v2647_v62, 1  ;;  %v6150_v59 = vpop.f32.mrf.mxu1 }
 0x229   : > { %v2383_v0 = vmax.f32 %v2351_v38, 0.0  ;;  %v2645_v37 = vor.u32 %v2644_v28, %v2640_v50  ;;  %v8811_v36 = vsel %vm781_vm4, %v2829_v25, %v2830_v57  ;;  %v6146_v54 = vadd.f32 %v6145_v35, %v8721_v29 }
 0x22a   : > { %v2381_v44 = vmax.f32 %v2349_v16, 0.0  ;;  %v2384_v32 = vmax.f32 %v2352_v46, 0.0  ;;  %3702 = vmatmul.mubr.bf16.gmra.mxu0 %v8811_v36  ;;  %v2091_v18 = vadd.f32 %v8659_v45, %v10048_v20  ;;  %v2439_v60 = vsel %vm2421_vm5, %v8503_v6, %v8533_v3  ;;  %v6151_v57 = vpop.f32.mrf.mxu1 }
 0x22b   : > { %v8820_v10 = vrot.slane %v2383_v0, 7  ;;  %v8823_v50 = vsel %vm572_vm0, %v2645_v37, %v2649_v11  ;;  %v8826_v29 = vpack.c.bf16 %v2439_v60, %v8521_v2  ;;  %v8829_v35 = vpack.c.bf16 %v2439_v60, %v8503_v6  ;;  %v6720_v2 = vpop.f32.mrf.mxu0 }
 0x22c   : > { %10049 = vst [vmem:[#allocation20_spill] sm:$0xff] %v8823_v50  ;;  %v8831_v62 = vrot.slane %v2381_v44, 7  ;;  %v8833_v25 = vrot.slane %v2384_v32, 7  ;;  %3548 = vmatprep.mubr.bf16.mxu1 %v8823_v50  ;;  %v2252_v45 = vadd.f32 %v2251_v53, %v2091_v18  ;;  %v6149_v3 = vadd.f32 %v6148_v22, %v6147_v48 }
 0x22d   : > { %v8838_v38 = vsel %vm2421_vm5, %v8806_v31, 0.0  ;;  %v8842_v37 = vsel %vm2421_vm5, 0.0, %v8820_v10  ;;  %5570 = vmatprep.mubr.msk.bf16.mxu0 %vm8471_vm8, %v8829_v35  ;;  %v2104_v6 = vadd.f32 %v6143_v9, %v8336_v15  ;;  %5506 = vmatmul.mubr.msk.bf16.gmra.mxu1 %vm8471_vm8, %v8757_v47  ;;  %v2654_v44 = vshll.u32 %v8826_v29, 16 }
 0x22e   : > { %v8854_v53 = vsel %vm2421_vm5, 0.0, %v8831_v62  ;;  %v2311_v48 = vmul.f32 %v8364_v55, %v2252_v45  ;;  %v2112_v22 = vadd.f32 %v6149_v3, %v8346_v8  ;;  %v2652_v28 = vshrl.u32 %v8826_v29, 16  ;;  %v2267_v3 = vpop.f32.mrf.mxu0 }
 0x22f   : > { %v2547_v15 = vsel %vm2421_vm5, %v8833_v25, 0.0  ;;  %v2265_v9 = vadd.f32 %v2264_v7, %v2104_v6  ;;  %v2656_v16 = vrot.slane %v2654_v44, 1  ;;  %v2659_v46 = vshll.u32 %v8551_v51, 16 }
 0x230   : > { %v2350_v11 = vadd.f32 %v8379_v21, %v2311_v48  ;;  %v2273_v0 = vadd.f32 %v6719_v24, %v2112_v22  ;;  %v2832_v32 = vrot.slane %v8754_v13, 1  ;;  %v2833_v20 = vrot.slane %v8787_v17, 1 }
 0x231   : > { %v2314_v18 = vmul.f32 %v8364_v55, %v2265_v9  ;;  %v2657_v8 = vor.u32 %v2656_v16, %v2652_v28  ;;  %v2661_v60 = vrot.slane %v2659_v46, 1  ;;  %v6152_v45 = vadd.f32 %v6151_v57, %v6150_v59 }
 0x232   : > { %v2382_v47 = vmax.f32 %v2350_v11, 0.0  ;;  %v2316_v50 = vmul.f32 %v8364_v55, %v2273_v0  ;;  %v8868_v7 = vsel %vm781_vm4, %v2832_v32, %v2833_v20  ;;  %v2107_v6 = vadd.f32 %v6146_v54, %v8339_v26 }
 0x233   : > { %v2353_v24 = vadd.f32 %v8379_v21, %v2314_v18  ;;  %v8873_v13 = vsel %vm572_vm0, %v2657_v8, %v2661_v60  ;;  %3710 = vmatmul.mubr.bf16.gmra.mxu0 %v8868_v7  ;;  %v2115_v17 = vadd.f32 %v6152_v45, %v8372_v34  ;;  %v2442_v59 = vsel %vm2421_vm5, %v8573_v4, %v8642_v61 }
 0x234   : > { %v8880_v44 = vrot.slane %v2382_v47, 7  ;;  %v2355_v48 = vadd.f32 %v8379_v21, %v2316_v50  ;;  %3556 = vmatprep.mubr.bf16.mxu1 %v8873_v13  ;;  %v2268_v26 = vadd.f32 %v2267_v3, %v2107_v6  ;;  %v2563_v54 = vpack.c.bf16 %v2442_v59, %v8608_v58 }
 0x235   : > { %v2385_v22 = vmax.f32 %v2353_v24, 0.0  ;;  %v2276_v28 = vadd.f32 %v6720_v2, %v2115_v17  ;;  %v8886_v57 = vpack.c.bf16 %v2442_v59, %v8573_v4  ;;  %5510 = vmatmul.mubr.msk.bf16.gmra.mxu1 %vm8471_vm8, %v8829_v35  ;;  %v2564_v34 = vpack.c.bf16 %v8679_v43, %v8679_v43 }
 0x236   : > { %v8893_v61 = vpack.c.bf16 %v2547_v15, %v2547_v15  ;;  %v8897_v47 = vsel %vm2421_vm5, %v8880_v44, 0.0  ;;  %v2387_v50 = vmax.f32 %v2355_v48, 0.0  ;;  %v2315_v58 = vmul.f32 %v8364_v55, %v2268_v26 }
 0x237   : > { %v2317_v2 = vmul.f32 %v8364_v55, %v2276_v28  ;;  %5574 = vmatprep.mubr.msk.bf16.mxu0 %vm8471_vm8, %v8886_v57  ;;  %v2664_v4 = vshrl.u32 %v2563_v54, 16  ;;  %v2666_v9 = vshll.u32 %v2563_v54, 16  ;;  %v2671_v16 = vshll.u32 %v2564_v34, 16 }
 0x238   : > { %v8904_v46 = vrot.slane %v2385_v22, 7  ;;  %v2354_v43 = vadd.f32 %v8379_v21, %v2315_v58  ;;  %v2835_v15 = vrot.slane %v8826_v29, 1  ;;  %v2836_v11 = vrot.slane %v8551_v51, 1  ;;  %v10050_v51 = vld [vmem:[#allocation24_spill] sm:$0xff] }
 0x239   : > { %v8909_v0 = vrot.slane %v2387_v50, 7  ;;  %v2356_v32 = vadd.f32 %v8379_v21, %v2317_v2  ;;  %v2668_v55 = vrot.slane %v2666_v9, 1  ;;  %v2673_v20 = vrot.slane %v2671_v16, 1 }
 0x23a   : > { %v2386_v18 = vmax.f32 %v2354_v43, 0.0  ;;  %v8913_v8 = vsel %vm781_vm4, %v2835_v15, %v2836_v11  ;;  %v2445_v60 = vsel %vm2421_vm5, %v8553_v30, %v8587_v49  ;;  %v2683_v45 = vshll.u32 %v8640_v40, 16 }
 0x23b   : > { %v2388_v3 = vmax.f32 %v2356_v32, 0.0  ;;  %v2669_v29 = vor.u32 %v2668_v55, %v2664_v4  ;;  %3718 = vmatmul.mubr.bf16.gmra.mxu0 %v8913_v8  ;;  %v2565_v6 = vpack.c.bf16 %v2445_v60, %v10050_v51  ;;  %v8922_v21 = vpack.c.bf16 %v2445_v60, %v8553_v30 }
 0x23c   : > { %v8926_v24 = vsel %vm2421_vm5, 0.0, %v8904_v46  ;;  %v8928_v17 = vrot.slane %v2386_v18, 7  ;;  %v2838_v59 = vrot.slane %v2563_v54, 1  ;;  %v2839_v48 = vrot.slane %v2564_v34, 1 }
 0x23d   : > { %v8930_v49 = vrot.slane %v2388_v3, 7  ;;  %v8933_v26 = vsel %vm572_vm0, %v2669_v29, %v2673_v20  ;;  %5578 = vmatprep.mubr.msk.bf16.mxu0 %vm8471_vm8, %v8922_v21  ;;  %v2678_v22 = vshll.u32 %v2565_v6, 16  ;;  %v2685_v30 = vrot.slane %v2683_v45, 1 }
 0x23e   : > { %3564 = vmatprep.mubr.bf16.mxu1 %v8933_v26  ;;  %v2676_v28 = vshrl.u32 %v2565_v6, 16  ;;  %v8940_v50 = vsel %vm781_vm4, %v2838_v59, %v2839_v48  ;;  %v2448_v54 = vsel %vm2421_vm5, %v8665_v19, %v8731_v5  ;;  %v2568_v34 = vpack.c.bf16 %v8761_v56, %v8761_v56 }
 0x23f   : > { %5514 = vmatmul.mubr.msk.bf16.gmra.mxu1 %vm8471_vm8, %v8886_v57  ;;  %v2680_v58 = vrot.slane %v2678_v22, 1  ;;  %v2567_v2 = vpack.c.bf16 %v2448_v54, %v8698_v12  ;;  %v8952_v4 = vpack.c.bf16 %v2448_v54, %v8665_v19  ;;  %v2841_v9 = vrot.slane %v2565_v6, 1  ;;  %v10051_v12 = vld [vmem:[#allocation14_spill] sm:$0xff] }
 0x240   : > { %v8956_v16 = vsel %vm2421_vm5, %v8928_v17, 0.0  ;;  %v2695_v43 = vshll.u32 %v2568_v34, 16  ;;  %v2842_v5 = vrot.slane %v8640_v40, 1  ;;  %v2451_v56 = vsel %vm2421_vm5, %v8655_v14, %v8692_v63 }
 0x241   : > { %v2681_v15 = vor.u32 %v2680_v58, %v2676_v28  ;;  %v2690_v11 = vshll.u32 %v2567_v2, 16  ;;  %v2569_v32 = vpack.c.bf16 %v2451_v56, %v8690_v1  ;;  %v2707_v55 = vshll.u32 %v10051_v12, 16 }
 0x242   : > { %v2688_v19 = vshrl.u32 %v2567_v2, 16  ;;  %v2697_v20 = vrot.slane %v2695_v43, 1  ;;  %v8965_v18 = vsel %vm781_vm4, %v2841_v9, %v2842_v5  ;;  %v8968_v60 = vpack.c.bf16 %v2451_v56, %v8655_v14 }
 0x243   : > { %v8971_v40 = vsel %vm572_vm0, %v2681_v15, %v2685_v30  ;;  %3726 = vmatmul.mubr.bf16.gmra.mxu0 %v8940_v50  ;;  %v2692_v63 = vrot.slane %v2690_v11, 1  ;;  %v2700_v45 = vshrl.u32 %v2569_v32, 16  ;;  %v2702_v3 = vshll.u32 %v2569_v32, 16 }
 0x244   : > { %3572 = vmatprep.mubr.bf16.mxu1 %v8971_v40  ;;  %5582 = vmatprep.mubr.msk.bf16.mxu0 %vm8471_vm8, %v8952_v4  ;;  %v2844_v1 = vrot.slane %v2567_v2, 1  ;;  %v2845_v29 = vrot.slane %v2568_v34, 1  ;;  %v2454_v14 = vsel %vm2421_vm5, %v8763_v52, %v8806_v31  ;;  %v2572_v51 = vpack.c.bf16 %v8838_v38, %v8838_v38 }
 0x245   : > { %v2693_v6 = vor.u32 %v2692_v63, %v2688_v19  ;;  %v2704_v59 = vrot.slane %v2702_v3, 1  ;;  %v2571_v48 = vpack.c.bf16 %v2454_v14, %v8791_v33  ;;  %v8985_v22 = vpack.c.bf16 %v2454_v14, %v8763_v52 }
 0x246   : > { %v8988_v30 = vsel %vm781_vm4, %v2844_v1, %v2845_v29  ;;  %v2719_v28 = vshll.u32 %v2572_v51, 16  ;;  %v2847_v54 = vrot.slane %v2569_v32, 1  ;;  %v2848_v34 = vrot.slane %v10051_v12, 1 }
 0x247   : > { %5518 = vmatmul.mubr.msk.bf16.gmra.mxu1 %vm8471_vm8, %v8922_v21  ;;  %v8995_v31 = vsel %vm572_vm0, %v2693_v6, %v2697_v20  ;;  %v2705_v38 = vor.u32 %v2704_v59, %v2700_v45  ;;  %v2709_v58 = vrot.slane %v2707_v55, 1  ;;  %v2714_v33 = vshll.u32 %v2571_v48, 16 }
 0x248   : > { %3580 = vmatprep.mubr.bf16.mxu1 %v8995_v31  ;;  %v2712_v52 = vshrl.u32 %v2571_v48, 16  ;;  %v8999_v2 = vsel %vm781_vm4, %v2847_v54, %v2848_v34  ;;  %v2457_v9 = vsel %vm2421_vm5, %v8750_v41, %v8767_v23  ;;  %v2731_v43 = vshll.u32 %v8802_v39, 16 }
 0x249   : > { %v9006_v5 = vsel %vm572_vm0, %v2705_v38, %v2709_v58  ;;  %v2716_v56 = vrot.slane %v2714_v33, 1  ;;  %v2573_v15 = vpack.c.bf16 %v2457_v9, %v8781_v42  ;;  %v9010_v11 = vpack.c.bf16 %v2457_v9, %v8750_v41 }
 0x24a   : > { %v2721_v32 = vrot.slane %v2719_v28, 1  ;;  %v2850_v12 = vrot.slane %v2571_v48, 1  ;;  %v2851_v55 = vrot.slane %v2572_v51, 1  ;;  %v2460_v19 = vsel %vm2421_vm5, %v8831_v62, %v8880_v44 }
 0x24b   : > { %3734 = vmatmul.mubr.bf16.gmra.mxu0 %v8965_v18  ;;  %v2717_v23 = vor.u32 %v2716_v56, %v2712_v52  ;;  %v2726_v20 = vshll.u32 %v2573_v15, 16  ;;  %v2733_v63 = vrot.slane %v2731_v43, 1  ;;  %v2575_v45 = vpack.c.bf16 %v2460_v19, %v8854_v53 }
 0x24c   : > { %5586 = vmatprep.mubr.msk.bf16.mxu0 %vm8471_vm8, %v8968_v60  ;;  %v9021_v41 = vsel %vm781_vm4, %v2850_v12, %v2851_v55  ;;  %v9024_v42 = vpack.c.bf16 %v2460_v19, %v8831_v62  ;;  %v2576_v44 = vpack.c.bf16 %v8897_v47, %v8897_v47  ;;  %v2853_v3 = vrot.slane %v2573_v15, 1  ;;  %v6193_v19 = vpop.f32.mrf.mxu1 }
 0x24d   : > { %v9029_v1 = vsel %vm572_vm0, %v2717_v23, %v2721_v32  ;;  %v2724_v29 = vshrl.u32 %v2573_v15, 16  ;;  %v2728_v14 = vrot.slane %v2726_v20, 1  ;;  %v2738_v53 = vshll.u32 %v2575_v45, 16 }
 0x24e   : > { %v2736_v51 = vshrl.u32 %v2575_v45, 16  ;;  %v2743_v6 = vshll.u32 %v2576_v44, 16  ;;  %v2854_v59 = vrot.slane %v8802_v39, 1  ;;  %v2463_v48 = vsel %vm2421_vm5, %v8820_v10, %v8833_v25 }
 0x24f   : > { %5522 = vmatmul.mubr.msk.bf16.gmra.mxu1 %vm8471_vm8, %v8952_v4  ;;  %v2729_v62 = vor.u32 %v2728_v14, %v2724_v29  ;;  %v2740_v47 = vrot.slane %v2738_v53, 1  ;;  %v2577_v28 = vpack.c.bf16 %v2463_v48, %v8842_v37  ;;  %v9040_v54 = vpack.c.bf16 %v2463_v48, %v8820_v10 }
 0x250   : > { %3588 = vmatprep.mubr.bf16.mxu1 %v9006_v5  ;;  %v2745_v34 = vrot.slane %v2743_v6, 1  ;;  %v9044_v39 = vsel %vm781_vm4, %v2853_v3, %v2854_v59  ;;  %v2755_v38 = vshll.u32 %v8893_v61, 16  ;;  %v2856_v25 = vrot.slane %v2575_v45, 1  ;;  %v6194_v59 = vpop.f32.mrf.mxu1 }
 0x251   : > { %v9048_v58 = vsel %vm572_vm0, %v2729_v62, %v2733_v63  ;;  %v2741_v33 = vor.u32 %v2740_v47, %v2736_v51  ;;  %v2748_v52 = vshrl.u32 %v2577_v28, 16  ;;  %v2750_v9 = vshll.u32 %v2577_v28, 16 }
 0x252   : > { %v2857_v43 = vrot.slane %v2576_v44, 1  ;;  %v2466_v10 = vsel %vm2421_vm5, %v8904_v46, %v8928_v17  ;;  %v2580_v37 = vpack.c.bf16 %v8956_v16, %v8956_v16  ;;  %v2859_v56 = vrot.slane %v2577_v28, 1 }
 0x253   : > { %3742 = vmatmul.mubr.bf16.gmra.mxu0 %v8988_v30  ;;  %v9057_v15 = vsel %vm572_vm0, %v2741_v33, %v2745_v34  ;;  %v2752_v32 = vrot.slane %v2750_v9, 1  ;;  %v2579_v12 = vpack.c.bf16 %v2466_v10, %v8926_v24  ;;  %v9061_v55 = vpack.c.bf16 %v2466_v10, %v8904_v46 }
 0x254   : > { %5590 = vmatprep.mubr.msk.bf16.mxu0 %vm8471_vm8, %v8985_v22  ;;  %v9067_v17 = vsel %vm781_vm4, %v2856_v25, %v2857_v43  ;;  %v2767_v16 = vshll.u32 %v2580_v37, 16  ;;  %v2860_v23 = vrot.slane %v8893_v61, 1  ;;  %v2469_v20 = vsel %vm2421_vm5, %v8909_v0, %v8930_v49 }
 0x255   : > { %v2753_v63 = vor.u32 %v2752_v32, %v2748_v52  ;;  %v2757_v24 = vrot.slane %v2755_v38, 1  ;;  %v2762_v45 = vshll.u32 %v2579_v12, 16  ;;  %v2533_v46 = vsel %vm2421_vm5, 0.0, %v8909_v0 }
 0x256   : > { %v2760_v44 = vshrl.u32 %v2579_v12, 16  ;;  %v9076_v3 = vsel %vm781_vm4, %v2859_v56, %v2860_v23  ;;  %v2581_v29 = vpack.c.bf16 %v2469_v20, %v2533_v46  ;;  %v9079_v14 = vpack.c.bf16 %v2469_v20, %v8909_v0  ;;  %v10054_v23 = vld [vmem:[#allocation23_spill] sm:$0xff]  ;;  %v10055_v20 = vld [vmem:[#allocation13_spill] sm:$0xff] }
 0x257   : > { %5526 = vmatmul.mubr.msk.bf16.gmra.mxu1 %vm8471_vm8, %v8968_v60  ;;  %v9085_v61 = vsel %vm572_vm0, %v2753_v63, %v2757_v24  ;;  %v2764_v53 = vrot.slane %v2762_v45, 1  ;;  %v2862_v51 = vrot.slane %v2579_v12, 1  ;;  %v2863_v6 = vrot.slane %v2580_v37, 1  ;;  %v10052_v12 = vld [vmem:[#allocation25_spill] sm:$0xff]  ;;  %v10056_v63 = vld [vmem:[#allocation12_spill] sm:$0xff]  ;;  %v7066_v24 = vld [vmem:[%s9967_s7 + $0x30] sm:$0xff]  }
 0x258   : > { %3596 = vmatprep.mubr.bf16.mxu1 %v9029_v1  ;;  %v2769_v48 = vrot.slane %v2767_v16, 1  ;;  %v9088_v62 = vadd.f32 %v6194_v59, %v6193_v19  ;;  %v2549_v0 = vsel %vm2421_vm5, %v8930_v49, 0.0  ;;  %v2884_v38 = vshll.u32 %v2581_v29, 16  ;;  %v10053_v19 = vld [vmem:[#allocation26_spill] sm:$0xff]  ;;  %v7067_v45 = vld [vmem:[#allocation2 + $0x228] sm:$0xff]   ;;  %v10057_v46 = vld [vmem:[#allocation11_spill] sm:$0xff] }
 0x259   : > { %v2765_v47 = vor.u32 %v2764_v53, %v2760_v44  ;;  %v9093_v28 = vsel %vm781_vm4, %v2862_v51, %v2863_v6  ;;  %v2582_v34 = vpack.c.bf16 %v2549_v0, %v2549_v0  ;;  %v2882_v25 = vshrl.u32 %v2581_v29, 16  ;;  %v7065_v16 = vld [vmem:[#allocation2 + $0x230] sm:$0xff]   ;;  %v10058_v44 = vld [vmem:[#allocation28_spill] sm:$0xff]  ;;  %v7068_v53 = vld [vmem:[%s9967_s7 + $0x28] sm:$0xff]  }
 0x25a   : > { %v2896_v33 = vrot.slane %v2581_v29, 1  ;;  %v2886_v9 = vrot.slane %v2884_v38, 1  ;;  %v10059_v29 = vld [vmem:[#allocation16_spill] sm:$0xff]  ;;  %v10060_v6 = vld [vmem:[#allocation17_spill] sm:$0xff]  ;;  %v10061_v0 = vld [vmem:[#allocation27_spill] sm:$0xff] }
 0x25b   : > { %3750 = vmatmul.mubr.bf16.gmra.mxu0 %v8999_v2  ;;  %v9097_v52 = vsel %vm572_vm0, %v2765_v47, %v2769_v48  ;;  %v2889_v43 = vshll.u32 %v2582_v34, 16  ;;  %v2897_v10 = vrot.slane %v2582_v34, 1  ;;  %v7069_v51 = vld [vmem:[#allocation2 + $0x220] sm:$0xff]   ;;  %v7071_v48 = vld [vmem:[#allocation2 + $0x218] sm:$0xff]   ;;  %v7073_v38 = vld [vmem:[#allocation2 + $0x210] sm:$0xff]  }
 0x25c   : > { %5594 = vmatprep.mubr.msk.bf16.mxu0 %vm8471_vm8, %v9010_v11  ;;  %v2887_v49 = vor.u32 %v2886_v9, %v2882_v25  ;;  %v7070_v59 = vld [vmem:[%s9967_s7 + $0x20] sm:$0xff]   ;;  %v10062_v47 = vld [vmem:[#allocation15_spill] sm:$0xff]  ;;  %v7074_v25 = vld [vmem:[%s9967_s7 + $0x10] sm:$0xff]  }
 0x25d   : > { %v2891_v37 = vrot.slane %v2889_v43, 1  ;;  %v9103_v56 = vsel %vm781_vm4, %v2896_v33, %v2897_v10  ;;  %v7072_v34 = vld [vmem:[%s9967_s7 + $0x18] sm:$0xff]   ;;  %v7075_v33 = vld [vmem:[#allocation2 + $0x208] sm:$0xff]   ;;  %v10064_v43 = vld [vmem:[#allocation20_spill] sm:$0xff] }
 0x25e   : > { %v10063_v9 = vld [vmem:[#allocation29_spill] sm:$0xff] }
 0x25f   : > { %5530 = vmatmul.mubr.msk.bf16.gmra.mxu1 %vm8471_vm8, %v8985_v22  ;;  %v9109_v32 = vsel %vm572_vm0, %v2887_v49, %v2891_v37  ;;  %v7076_v10 = vld [vmem:[%s9967_s7 + $0x8] sm:$0xff]   ;;  %v7077_v49 = vld [vmem:[#allocation2 + $0x200] sm:$0xff]  }
 0x260   : > { %3604 = vmatprep.mubr.bf16.mxu1 %v9048_v58  ;;  %v7078_v37 = vld [vmem:[%s9967_s7] sm:$0xff]  }
 0x263   : > { %3758 = vmatmul.mubr.bf16.gmra.mxu0 %v9021_v41 }
 0x264   : > { %5598 = vmatprep.mubr.msk.bf16.mxu0 %vm8471_vm8, %v9024_v42 }
 0x267   : > { %5534 = vmatmul.mubr.msk.bf16.gmra.mxu1 %vm8471_vm8, %v9010_v11 }
 0x268   : > { %3612 = vmatprep.mubr.bf16.mxu1 %v9057_v15 }
 0x26b   : > { %3766 = vmatmul.mubr.bf16.gmra.mxu0 %v9044_v39 }
 0x26c   : > { %5602 = vmatprep.mubr.msk.bf16.mxu0 %vm8471_vm8, %v9040_v54 }
 0x26f   : > { %5538 = vmatmul.mubr.msk.bf16.gmra.mxu1 %vm8471_vm8, %v9024_v42 }
 0x270   : > { %3620 = vmatprep.mubr.bf16.mxu1 %v9085_v61 }
 0x273   : > { %3774 = vmatmul.mubr.bf16.gmra.mxu0 %v9067_v17 }
 0x274   : > { %5606 = vmatprep.mubr.msk.bf16.mxu0 %vm8471_vm8, %v9061_v55 }
 0x277   : > { %5542 = vmatmul.mubr.msk.bf16.gmra.mxu1 %vm8471_vm8, %v9040_v54 }
 0x278   : > { %3628 = vmatprep.mubr.bf16.mxu1 %v9097_v52 }
 0x27b   : > { %3782 = vmatmul.mubr.bf16.gmra.mxu0 %v9076_v3 }
 0x27c   : > { %5610 = vmatprep.mubr.msk.bf16.mxu0 %vm8471_vm8, %v9079_v14 }
 0x27f   : > { %5546 = vmatmul.mubr.msk.bf16.gmra.mxu1 %vm8471_vm8, %v9061_v55 }
 0x280   : > { %3830 = vmatprep.mubr.bf16.mxu1 %v10052_v12  ;;  %v10065_v12 = vld [vmem:[#allocation30_spill] sm:$0xff] }
 0x283   : > { %3790 = vmatmul.mubr.bf16.gmra.mxu0 %v9093_v28 }
 0x284   : > { %3991 = vmatprep.mubr.bf16.mxu0 %v10053_v19 }
 0x287   : > { %3831 = vmatmul.mubr.bf16.vlgmr.msra.gmra.mxu1 %v10054_v23 }
 0x288   : > { %3838 = vmatprep.mubr.bf16.mxu1 %v10055_v20  ;;  %6722 = vmatpush3.bf16.msra.mxu1 %v10056_v63 }
 0x289   : > { %6723 = vmatprep.subr.bf16.mxu1 %v7065_v16 }
 0x28b   : > { %5614 = vmatmul.mubr.msk.bf16.vlgmr.msra.gmra.mxu0 %vm8471_vm8, %v10057_v46 }
 0x28c   : > { %3999 = vmatprep.mubr.bf16.mxu0 %v10058_v44  ;;  %6770 = vmatpush3.bf16.msra.mxu0 %v10059_v29 }
 0x28d   : > { %6724 = vmatpush3.bf16.msra.mxu1 %v7065_v16  ;;  %6771 = vmatprep.subr.bf16.mxu0 %v7066_v24 }
 0x28e   : > { %6725 = vmatprep.subr.bf16.mxu1 %v7067_v45 }
 0x28f   : > { %3839 = vmatmul.mubr.bf16.gmra.mxu1 %v10053_v19 }
 0x290   : > { %3846 = vmatprep.mubr.bf16.mxu1 %v10060_v6  ;;  %6772 = vmatpush3.bf16.msra.mxu0 %v7066_v24 }
 0x291   : > { %6726 = vmatpush3.bf16.msra.mxu1 %v7067_v45  ;;  %6773 = vmatprep.subr.bf16.mxu0 %v7068_v53 }
 0x292   : > { %6727 = vmatprep.subr.bf16.mxu1 %v7069_v51 }
 0x293   : > { %5618 = vmatmul.mubr.msk.bf16.gmra.mxu0 %vm8471_vm8, %v10061_v0 }
 0x294   : > { %4007 = vmatprep.mubr.bf16.mxu0 %v10062_v47  ;;  %6774 = vmatpush3.bf16.msra.mxu0 %v7068_v53 }
 0x295   : > { %6728 = vmatpush3.bf16.msra.mxu1 %v7069_v51  ;;  %6775 = vmatprep.subr.bf16.mxu0 %v7070_v59 }
 0x296   : > { %6729 = vmatprep.subr.bf16.mxu1 %v7071_v48 }
 0x297   : > { %3847 = vmatmul.mubr.bf16.gmra.mxu1 %v10058_v44 }
 0x298   : > { %3854 = vmatprep.mubr.bf16.mxu1 %v8811_v36  ;;  %6776 = vmatpush3.bf16.msra.mxu0 %v7070_v59 }
 0x299   : > { %6730 = vmatpush3.bf16.msra.mxu1 %v7071_v48  ;;  %6777 = vmatprep.subr.bf16.mxu0 %v7072_v34 }
 0x29a   : > { %6731 = vmatprep.subr.bf16.mxu1 %v7073_v38 }
 0x29b   : > { %5622 = vmatmul.mubr.msk.bf16.gmra.mxu0 %vm8471_vm8, %v10063_v9 }
 0x29c   : > { %4015 = vmatprep.mubr.bf16.mxu0 %v10064_v43  ;;  %6778 = vmatpush3.bf16.msra.mxu0 %v7072_v34 }
 0x29d   : > { %6732 = vmatpush3.bf16.msra.mxu1 %v7073_v38  ;;  %6779 = vmatprep.subr.bf16.mxu0 %v7074_v25 }
 0x29e   : > { %6733 = vmatprep.subr.bf16.mxu1 %v7075_v33 }
 0x29f   : > { %3855 = vmatmul.mubr.bf16.gmra.mxu1 %v10062_v47 }
 0x2a0   : > { %3862 = vmatprep.mubr.bf16.mxu1 %v8868_v7  ;;  %6780 = vmatpush3.bf16.msra.mxu0 %v7074_v25 }
 0x2a1   : > { %6734 = vmatpush3.bf16.msra.mxu1 %v7075_v33  ;;  %6781 = vmatprep.subr.bf16.mxu0 %v7076_v10 }
 0x2a2   : > { %6735 = vmatprep.subr.bf16.mxu1 %v7077_v49 }
 0x2a3   : > { %5626 = vmatmul.mubr.msk.bf16.gmra.mxu0 %vm8471_vm8, %v10065_v12 }
 0x2a4   : > { %4023 = vmatprep.mubr.bf16.mxu0 %v8873_v13  ;;  %6782 = vmatpush3.bf16.msra.mxu0 %v7076_v10 }
 0x2a5   : > { %6736 = vmatpush3.bf16.msra.mxu1 %v7077_v49  ;;  %6783 = vmatprep.subr.bf16.mxu0 %v7078_v37 }
 0x2a7   : > { %3863 = vmatmul.mubr.bf16.gmra.mxu1 %v10064_v43 }
 0x2a8   : > { %3870 = vmatprep.mubr.bf16.mxu1 %v8913_v8  ;;  %6784 = vmatpush3.bf16.msra.mxu0 %v7078_v37 }
 0x2ab   : > { %5630 = vmatmul.mubr.msk.bf16.gmra.mxu0 %vm8471_vm8, %v8829_v35  ;;  %v6196_v35 = vpop.f32.mrf.mxu1 }
 0x2ac   : > { %4031 = vmatprep.mubr.bf16.mxu0 %v8933_v26 }
 0x2ad   : > { %v6197_v16 = vpop.f32.mrf.mxu1 }
 0x2ae   : > { %v6198_v63 = vadd.f32 %v6197_v16, %v6196_v35 }
 0x2af   : > { %3871 = vmatmul.mubr.bf16.gmra.mxu1 %v8873_v13 }
 0x2b0   : > { %3878 = vmatprep.mubr.bf16.mxu1 %v8940_v50 }
 0x2b3   : > { %5634 = vmatmul.mubr.msk.bf16.gmra.mxu0 %vm8471_vm8, %v8886_v57 }
 0x2b4   : > { %4039 = vmatprep.mubr.bf16.mxu0 %v8971_v40 }
 0x2b7   : > { %3879 = vmatmul.mubr.bf16.gmra.mxu1 %v8933_v26 }
 0x2b8   : > { %3886 = vmatprep.mubr.bf16.mxu1 %v8965_v18 }
 0x2bb   : > { %5638 = vmatmul.mubr.msk.bf16.gmra.mxu0 %vm8471_vm8, %v8922_v21 }
 0x2bc   : > { %4047 = vmatprep.mubr.bf16.mxu0 %v8995_v31  ;;  %v6305_v13 = vpop.f32.mrf.mxu0 }
 0x2be   : > { %v6306_v19 = vpop.f32.mrf.mxu0 }
 0x2bf   : > { %3887 = vmatmul.mubr.bf16.gmra.mxu1 %v8971_v40  ;;  %v6307_v57 = vadd.f32 %v6306_v19, %v6305_v13 }
 0x2c0   : > { %3894 = vmatprep.mubr.bf16.mxu1 %v8988_v30  ;;  %v6308_v23 = vpop.f32.mrf.mxu0 }
 0x2c1   : > { %v9214_v26 = vadd.f32 %v6307_v57, %v9088_v62 }
 0x2c2   : > { %v6309_v21 = vpop.f32.mrf.mxu0 }
 0x2c3   : > { %5642 = vmatmul.mubr.msk.bf16.gmra.mxu0 %vm8471_vm8, %v8952_v4  ;;  %v6310_v24 = vadd.f32 %v6309_v21, %v6308_v23 }
 0x2c4   : > { %4055 = vmatprep.mubr.bf16.mxu0 %v9006_v5 }
 0x2c5   : > { %v9220_v45 = vadd.f32 %v6310_v24, %v6198_v63  ;;  %v7079_v63 = vld [vmem:[%s7381_s12 + $0xc] sm:$0xf] }
 0x2c6   : > { %v4363_v24 = vshrl.u32 %v7079_v63, 16 }
 0x2c7   : > { %3895 = vmatmul.mubr.bf16.gmra.mxu1 %v8995_v31 }
 0x2c8   : > { %3902 = vmatprep.mubr.bf16.mxu1 %v8999_v2 }
 0x2ca   : > { %v6199_v40 = vpop.f32.mrf.mxu1 }
 0x2cb   : > { %5646 = vmatmul.mubr.msk.bf16.gmra.mxu0 %vm8471_vm8, %v8968_v60 }
 0x2cc   : > { %4063 = vmatprep.mubr.bf16.mxu0 %v9029_v1  ;;  %v6311_v62 = vpop.f32.mrf.mxu0  ;;  %v6200_v4 = vpop.f32.mrf.mxu1 }
 0x2cd   : > { %v6201_v46 = vadd.f32 %v6200_v4, %v6199_v40  ;;  %v4366_v40 = vshll.u32 %v7079_v63, 16 }
 0x2ce   : > { %v6312_v44 = vpop.f32.mrf.mxu0  ;;  %v6202_v29 = vpop.f32.mrf.mxu1 }
 0x2cf   : > { %3903 = vmatmul.mubr.bf16.gmra.mxu1 %v9006_v5  ;;  %v6313_v53 = vadd.f32 %v6312_v44, %v6311_v62 }
 0x2d0   : > { %3910 = vmatprep.mubr.bf16.mxu1 %v9021_v41  ;;  %v6314_v31 = vpop.f32.mrf.mxu0  ;;  %v6203_v51 = vpop.f32.mrf.mxu1 }
 0x2d1   : > { %v9230_v59 = vadd.f32 %v6313_v53, %v6201_v46  ;;  %v6204_v48 = vadd.f32 %v6203_v51, %v6202_v29  ;;  %v7080_v29 = vld [vmem:[%s7381_s12 + $0x10] sm:$0xf] }
 0x2d2   : > { %v6315_v0 = vpop.f32.mrf.mxu0  ;;  %v6205_v47 = vpop.f32.mrf.mxu1  ;;  %v4372_v53 = vshll.u32 %v7080_v29, 16 }
 0x2d3   : > { %5650 = vmatmul.mubr.msk.bf16.gmra.mxu0 %vm8471_vm8, %v8985_v22  ;;  %v6316_v60 = vadd.f32 %v6315_v0, %v6314_v31  ;;  %v4376_v31 = vshrl.u32 %v7080_v29, 16  ;;  %v4368_v0 = vrot.slane %v4366_v40, 5  ;;  %v7086_v29 = vld [vmem:[%s7381_s12 + $0x30] sm:$0xf] }
 0x2d4   : > { %4071 = vmatprep.mubr.bf16.mxu0 %v9048_v58  ;;  %v6317_v34 = vpop.f32.mrf.mxu0  ;;  %v6206_v38 = vpop.f32.mrf.mxu1 }
 0x2d5   : > { %v9236_v5 = vadd.f32 %v6316_v60, %v6204_v48  ;;  %v6207_v25 = vadd.f32 %v6206_v38, %v6205_v47  ;;  %v4365_v48 = vrot.slane %v4363_v24, 4 }
 0x2d6   : > { %v6318_v33 = vpop.f32.mrf.mxu0  ;;  %v6208_v9 = vpop.f32.mrf.mxu1 }
 0x2d7   : > { %3911 = vmatmul.mubr.bf16.gmra.mxu1 %v9029_v1  ;;  %v6319_v43 = vadd.f32 %v6318_v33, %v6317_v34 }
 0x2d8   : > { %3918 = vmatprep.mubr.bf16.mxu1 %v9044_v39  ;;  %v6320_v10 = vpop.f32.mrf.mxu0  ;;  %v6209_v49 = vpop.f32.mrf.mxu1 }
 0x2d9   : > { %v9240_v37 = vadd.f32 %v6319_v43, %v6207_v25  ;;  %v6210_v22 = vadd.f32 %v6209_v49, %v6208_v9  ;;  %v4378_v25 = vrot.slane %v4376_v31, 4  ;;  %v4369_v43 = vor.u32 %v4368_v0, %v4365_v48 }
 0x2da   : > { %v6321_v12 = vpop.f32.mrf.mxu0  ;;  %v6211_v35 = vpop.f32.mrf.mxu1  ;;  %v4438_v31 = vshll.u32 %v7086_v29, 16 }
 0x2db   : > { %5654 = vmatmul.mubr.msk.bf16.gmra.mxu0 %vm8471_vm8, %v9010_v11  ;;  %v6322_v13 = vadd.f32 %v6321_v12, %v6320_v10  ;;  %v7081_v10 = vld [vmem:[%s7381_s12 + $0x14] sm:$0x1]  ;;  %v9276_v63 = vrot.slane %v4369_v43, 4 }
 0x2dc   : > { %4079 = vmatprep.mubr.bf16.mxu0 %v9057_v15  ;;  %v6212_v19 = vpop.f32.mrf.mxu1  ;;  %v4382_v49 = vshll.u32 %v7081_v10, 16 }
 0x2dd   : > { %v9246_v1 = vadd.f32 %v6322_v13, %v6210_v22  ;;  %v6213_v57 = vadd.f32 %v6212_v19, %v6211_v35  ;;  %v7082_v35 = vld [vmem:[%s7381_s12 + $0x24] sm:$0xf]  ;;  %v9271_v19 = vld [vmem:[%s7381_s12 + $0x98] sm:$0x1] }
 0x2de   : > { %v6214_v16 = vpop.f32.mrf.mxu1  ;;  %v4411_v13 = vshrl.u32 %v7082_v35, 16  ;;  %v9278_v24 = vrot.slane %v4382_v49, 5 }
 0x2df   : > { %3919 = vmatmul.mubr.bf16.gmra.mxu1 %v9048_v58  ;;  %v6323_v23 = vpop.f32.mrf.mxu0 }
 0x2e0   : > { %3926 = vmatprep.mubr.bf16.mxu1 %v9067_v17  ;;  %v6215_v21 = vpop.f32.mrf.mxu1 }
 0x2e1   : > { %v6324_v62 = vpop.f32.mrf.mxu0  ;;  %v6216_v11 = vadd.f32 %v6215_v21, %v6214_v16  ;;  %v7084_v16 = vld [vmem:[%s7381_s12 + $0x38] sm:$0x1] }
 0x2e2   : > { %v6325_v4 = vadd.f32 %v6324_v62, %v6323_v23  ;;  %v6217_v46 = vpop.f32.mrf.mxu1  ;;  %v4454_v23 = vshll.u32 %v7084_v16, 16  ;;  %v4414_v62 = vshll.u32 %v7082_v35, 16  ;;  %v7089_v35 = vld [vmem:[%s7381_s12 + $0x40] sm:$0xf] }
 0x2e3   : > { %5658 = vmatmul.mubr.msk.bf16.gmra.mxu0 %vm8471_vm8, %v9024_v42  ;;  %v6326_v44 = vpop.f32.mrf.mxu0  ;;  %v9259_v42 = vrot.slane %v4372_v53, 5  ;;  %v4435_v53 = vshrl.u32 %v7086_v29, 16  ;;  %v4468_v16 = vshll.u32 %v7089_v35, 16 }
 0x2e4   : > { %4087 = vmatprep.mubr.bf16.mxu0 %v9085_v61  ;;  %v9256_v58 = vadd.f32 %v6325_v4, %v6213_v57  ;;  %v6218_v51 = vpop.f32.mrf.mxu1 }
 0x2e5   : > { %v6327_v47 = vpop.f32.mrf.mxu0  ;;  %v6219_v60 = vadd.f32 %v6218_v51, %v6217_v46  ;;  %v7087_v51 = vld [vmem:[%s7381_s12 + $0x34] sm:$0xf] }
 0x2e6   : > { %10066 = vst [vmem:[#allocation18_spill] sm:$0xff] %v9256_v58  ;;  %v6328_v34 = vadd.f32 %v6327_v47, %v6326_v44  ;;  %v6220_v38 = vpop.f32.mrf.mxu1  ;;  %v4444_v48 = vshll.u32 %v7087_v51, 16  ;;  %v4448_v0 = vshrl.u32 %v7087_v51, 16  ;;  %v4437_v51 = vrot.slane %v4435_v53, 4 }
 0x2e7   : > { %3927 = vmatmul.mubr.bf16.gmra.mxu1 %v9057_v15  ;;  %v4379_v15 = vor.u32 %v4378_v25, %v9259_v42  ;;  %v4413_v25 = vrot.slane %v4411_v13, 4  ;;  %v9302_v53 = vrot.slane %v4468_v16, 5 }
 0x2e8   : > { %v9261_v33 = vadd.f32 %v6328_v34, %v6216_v11  ;;  %3934 = vmatprep.mubr.bf16.mxu1 %v9076_v3  ;;  %v6221_v9 = vpop.f32.mrf.mxu1  ;;  %v7085_v11 = vld [vmem:[%s7381_s12 + $0x28] sm:$0xf]  ;;  %v9291_v13 = vrot.slane %v4444_v48, 5  ;;  %v4450_v57 = vrot.slane %v4448_v0, 4  ;;  %v4375_v48 = vsel %vm7507_vm3, %v9276_v63, %v9259_v42 }
 0x2e9   : > { %v6222_v22 = vadd.f32 %v6221_v9, %v6220_v38  ;;  %v4420_v4 = vshll.u32 %v7085_v11, 16  ;;  %v4424_v46 = vshrl.u32 %v7085_v11, 16  ;;  %v4380_v38 = vrot.slane %v4379_v15, 4  ;;  %v7088_v9 = vld [vmem:[%s7381_s12 + $0x3c] sm:$0xf] }
 0x2ea   : > { %10067 = vst [vmem:[#allocation21_spill] sm:$0xff] %v9261_v33  ;;  %v6329_v12 = vpop.f32.mrf.mxu0  ;;  %v4459_v43 = vshrl.u32 %v7088_v9, 16  ;;  %v4440_v15 = vrot.slane %v4438_v31, 5  ;;  %v7090_v33 = vld [vmem:[%s7381_s12 + $0x50] sm:$0x1]  ;;  %v4451_v16 = vor.u32 %v4450_v57, %v9291_v13 }
 0x2eb   : > { %5662 = vmatmul.mubr.msk.bf16.gmra.mxu0 %vm8471_vm8, %v9040_v54  ;;  %v4502_v58 = vshll.u32 %v7090_v33, 16 }
 0x2ec   : > { %4095 = vmatprep.mubr.bf16.mxu0 %v9097_v52  ;;  %v6330_v21 = vpop.f32.mrf.mxu0 }
 0x2ed   : > { %v6331_v54 = vadd.f32 %v6330_v21, %v6329_v12  ;;  %v6223_v40 = vpop.f32.mrf.mxu1  ;;  %v4462_v12 = vshll.u32 %v7088_v9, 16  ;;  %v4472_v21 = vshrl.u32 %v7089_v35, 16  ;;  %v7091_v9 = vld [vmem:[%s7381_s12 + $0x2c] sm:$0x1]  ;;  %v4441_v35 = vor.u32 %v4440_v15, %v4437_v51 }
 0x2ee   : > { %v6332_v44 = vpop.f32.mrf.mxu0 }
 0x2ef   : > { %v9283_v47 = vadd.f32 %v6331_v54, %v6219_v60  ;;  %3935 = vmatmul.mubr.bf16.gmra.mxu1 %v9085_v61  ;;  %v6224_v34 = vpop.f32.mrf.mxu1  ;;  %v4416_v60 = vrot.slane %v4414_v62, 5  ;;  %v9289_v54 = vrot.slane %v4420_v4, 5  ;;  %v4426_v61 = vrot.slane %v4424_v46, 4 }
 0x2f0   : > { %v6333_v10 = vpop.f32.mrf.mxu0  ;;  %3942 = vmatprep.mubr.bf16.mxu1 %v9093_v28  ;;  %v6225_v49 = vadd.f32 %v6224_v34, %v6223_v40  ;;  %v4461_v4 = vrot.slane %v4459_v43, 4  ;;  %v4430_v43 = vshll.u32 %v7091_v9, 16 }
 0x2f1   : > { %10068 = vst [vmem:[#allocation19_spill] sm:$0xff] %v9283_v47  ;;  %v6334_v11 = vadd.f32 %v6333_v10, %v6332_v44  ;;  %v6226_v29 = vpop.f32.mrf.mxu1  ;;  %v9293_v47 = vrot.slane %v4454_v23, 5  ;;  %v4464_v44 = vrot.slane %v4462_v12, 5  ;;  %v4474_v23 = vrot.slane %v4472_v21, 4 }
 0x2f2   : > { %v4417_v0 = vor.u32 %v4416_v60, %v4413_v25  ;;  %v4385_v12 = vsel %vm7507_vm3, %v4380_v38, %v9278_v24  ;;  %v9314_v21 = vrot.slane %v4502_v58, 5  ;;  %v7094_v60 = vld [vmem:[%s7381_s12 + $0x44] sm:$0x1] }
 0x2f3   : > { %v9296_v40 = vadd.f32 %v6334_v11, %v6222_v22  ;;  %v6335_v34 = vpop.f32.mrf.mxu0  ;;  %5666 = vmatmul.mubr.msk.bf16.gmra.mxu0 %vm8471_vm8, %v9061_v55  ;;  %v6227_v62 = vpop.f32.mrf.mxu1  ;;  %v4427_v55 = vor.u32 %v4426_v61, %v9289_v54  ;;  %v7092_v11 = vld [vmem:[%s7381_s12 + $0x68] sm:$0x1]  ;;  %v4478_v61 = vshll.u32 %v7094_v60, 16  ;;  %v4465_v38 = vor.u32 %v4464_v44, %v4461_v4 }
 0x2f4   : > { %4103 = vmatprep.mubr.bf16.mxu0 %v9109_v32  ;;  %v6228_v46 = vadd.f32 %v6227_v62, %v6226_v29  ;;  %v4550_v29 = vshll.u32 %v7092_v11, 16  ;;  %v7093_v62 = vld [vmem:[%s7381_s12 + $0x80] sm:$0x1]  ;;  %v4475_v58 = vor.u32 %v4474_v23, %v9302_v53  ;;  %v9324_v15 = vcombine.low %v4375_v48, %v4385_v12  ;;  %v7095_v60 = vld [vmem:[%s7381_s12 + $0x48] sm:$0xf] }
 0x2f5   : > { %10069 = vst [vmem:[#allocation24_spill] sm:$0xff] %v9296_v40  ;;  %v6336_v33 = vpop.f32.mrf.mxu0  ;;  %v6229_v31 = vpop.f32.mrf.mxu1  ;;  %v4598_v42 = vshll.u32 %v7093_v62, 16  ;;  %v4428_v9 = vrot.slane %v4427_v55, 4  ;;  %v4442_v62 = vrot.slane %v4441_v35, 4  ;;  %v4452_v40 = vrot.slane %v4451_v16, 4 }
 0x2f6   : > { %v6337_v10 = vadd.f32 %v6336_v33, %v6335_v34  ;;  %v4418_v33 = vrot.slane %v4417_v0, 4  ;;  %v4480_v44 = vrot.slane %v4478_v61, 5  ;;  %v4486_v23 = vshll.u32 %v7095_v60, 16 }
 0x2f7   : > { %v6338_v63 = vpop.f32.mrf.mxu0  ;;  %3943 = vmatmul.mubr.bf16.gmra.mxu1 %v9097_v52  ;;  %v6230_v25 = vpop.f32.mrf.mxu1  ;;  %v4432_v52 = vrot.slane %v4430_v43, 5  ;;  %v10071_v43 = vld [vmem:[#allocation10_spill] sm:$0xff]  ;;  %v4466_v35 = vrot.slane %v4465_v38, 4  ;;  %v4476_v16 = vrot.slane %v4475_v58, 4  ;;  %v4457_v38 = vsel %vm7507_vm3, %v4452_v40, %v9293_v47 }
 0x2f8   : > { %v9320_v34 = vadd.f32 %v6337_v10, %v6225_v49  ;;  %3950 = vmatprep.mubr.bf16.mxu1 %v9103_v56  ;;  %v6231_v24 = vadd.f32 %v6230_v25, %v6229_v31  ;;  %v4483_v49 = vshrl.u32 %v7095_v60, 16  ;;  %v7096_v31 = vld [vmem:[%s7381_s12 + $0x4c] sm:$0xf]  ;;  %v4423_v27 = vsel %vm7507_vm3, %v4418_v33, %v9289_v54  ;;  %v7097_v25 = vld [vmem:[%s7381_s12 + $0x54] sm:$0xf] }
 0x2f9   : > { %v6339_v57 = vpop.f32.mrf.mxu0  ;;  %v6232_v51 = vpop.f32.mrf.mxu1  ;;  %v4492_v48 = vshll.u32 %v7096_v31, 16  ;;  %v4496_v12 = vshrl.u32 %v7096_v31, 16  ;;  %v4507_v61 = vshrl.u32 %v7097_v25, 16  ;;  %v4488_v54 = vrot.slane %v4486_v23, 5 }
 0x2fa   : > { %v6340_v11 = vadd.f32 %v6339_v57, %v6338_v63  ;;  %v4510_v57 = vshll.u32 %v7097_v25, 16  ;;  %v4485_v58 = vrot.slane %v4483_v49, 4  ;;  %v4481_v47 = vsel %vm7507_vm3, %v4476_v16, %v4480_v44 }
 0x2fb   : > { %v6341_v10 = vpop.f32.mrf.mxu0  ;;  %5670 = vmatmul.mubr.msk.bf16.gmra.mxu0 %vm8471_vm8, %v9079_v14  ;;  %v6233_v4 = vpop.f32.mrf.mxu1  ;;  %v4433_v14 = vsel %vm7507_vm3, %v4428_v9, %v4432_v52  ;;  %v9347_v33 = vrot.slane %v4492_v48, 5  ;;  %v4498_v9 = vrot.slane %v4496_v12, 4  ;;  %v7098_v52 = vld [vmem:[%s7381_s12 + $0x58] sm:$0xf]  ;;  %v4509_v31 = vrot.slane %v4507_v61, 4 }
 0x2fc   : > { %v9331_v0 = vadd.f32 %v6340_v11, %v6228_v46  ;;  %v6234_v55 = vadd.f32 %v6233_v4, %v6232_v51  ;;  %4111 = vmatprep.mubr.bf16.mxu0 %v10071_v43  ;;  %v4447_v46 = vsel %vm7507_vm3, %v4442_v62, %v9291_v13  ;;  %v4516_v4 = vshll.u32 %v7098_v52, 16 }
 0x2fd   : > { %v6342_v63 = vpop.f32.mrf.mxu0  ;;  %v4471_v13 = vsel %vm7507_vm3, %v4466_v35, %v9302_v53  ;;  %v4520_v40 = vshrl.u32 %v7098_v52, 16  ;;  %v9358_v62 = vrot.slane %v4550_v29, 5  ;;  %v5675_v12 = vcombine.low %v4423_v27, %v4433_v14  ;;  %v7099_v14 = vld [vmem:[%s7381_s12 + $0x5c] sm:$0x1] }
 0x2fe   : > { %v6343_v60 = vadd.f32 %v6342_v63, %v6341_v10  ;;  %v9362_v43 = vcombine.low %v4447_v46, %v4457_v38  ;;  %v10072_v35 = vmov 0.0|0.0   ;;  %v9365_v29 = vcombine.low %v4471_v13, %v4481_v47 }
 0x2ff   : > { %v6344_v51 = vpop.f32.mrf.mxu0  ;;  %v6235_v11 = vpop.f32.mrf.mxu1  ;;  %3951 = vmatmul.mubr.bf16.gmra.mxu1 %v9109_v32  ;;  %v9360_v32 = vrot.slane %v4598_v42, 5  ;;  %v4489_v42 = vor.u32 %v4488_v54, %v4485_v58  ;;  %v4499_v16 = vor.u32 %v4498_v9, %v9347_v33  ;;  %v9368_v63 = vrot.slane %v4516_v4, 5  ;;  %v7101_v58 = vld [vmem:[%s7381_s12 + $0x64] sm:$0xf] }
 0x300   : > { %v9350_v10 = vadd.f32 %v6343_v60, %v6231_v24  ;;  %6737 = vmatprep.mubr.bf16.mxu1 %v10055_v20  ;;  %v4512_v24 = vrot.slane %v4510_v57, 5  ;;  %v4522_v27 = vrot.slane %v4520_v40, 4  ;;  %v4526_v61 = vshll.u32 %v7099_v14, 16  ;;  %v7100_v57 = vld [vmem:[%s7381_s12 + $0x60] sm:$0xf] }
 0x301   : > { %v6345_v49 = vpop.f32.mrf.mxu0  ;;  %v6236_v23 = vpop.f32.mrf.mxu1  ;;  %v4531_v60 = vshrl.u32 %v7100_v57, 16  ;;  %v4540_v54 = vshll.u32 %v7101_v58, 16  ;;  %v4544_v9 = vshrl.u32 %v7101_v58, 16  ;;  %v9378_v40 = vrot.slane %v4489_v42, 4 }
 0x302   : > { %v6346_v48 = vadd.f32 %v6345_v49, %v6344_v51  ;;  %v6237_v20 = vadd.f32 %v6236_v23, %v6235_v11  ;;  %v4513_v51 = vor.u32 %v4512_v24, %v4509_v31  ;;  %v4534_v11 = vshll.u32 %v7100_v57, 16 }
 0x303   : > { %v6347_v53 = vpop.f32.mrf.mxu0  ;;  %4112 = vmatmul.mubr.bf16.gmra.mxu0 %v10072_v35  ;;  %v6238_v44 = vpop.f32.mrf.mxu1  ;;  %v9380_v23 = vrot.slane %v4499_v16, 4  ;;  %v4533_v14 = vrot.slane %v4531_v60, 4  ;;  %v9391_v16 = vrot.slane %v4540_v54, 5 }
 0x304   : > { %v9370_v25 = vadd.f32 %v6346_v48, %v6234_v55  ;;  %6785 = vmatprep.mubr.bf16.mxu0 %v9324_v15  ;;  %v7102_v55 = vld [vmem:[%s7381_s12 + $0x6c] sm:$0xf]  ;;  %v7103_v48 = vld [vmem:[%s7381_s12 + $0x70] sm:$0xf]  ;;  %v4536_v42 = vrot.slane %v4534_v11, 5 }
 0x305   : > { %v6348_v46 = vpop.f32.mrf.mxu0  ;;  %v6239_v38 = vpop.f32.mrf.mxu1  ;;  %v4555_v13 = vshrl.u32 %v7102_v55, 16  ;;  %v4558_v47 = vshll.u32 %v7102_v55, 16  ;;  %v4564_v35 = vshll.u32 %v7103_v48, 16  ;;  %v4568_v31 = vshrl.u32 %v7103_v48, 16  ;;  %v10075_v48 = vld [vmem:[#allocation9_spill] sm:$0xff] }
 0x306   : > { %10073 = vst [vmem:[#allocation14_spill] sm:$0xff] %v9370_v25  ;;  %v6349_v52 = vadd.f32 %v6348_v46, %v6347_v53  ;;  %v6240_v4 = vadd.f32 %v6239_v38, %v6238_v44  ;;  %v4523_v53 = vor.u32 %v4522_v27, %v9368_v63  ;;  %v9387_v44 = vrot.slane %v4526_v61, 5 }
 0x307   : > { %v6350_v49 = vpop.f32.mrf.mxu0  ;;  %v6241_v15 = vpop.f32.mrf.mxu1  ;;  %6738 = vmatmul.mubr.bf16.vlgmr.msra.gmra.mxu1 %v10060_v6  ;;  %v9389_v6 = vrot.slane %v4513_v51, 4  ;;  %v4546_v38 = vrot.slane %v4544_v9, 4  ;;  %v4560_v55 = vrot.slane %v4558_v47, 5  ;;  %v9394_v61 = vrot.slane %v4564_v35, 5  ;;  %v7105_v9 = vld [vmem:[%s7381_s12 + $0x7c] sm:$0xf] }
 0x308   : > { %v9383_v24 = vadd.f32 %v6349_v52, %v6237_v20  ;;  %6741 = vmatprep.mubr.bf16.mxu1 %v8811_v36  ;;  %v4557_v52 = vrot.slane %v4555_v13, 4  ;;  %v4570_v60 = vrot.slane %v4568_v31, 4  ;;  %v4524_v54 = vrot.slane %v4523_v53, 4 }
 0x309   : > { %v6351_v57 = vpop.f32.mrf.mxu0  ;;  %v6242_v46 = vpop.f32.mrf.mxu1  ;;  %v4495_v35 = vsel %vm7507_vm3, %v9378_v40, %v9347_v33  ;;  %v4505_v31 = vsel %vm7507_vm3, %v9380_v23, %v9314_v21 }
 0x30a   : > { %10074 = vst [vmem:[#allocation25_spill] sm:$0xff] %v9383_v24  ;;  %v6352_v58 = vadd.f32 %v6351_v57, %v6350_v49  ;;  %v6243_v20 = vadd.f32 %v6242_v46, %v6241_v15  ;;  %v7104_v24 = vld [vmem:[%s7381_s12 + $0x78] sm:$0xf]  ;;  %v4588_v49 = vshll.u32 %v7105_v9, 16  ;;  %v4592_v15 = vshrl.u32 %v7105_v9, 16 }
 0x30b   : > { %v6353_v36 = vpop.f32.mrf.mxu0  ;;  %6786 = vmatmul.mubr.bf16.vlgmr.msra.gmra.mxu0 %v10075_v48  ;;  %v6244_v27 = vpop.f32.mrf.mxu1  ;;  %v4579_v25 = vshrl.u32 %v7104_v24, 16  ;;  %v4582_v51 = vshll.u32 %v7104_v24, 16  ;;  %v4547_v57 = vor.u32 %v4546_v38, %v9391_v16  ;;  %v7106_v46 = vld [vmem:[%s7381_s12 + $0x74] sm:$0x1]  ;;  %v4561_v40 = vor.u32 %v4560_v55, %v4557_v52  ;;  %v7108_v55 = vld [vmem:[%s7381_s12 + $0x88] sm:$0xf] }
 0x30c   : > { %v9397_v11 = vadd.f32 %v6352_v58, %v6240_v4  ;;  %6789 = vmatprep.mubr.bf16.mxu0 %v5675_v12  ;;  %v4519_v12 = vsel %vm7507_vm3, %v9389_v6, %v9368_v63  ;;  %v4537_v4 = vor.u32 %v4536_v42, %v4533_v14  ;;  %v4574_v58 = vshll.u32 %v7106_v46, 16 }
 0x30d   : > { %v6354_v13 = vpop.f32.mrf.mxu0  ;;  %v6245_v47 = vpop.f32.mrf.mxu1  ;;  %v4571_v21 = vor.u32 %v4570_v60, %v9394_v61  ;;  %v4581_v23 = vrot.slane %v4579_v25, 4  ;;  %v4584_v9 = vrot.slane %v4582_v51, 5  ;;  %v4529_v63 = vsel %vm7507_vm3, %v4524_v54, %v9387_v44 }
 0x30e   : > { %10076 = vst [vmem:[#allocation26_spill] sm:$0xff] %v9397_v11  ;;  %v6355_v24 = vadd.f32 %v6354_v13, %v6353_v36  ;;  %v6246_v53 = vadd.f32 %v6245_v47, %v6244_v27  ;;  %v9422_v14 = vrot.slane %v4588_v49, 5  ;;  %v4594_v6 = vrot.slane %v4592_v15, 4  ;;  %v7107_v36 = vld [vmem:[%s7381_s12 + $0x84] sm:$0xf] }
 0x30f   : > { %v6356_v48 = vpop.f32.mrf.mxu0  ;;  %v6247_v33 = vpop.f32.mrf.mxu1  ;;  %6742 = vmatmul.mubr.bf16.gmra.mxu1 %v8868_v7  ;;  %v4603_v7 = vshrl.u32 %v7107_v36, 16  ;;  %v4606_v52 = vshll.u32 %v7107_v36, 16  ;;  %v4612_v27 = vshll.u32 %v7108_v55, 16  ;;  %v4616_v25 = vshrl.u32 %v7108_v55, 16 }
 0x310   : > { %v9416_v11 = vadd.f32 %v6355_v24, %v6243_v20  ;;  %6745 = vmatprep.mubr.bf16.mxu1 %v8913_v8  ;;  %v9426_v51 = vrot.slane %v4537_v4, 4  ;;  %v9428_v8 = vrot.slane %v4547_v57, 4  ;;  %v9431_v54 = vrot.slane %v4561_v40, 4 }
 0x311   : > { %v6357_v42 = vpop.f32.mrf.mxu0  ;;  %v6248_v38 = vpop.f32.mrf.mxu1  ;;  %v9433_v49 = vrot.slane %v4571_v21, 4  ;;  %v9435_v15 = vrot.slane %v4574_v58, 5  ;;  %v4585_v47 = vor.u32 %v4584_v9, %v4581_v23  ;;  %v5678_v46 = vcombine.low %v4495_v35, %v4505_v31  ;;  %v7109_v9 = vld [vmem:[%s7381_s12 + $0x90] sm:$0xf] }
 0x312   : > { %v6358_v60 = vadd.f32 %v6357_v42, %v6356_v48  ;;  %v6249_v20 = vadd.f32 %v6248_v38, %v6247_v33  ;;  %v5679_v4 = vcombine.low %v4519_v12, %v4529_v63  ;;  %v4595_v57 = vor.u32 %v4594_v6, %v9422_v14  ;;  %v7110_v6 = vld [vmem:[%s7381_s12 + $0x94] sm:$0xf] }
 0x313   : > { %v6359_v13 = vpop.f32.mrf.mxu0  ;;  %6790 = vmatmul.mubr.bf16.gmra.mxu0 %v9362_v43  ;;  %v6250_v44 = vpop.f32.mrf.mxu1  ;;  %v4605_v43 = vrot.slane %v4603_v7, 4  ;;  %v4608_v42 = vrot.slane %v4606_v52, 5  ;;  %v9441_v40 = vrot.slane %v4612_v27, 5  ;;  %v4618_v21 = vrot.slane %v4616_v25, 4 }
 0x314   : > { %v9437_v24 = vadd.f32 %v6358_v60, %v6246_v53  ;;  %6793 = vmatprep.mubr.bf16.mxu0 %v9365_v29  ;;  %v4543_v29 = vsel %vm7507_vm3, %v9426_v51, %v9391_v16  ;;  %v4553_v35 = vsel %vm7507_vm3, %v9428_v8, %v9358_v62  ;;  %v4567_v53 = vsel %vm7507_vm3, %v9431_v54, %v9394_v61  ;;  %v7111_v60 = vld [vmem:[%s7381_s12 + $0x8c] sm:$0x1] }
 0x315   : > { %v6360_v48 = vpop.f32.mrf.mxu0  ;;  %v6251_v33 = vpop.f32.mrf.mxu1  ;;  %v4577_v16 = vsel %vm7507_vm3, %v9433_v49, %v9435_v15  ;;  %v4586_v23 = vrot.slane %v4585_v47, 4  ;;  %v4627_v63 = vshrl.u32 %v7109_v9, 16  ;;  %v4636_v36 = vshll.u32 %v7110_v6, 16 }
 0x316   : > { %v6361_v58 = vadd.f32 %v6360_v48, %v6359_v13  ;;  %v6252_v38 = vadd.f32 %v6251_v33, %v6250_v44  ;;  %v4640_v7 = vshrl.u32 %v7110_v6, 16  ;;  %v4596_v55 = vrot.slane %v4595_v57, 4  ;;  %v7112_v44 = vld [vmem:[%s7381_s12 + $0x9c] sm:$0xf]  ;;  %v7113_v48 = vld [vmem:[%s7381_s12 + $0xa0] sm:$0xf] }
 0x317   : > { %v6362_v31 = vpop.f32.mrf.mxu0  ;;  %v6253_v12 = vpop.f32.mrf.mxu1  ;;  %6746 = vmatmul.mubr.bf16.gmra.mxu1 %v8940_v50  ;;  %v4630_v50 = vshll.u32 %v7109_v9, 16  ;;  %v4609_v27 = vor.u32 %v4608_v42, %v4605_v43  ;;  %v4619_v25 = vor.u32 %v4618_v21, %v9441_v40  ;;  %v4622_v51 = vshll.u32 %v7111_v60, 16  ;;  %v7114_v60 = vld [vmem:[%s7381_s12 + $0xa4] sm:$0x1] }
 0x318   : > { %v9461_v62 = vadd.f32 %v6361_v58, %v6249_v20  ;;  %6749 = vmatprep.mubr.bf16.mxu1 %v8965_v18  ;;  %v4651_v20 = vshrl.u32 %v7112_v44, 16  ;;  %v4654_v54 = vshll.u32 %v7112_v44, 16  ;;  %v4591_v15 = vsel %vm7507_vm3, %v4586_v23, %v9422_v14 }
 0x319   : > { %v6363_v52 = vpop.f32.mrf.mxu0  ;;  %v6254_v61 = vpop.f32.mrf.mxu1  ;;  %v4629_v47 = vrot.slane %v4627_v63, 4  ;;  %v4660_v57 = vshll.u32 %v7113_v48, 16  ;;  %v4664_v33 = vshrl.u32 %v7113_v48, 16  ;;  %v4632_v42 = vrot.slane %v4630_v50, 5  ;;  %v7116_v48 = vld [vmem:[%s7381_s12 + $0xac] sm:$0xf] }
 0x31a   : > { %v6364_v8 = vadd.f32 %v6363_v52, %v6362_v31  ;;  %v6255_v13 = vadd.f32 %v6254_v61, %v6253_v12  ;;  %v9474_v21 = vrot.slane %v4636_v36, 5  ;;  %v4642_v58 = vrot.slane %v4640_v7, 4 }
 0x31b   : > { %v6365_v49 = vpop.f32.mrf.mxu0  ;;  %6794 = vmatmul.mubr.bf16.gmra.mxu0 %v5678_v46  ;;  %v6256_v18 = vpop.f32.mrf.mxu1  ;;  %v4601_v46 = vsel %vm7507_vm3, %v4596_v55, %v9360_v32  ;;  %v9479_v9 = vrot.slane %v4609_v27, 4  ;;  %v9481_v14 = vrot.slane %v4619_v25, 4  ;;  %v9483_v23 = vrot.slane %v4622_v51, 5 }
 0x31c   : > { %v9472_v43 = vadd.f32 %v6364_v8, %v6252_v38  ;;  %6797 = vmatprep.mubr.bf16.mxu0 %v5679_v4  ;;  %v4653_v4 = vrot.slane %v4651_v20, 4  ;;  %v4656_v50 = vrot.slane %v4654_v54, 5  ;;  %v5680_v7 = vcombine.low %v4543_v29, %v4553_v35 }
 0x31d   : > { %v6366_v31 = vpop.f32.mrf.mxu0  ;;  %v6257_v12 = vpop.f32.mrf.mxu1  ;;  %v5681_v52 = vcombine.low %v4567_v53, %v4577_v16  ;;  %v9486_v61 = vrot.slane %v4660_v57, 5  ;;  %v4666_v32 = vrot.slane %v4664_v33, 4  ;;  %v4633_v27 = vor.u32 %v4632_v42, %v4629_v47 }
 0x31e   : > { %v6367_v38 = vadd.f32 %v6366_v31, %v6365_v49  ;;  %v6258_v63 = vadd.f32 %v6257_v12, %v6256_v18  ;;  %v4643_v25 = vor.u32 %v4642_v58, %v9474_v21  ;;  %v4670_v51 = vshll.u32 %v7114_v60, 16 }
 0x31f   : > { %v6368_v6 = vpop.f32.mrf.mxu0  ;;  %v6259_v36 = vpop.f32.mrf.mxu1  ;;  %6750 = vmatmul.mubr.bf16.gmra.mxu1 %v8988_v30  ;;  %v10077_v8 = vshll.u32 %v9271_v19, 16  ;;  %v5682_v35 = vcombine.low %v4591_v15, %v4601_v46  ;;  %v4615_v53 = vsel %vm7507_vm3, %v9479_v9, %v9441_v40  ;;  %v4657_v20 = vor.u32 %v4656_v50, %v4653_v4  ;;  %v7115_v19 = vld [vmem:[%s7381_s12 + $0xa8] sm:$0xf]  ;;  %v7117_v9 = vld [vmem:[%s7381_s12 + $0xb4] sm:$0xf] }
 0x320   : > { %v9488_v55 = vadd.f32 %v6367_v38, %v6255_v13  ;;  %6753 = vmatprep.mubr.bf16.mxu1 %v8999_v2  ;;  %v4625_v2 = vsel %vm7507_vm3, %v9481_v14, %v9483_v23  ;;  %v4675_v54 = vshrl.u32 %v7115_v19, 16  ;;  %v4667_v15 = vor.u32 %v4666_v32, %v9486_v61  ;;  %v7118_v38 = vld [vmem:[%s7381_s12 + $0xb8] sm:$0xf] }
 0x321   : > { %v9495_v44 = vrot.slane %v10077_v8, 5  ;;  %v6369_v30 = vpop.f32.mrf.mxu0  ;;  %v6260_v29 = vpop.f32.mrf.mxu1  ;;  %v4678_v47 = vshll.u32 %v7115_v19, 16  ;;  %v4684_v40 = vshll.u32 %v7116_v48, 16  ;;  %v4688_v57 = vshrl.u32 %v7116_v48, 16  ;;  %v7119_v8 = vld [vmem:[%s7381_s12 + $0xb0] sm:$0x1] }
 0x322   : > { %v6370_v16 = vadd.f32 %v6369_v30, %v6368_v6  ;;  %v6261_v13 = vadd.f32 %v6260_v29, %v6259_v36  ;;  %v4634_v42 = vrot.slane %v4633_v27, 4  ;;  %v4644_v58 = vrot.slane %v4643_v25, 4 }
 0x323   : > { %v6371_v49 = vpop.f32.mrf.mxu0  ;;  %6798 = vmatmul.mubr.bf16.gmra.mxu0 %v5680_v7  ;;  %v6262_v18 = vpop.f32.mrf.mxu1  ;;  %v9510_v31 = vrot.slane %v4670_v51, 5  ;;  %v4699_v14 = vshrl.u32 %v7117_v9, 16  ;;  %v4702_v23 = vshll.u32 %v7117_v9, 16  ;;  %v4708_v4 = vshll.u32 %v7118_v38, 16 }
 0x324   : > { %v9508_v33 = vadd.f32 %v6370_v16, %v6258_v63  ;;  %6801 = vmatprep.mubr.bf16.mxu0 %v5681_v52  ;;  %v4712_v50 = vshrl.u32 %v7118_v38, 16  ;;  %v4658_v7 = vrot.slane %v4657_v20, 4  ;;  %v4677_v32 = vrot.slane %v4675_v54, 4 }
 0x325   : > { %v6372_v12 = vpop.f32.mrf.mxu0  ;;  %v6263_v46 = vpop.f32.mrf.mxu1  ;;  %v4668_v52 = vrot.slane %v4667_v15, 4  ;;  %v4680_v27 = vrot.slane %v4678_v47, 5  ;;  %v9515_v25 = vrot.slane %v4684_v40, 5  ;;  %v4690_v51 = vrot.slane %v4688_v57, 4 }
 0x326   : > { %v6373_v6 = vadd.f32 %v6372_v12, %v6371_v49  ;;  %v6264_v36 = vadd.f32 %v6263_v46, %v6262_v18  ;;  %v4694_v30 = vshll.u32 %v7119_v8, 16  ;;  %v5683_v16 = vcombine.low %v4615_v53, %v4625_v2 }
 0x327   : > { %v6374_v63 = vpop.f32.mrf.mxu0  ;;  %v6265_v60 = vpop.f32.mrf.mxu1  ;;  %6754 = vmatmul.mubr.bf16.gmra.mxu1 %v9021_v41  ;;  %v4639_v20 = vsel %vm7507_vm3, %v4634_v42, %v9474_v21  ;;  %v4701_v41 = vrot.slane %v4699_v14, 4  ;;  %v4704_v49 = vrot.slane %v4702_v23, 5  ;;  %v9524_v18 = vrot.slane %v4708_v4, 5  ;;  %v7120_v42 = vld [vmem:[%s7381_s12 + $0xc0] sm:$0xf] }
 0x328   : > { %v9518_v29 = vadd.f32 %v6373_v6, %v6261_v13  ;;  %6757 = vmatprep.mubr.bf16.mxu1 %v9044_v39  ;;  %v4714_v15 = vrot.slane %v4712_v50, 4  ;;  %v4649_v39 = vsel %vm7507_vm3, %v4644_v58, %v9495_v44  ;;  %v4663_v53 = vsel %vm7507_vm3, %v4658_v7, %v9486_v61  ;;  %v7121_v58 = vld [vmem:[%s7381_s12 + $0xc4] sm:$0xf]  ;;  %v7122_v4 = vld [vmem:[%s7381_s12 + $0xbc] sm:$0x1] }
 0x329   : > { %v6375_v19 = vpop.f32.mrf.mxu0  ;;  %v6266_v54 = vpop.f32.mrf.mxu1  ;;  %v4673_v13 = vsel %vm7507_vm3, %v4668_v52, %v9510_v31  ;;  %v4681_v40 = vor.u32 %v4680_v27, %v4677_v32  ;;  %v4691_v57 = vor.u32 %v4690_v51, %v9515_v25  ;;  %v4723_v12 = vshrl.u32 %v7120_v42, 16 }
 0x32a   : > { %v6376_v47 = vadd.f32 %v6375_v19, %v6374_v63  ;;  %v6267_v48 = vadd.f32 %v6266_v54, %v6265_v60  ;;  %v4726_v44 = vshll.u32 %v7120_v42, 16  ;;  %v4732_v9 = vshll.u32 %v7121_v58, 16 }
 0x32b   : > { %v6377_v21 = vpop.f32.mrf.mxu0  ;;  %6802 = vmatmul.mubr.bf16.gmra.mxu0 %v5682_v35  ;;  %v6268_v2 = vpop.f32.mrf.mxu1  ;;  %v4736_v61 = vshrl.u32 %v7121_v58, 16  ;;  %v4705_v23 = vor.u32 %v4704_v49, %v4701_v41  ;;  %v4715_v38 = vor.u32 %v4714_v15, %v9524_v18  ;;  %v4718_v50 = vshll.u32 %v7122_v4, 16 }
 0x32c   : > { %v9537_v46 = vadd.f32 %v6376_v47, %v6264_v36  ;;  %6805 = vmatprep.mubr.bf16.mxu0 %v5683_v16  ;;  %v4696_v31 = vrot.slane %v4694_v30, 5  ;;  %v5684_v32 = vcombine.low %v4639_v20, %v4649_v39  ;;  %v5685_v36 = vcombine.low %v4663_v53, %v4673_v13 }
 0x32d   : > { %v6378_v14 = vpop.f32.mrf.mxu0  ;;  %v6269_v35 = vpop.f32.mrf.mxu1  ;;  %v4682_v52 = vrot.slane %v4681_v40, 4  ;;  %v4692_v27 = vrot.slane %v4691_v57, 4  ;;  %v4725_v51 = vrot.slane %v4723_v12, 4  ;;  %v4728_v16 = vrot.slane %v4726_v44, 5 }
 0x32e   : > { %v6379_v6 = vadd.f32 %v6378_v14, %v6377_v21  ;;  %v6270_v7 = vadd.f32 %v6269_v35, %v6268_v2  ;;  %v4734_v19 = vrot.slane %v4732_v9, 5  ;;  %v4738_v54 = vrot.slane %v4736_v61, 4 }
 0x32f   : > { %v6380_v63 = vpop.f32.mrf.mxu0  ;;  %v6271_v60 = vpop.f32.mrf.mxu1  ;;  %6758 = vmatmul.mubr.bf16.gmra.mxu1 %v9067_v17  ;;  %v4706_v49 = vrot.slane %v4705_v23, 4  ;;  %v4716_v20 = vrot.slane %v4715_v38, 4  ;;  %v4720_v15 = vrot.slane %v4718_v50, 5  ;;  %v7123_v17 = vld [vmem:[%s7381_s12 + $0xc8] sm:$0x1]  ;;  %v4697_v13 = vsel %vm7507_vm3, %v4692_v27, %v4696_v31  ;;  %s5704_s12 = sshll.u32 %s7301_s17, 12 }
 0x330   : > { %v9543_v8 = vadd.f32 %v6379_v6, %v6267_v48  ;;  %6761 = vmatprep.mubr.bf16.mxu1 %v9076_v3  ;;  %v4742_v53 = vshll.u32 %v7123_v17, 16  ;;  %v4687_v48 = vsel %vm7507_vm3, %v4682_v52, %v9515_v25  ;;  %v4729_v40 = vor.u32 %v4728_v16, %v4725_v51  ;;  %s9912_s18 = scalar_lea.hbm %s9970_s10, %s5704_s12  ;;  %s7150_s17 = scalar_lea.vmem %s9914_s29, 4096 }
 0x331   : > { %v6381_v30 = vpop.f32.mrf.mxu0  ;;  %v6272_v41 = vpop.f32.mrf.mxu1  ;;  %v4739_v57 = vor.u32 %v4738_v54, %v4734_v19  ;;  %v4711_v44 = vsel %vm7507_vm3, %v4706_v49, %v9524_v18  ;;  %v4721_v58 = vsel %vm7507_vm3, %v4716_v20, %v4720_v15  ;;  %v5686_v23 = vcombine.low %v4687_v48, %v4697_v13  ;;  %p7151_p8 = scmp.ne.s32.totalorder %s9914_s29, %s7150_s17  ;;  %p7158_p12 = scmp.lt.s32.totalorder %s7156_s25, %s7150_s17 }
 0x332   : > { %v6382_v47 = vadd.f32 %v6381_v30, %v6380_v63  ;;  %v6273_v39 = vadd.f32 %v6272_v41, %v6271_v60  ;;  %v4744_v25 = vrot.slane %v4742_v53, 5  ;;  %v5687_v4 = vcombine.low %v4711_v44, %v4721_v58  ;;  %v10078_v41 = vld [vmem:[#allocation22_spill] sm:$0xff] }
 0x333   : > { %v6383_v21 = vpop.f32.mrf.mxu0  ;;  %6806 = vmatmul.mubr.bf16.gmra.mxu0 %v5684_v32  ;;  %v6274_v2 = vpop.f32.mrf.mxu1  ;;  %v4730_v50 = vrot.slane %v4729_v40, 4  ;;  %v4740_v31 = vrot.slane %v4739_v57, 4  ;;  %p7152_p9 = pnand %p7151_p8, %p7318_p5  ;;  %p7159_p13 = por %p7158_p12, %p7157_p11 }
 0x334   : > { %v9550_v3 = vadd.f32 %v6382_v47, %v6270_v7  ;;  %6809 = vmatprep.mubr.bf16.mxu0 %v5685_v36 }
 0x335   : > { %v6384_v42 = vpop.f32.mrf.mxu0  ;;  %v6275_v12 = vpop.f32.mrf.mxu1  ;;  %v4745_v52 = vsel %vm7507_vm3, %v4740_v31, %v4744_v25  ;;  %p7153_p10 = pneg %p7152_p9 }
 0x336   : > { %v6385_v9 = vadd.f32 %v6384_v42, %v6383_v21  ;;  %v6276_v61 = vadd.f32 %v6275_v12, %v6274_v2 }
 0x337   : > { %v6386_v14 = vpop.f32.mrf.mxu0  ;;  %v6277_v35 = vpop.f32.mrf.mxu1  ;;  %6762 = vmatmul.mubr.bf16.gmra.mxu1 %v9093_v28  ;;  %v4735_v28 = vsel %vm7507_vm3, %v4730_v50, %v4734_v19  ;;  %p7160_p0 = pnand %p7159_p13, %p7153_p10 }
 0x338   : > { %v9560_v38 = vadd.f32 %v6385_v9, %v6273_v39  ;;  %6765 = vmatprep.mubr.bf16.mxu1 %v9103_v56  ;;  %v5688_v49 = vcombine.low %v4735_v28, %v4745_v52 }
 0x339   : > { %v6387_v6 = vpop.f32.mrf.mxu0  ;;  %v6278_v18 = vpop.f32.mrf.mxu1 }
 0x33a   : > { %v6388_v7 = vadd.f32 %v6387_v6, %v6386_v14  ;;  %v6279_v32 = vadd.f32 %v6278_v18, %v6277_v35 }
 0x33b   : > { %v6389_v63 = vpop.f32.mrf.mxu0  ;;  %6810 = vmatmul.mubr.bf16.gmra.mxu0 %v5686_v23  ;;  %v6280_v60 = vpop.f32.mrf.mxu1 }
 0x33c   : > { %v9563_v36 = vadd.f32 %v6388_v7, %v6276_v61  ;;  %6813 = vmatprep.mubr.bf16.mxu0 %v5687_v4 }
 0x33d   : > { %v6390_v56 = vpop.f32.mrf.mxu0  ;;  %v6281_v27 = vpop.f32.mrf.mxu1 }
 0x33e   : > { %v6391_v51 = vadd.f32 %v6390_v56, %v6389_v63  ;;  %v6282_v16 = vadd.f32 %v6281_v27, %v6280_v60 }
 0x33f   : > { %v6392_v54 = vpop.f32.mrf.mxu0  ;;  %v6283_v30 = vpop.f32.mrf.mxu1  ;;  %6766 = vmatmul.mubr.bf16.gmra.mxu1 %v10078_v41 }
 0x340   : > { %v9570_v20 = vadd.f32 %v6391_v51, %v6279_v32 }
 0x341   : > { %v6393_v15 = vpop.f32.mrf.mxu0  ;;  %v6284_v47 = vpop.f32.mrf.mxu1 }
 0x342   : > { %v6394_v39 = vadd.f32 %v6393_v15, %v6392_v54  ;;  %v6285_v17 = vadd.f32 %v6284_v47, %v6283_v30 }
 0x343   : > { %v6395_v53 = vpop.f32.mrf.mxu0  ;;  %6814 = vmatmul.mubr.bf16.gmra.mxu0 %v5688_v49  ;;  %v6286_v19 = vpop.f32.mrf.mxu1 }
 0x344   : > { %v9572_v22 = vadd.f32 %v6394_v39, %v6282_v16 }
 0x345   : > { %v6396_v21 = vpop.f32.mrf.mxu0  ;;  %v6287_v2 = vpop.f32.mrf.mxu1 }
 0x346   : > { %v6397_v48 = vadd.f32 %v6396_v21, %v6395_v53  ;;  %v6288_v13 = vadd.f32 %v6287_v2, %v6286_v19 }
 0x347   : > { %v6398_v40 = vpop.f32.mrf.mxu0  ;;  %v6417_v57 = vpop.f32.mrf.mxu1 }
 0x348   : > { %v9574_v42 = vadd.f32 %v6397_v48, %v6285_v17 }
 0x349   : > { %v6399_v12 = vpop.f32.mrf.mxu0  ;;  %v6418_v44 = vpop.f32.mrf.mxu1 }
 0x34a   : > { %v6400_v58 = vadd.f32 %v6399_v12, %v6398_v40  ;;  %v6419_v9 = vadd.f32 %v6418_v44, %v6417_v57 }
 0x34b   : > { %v6529_v61 = vpop.f32.mrf.mxu0  ;;  %v6420_v25 = vpop.f32.mrf.mxu1 }
 0x34c   : > { %v9576_v14 = vadd.f32 %v6400_v58, %v6288_v13  ;;  %v3833_v35 = vadd.f32 %v6419_v9, %v9214_v26 }
 0x34d   : > { %v6530_v23 = vpop.f32.mrf.mxu0  ;;  %v6421_v4 = vpop.f32.mrf.mxu1 }
 0x34e   : > { %v6531_v50 = vadd.f32 %v6530_v23, %v6529_v61  ;;  %v6422_v31 = vadd.f32 %v6421_v4, %v6420_v25 }
 0x34f   : > { %v6532_v6 = vpop.f32.mrf.mxu0  ;;  %v6423_v18 = vpop.f32.mrf.mxu1 }
 0x350   : > { %v3836_v7 = vadd.f32 %v6422_v31, %v9220_v45  ;;  %v9580_v32 = vadd.f32 %v6531_v50, %v3833_v35  ;;  %v10079_v31 = vld [vmem:[#allocation18_spill] sm:$0xff] }
 0x351   : > { %v6533_v63 = vpop.f32.mrf.mxu0  ;;  %v6424_v60 = vpop.f32.mrf.mxu1 }
 0x352   : > { %v6534_v28 = vadd.f32 %v6533_v63, %v6532_v6  ;;  %v6425_v52 = vadd.f32 %v6424_v60, %v6423_v18 }
 0x353   : > { %v6535_v56 = vpop.f32.mrf.mxu0  ;;  %v6426_v27 = vpop.f32.mrf.mxu1 }
 0x354   : > { %v3841_v51 = vadd.f32 %v6425_v52, %v9230_v59  ;;  %v9583_v16 = vadd.f32 %v6534_v28, %v3836_v7 }
 0x355   : > { %v6536_v26 = vpop.f32.mrf.mxu0  ;;  %v6427_v54 = vpop.f32.mrf.mxu1 }
 0x356   : > { %v6537_v30 = vadd.f32 %v6536_v26, %v6535_v56  ;;  %v6428_v41 = vadd.f32 %v6427_v54, %v6426_v27  ;;  %v10080_v56 = vld [vmem:[#allocation21_spill] sm:$0xff] }
 0x357   : > { %v6538_v49 = vpop.f32.mrf.mxu0  ;;  %v6429_v15 = vpop.f32.mrf.mxu1 }
 0x358   : > { %v3844_v45 = vadd.f32 %v6428_v41, %v9236_v5  ;;  %v9586_v47 = vadd.f32 %v6537_v30, %v3841_v51 }
 0x359   : > { %v6539_v39 = vpop.f32.mrf.mxu0  ;;  %v6430_v17 = vpop.f32.mrf.mxu1 }
 0x35a   : > { %v6540_v53 = vadd.f32 %v6539_v39, %v6538_v49  ;;  %v6431_v19 = vadd.f32 %v6430_v17, %v6429_v15  ;;  %v10081_v15 = vld [vmem:[#allocation19_spill] sm:$0xff] }
 0x35b   : > { %v6541_v21 = vpop.f32.mrf.mxu0  ;;  %v6432_v2 = vpop.f32.mrf.mxu1 }
 0x35c   : > { %v3849_v59 = vadd.f32 %v6431_v19, %v9240_v37  ;;  %v9589_v48 = vadd.f32 %v6540_v53, %v3844_v45 }
 0x35d   : > { %v6542_v13 = vpop.f32.mrf.mxu0  ;;  %v6433_v40 = vpop.f32.mrf.mxu1 }
 0x35e   : > { %v6543_v57 = vadd.f32 %v6542_v13, %v6541_v21  ;;  %v6434_v12 = vadd.f32 %v6433_v40, %v6432_v2  ;;  %v10082_v13 = vld [vmem:[#allocation24_spill] sm:$0xff] }
 0x35f   : > { %v6544_v44 = vpop.f32.mrf.mxu0  ;;  %v6435_v58 = vpop.f32.mrf.mxu1 }
 0x360   : > { %v3852_v5 = vadd.f32 %v6434_v12, %v9246_v1  ;;  %v9592_v9 = vadd.f32 %v6543_v57, %v3849_v59 }
 0x361   : > { %v6545_v61 = vpop.f32.mrf.mxu0  ;;  %v6436_v25 = vpop.f32.mrf.mxu1 }
 0x362   : > { %v6546_v35 = vadd.f32 %v6545_v61, %v6544_v44  ;;  %v6437_v23 = vadd.f32 %v6436_v25, %v6435_v58 }
 0x363   : > { %v6547_v4 = vpop.f32.mrf.mxu0  ;;  %v6438_v50 = vpop.f32.mrf.mxu1 }
 0x364   : > { %v3857_v37 = vadd.f32 %v6437_v23, %v10079_v31  ;;  %v9595_v6 = vadd.f32 %v6546_v35, %v3852_v5 }
 0x365   : > { %v6548_v18 = vpop.f32.mrf.mxu0  ;;  %v6439_v7 = vpop.f32.mrf.mxu1 }
 0x366   : > { %v6549_v63 = vadd.f32 %v6548_v18, %v6547_v4  ;;  %v6440_v60 = vadd.f32 %v6439_v7, %v6438_v50 }
 0x367   : > { %v6550_v28 = vpop.f32.mrf.mxu0  ;;  %v6441_v52 = vpop.f32.mrf.mxu1 }
 0x368   : > { %v3860_v1 = vadd.f32 %v6440_v60, %v10080_v56  ;;  %v9598_v27 = vadd.f32 %v6549_v63, %v3857_v37 }
 0x369   : > { %v6551_v51 = vpop.f32.mrf.mxu0  ;;  %v6442_v26 = vpop.f32.mrf.mxu1 }
 0x36a   : > { %v6552_v54 = vadd.f32 %v6551_v51, %v6550_v28  ;;  %v6443_v30 = vadd.f32 %v6442_v26, %v6441_v52 }
 0x36b   : > { %v6553_v41 = vpop.f32.mrf.mxu0  ;;  %v6444_v49 = vpop.f32.mrf.mxu1 }
 0x36c   : > { %v3865_v45 = vadd.f32 %v6443_v30, %v10081_v15  ;;  %v9601_v39 = vadd.f32 %v6552_v54, %v3860_v1 }
 0x36d   : > { %v6554_v17 = vpop.f32.mrf.mxu0  ;;  %v6445_v53 = vpop.f32.mrf.mxu1 }
 0x36e   : > { %v6555_v19 = vadd.f32 %v6554_v17, %v6553_v41  ;;  %v6446_v21 = vadd.f32 %v6445_v53, %v6444_v49  ;;  %v10083_v53 = vld [vmem:[#allocation14_spill] sm:$0xff] }
 0x36f   : > { %v6556_v2 = vpop.f32.mrf.mxu0  ;;  %v6447_v59 = vpop.f32.mrf.mxu1 }
 0x370   : > { %v3868_v40 = vadd.f32 %v6446_v21, %v10082_v13  ;;  %v9604_v57 = vadd.f32 %v6555_v19, %v3865_v45 }
 0x371   : > { %v6557_v12 = vpop.f32.mrf.mxu0  ;;  %v6448_v44 = vpop.f32.mrf.mxu1 }
 0x372   : > { %v6558_v58 = vadd.f32 %v6557_v12, %v6556_v2  ;;  %v6449_v5 = vadd.f32 %v6448_v44, %v6447_v59  ;;  %v10084_v44 = vld [vmem:[#allocation25_spill] sm:$0xff] }
 0x373   : > { %v6559_v61 = vpop.f32.mrf.mxu0  ;;  %v6450_v25 = vpop.f32.mrf.mxu1 }
 0x374   : > { %v3873_v35 = vadd.f32 %v6449_v5, %v9320_v34  ;;  %v9607_v23 = vadd.f32 %v6558_v58, %v3868_v40 }
 0x375   : > { %v6560_v4 = vpop.f32.mrf.mxu0  ;;  %v6451_v50 = vpop.f32.mrf.mxu1 }
 0x376   : > { %v6561_v31 = vadd.f32 %v6560_v4, %v6559_v61  ;;  %v6452_v37 = vadd.f32 %v6451_v50, %v6450_v25 }
 0x377   : > { %v6562_v18 = vpop.f32.mrf.mxu0  ;;  %v6453_v7 = vpop.f32.mrf.mxu1 }
 0x378   : > { %v3876_v63 = vadd.f32 %v6452_v37, %v9331_v0  ;;  %v9610_v60 = vadd.f32 %v6561_v31, %v3873_v35  ;;  %v10085_v31 = vld [vmem:[#allocation26_spill] sm:$0xff] }
 0x379   : > { %v6563_v28 = vpop.f32.mrf.mxu0  ;;  %v6454_v52 = vpop.f32.mrf.mxu1 }
 0x37a   : > { %v6564_v56 = vadd.f32 %v6563_v28, %v6562_v18  ;;  %v6455_v1 = vadd.f32 %v6454_v52, %v6453_v7 }
 0x37b   : > { %v6565_v51 = vpop.f32.mrf.mxu0  ;;  %v6456_v26 = vpop.f32.mrf.mxu1 }
 0x37c   : > { %v3881_v34 = vadd.f32 %v6455_v1, %v9350_v10  ;;  %v9613_v54 = vadd.f32 %v6564_v56, %v3876_v63 }
 0x37d   : > { %v6566_v30 = vpop.f32.mrf.mxu0  ;;  %v6457_v41 = vpop.f32.mrf.mxu1 }
 0x37e   : > { %v6567_v49 = vadd.f32 %v6566_v30, %v6565_v51  ;;  %v6458_v15 = vadd.f32 %v6457_v41, %v6456_v26 }
 0x37f   : > { %v6568_v45 = vpop.f32.mrf.mxu0  ;;  %v6459_v17 = vpop.f32.mrf.mxu1 }
 0x380   : > { %v3884_v0 = vadd.f32 %v6458_v15, %v10083_v53  ;;  %v9616_v19 = vadd.f32 %v6567_v49, %v3881_v34 }
 0x381   : > { %v6569_v21 = vpop.f32.mrf.mxu0  ;;  %v6460_v2 = vpop.f32.mrf.mxu1 }
 0x382   : > { %v6570_v59 = vadd.f32 %v6569_v21, %v6568_v45  ;;  %v6461_v13 = vadd.f32 %v6460_v2, %v6459_v17 }
 0x383   : > { %v6571_v40 = vpop.f32.mrf.mxu0  ;;  %v6462_v12 = vpop.f32.mrf.mxu1 }
 0x384   : > { %v3889_v10 = vadd.f32 %v6461_v13, %v10084_v44  ;;  %v9619_v58 = vadd.f32 %v6570_v59, %v3884_v0 }
 0x385   : > { %v6572_v5 = vpop.f32.mrf.mxu0  ;;  %v6463_v61 = vpop.f32.mrf.mxu1 }
 0x386   : > { %v6573_v25 = vadd.f32 %v6572_v5, %v6571_v40  ;;  %v6464_v35 = vadd.f32 %v6463_v61, %v6462_v12 }
 0x387   : > { %v6574_v4 = vpop.f32.mrf.mxu0  ;;  %v6465_v50 = vpop.f32.mrf.mxu1 }
 0x388   : > { %v3892_v37 = vadd.f32 %v6464_v35, %v10085_v31  ;;  %v9622_v18 = vadd.f32 %v6573_v25, %v3889_v10 }
 0x389   : > { %v6575_v7 = vpop.f32.mrf.mxu0  ;;  %v6466_v63 = vpop.f32.mrf.mxu1 }
 0x38a   : > { %v6576_v28 = vadd.f32 %v6575_v7, %v6574_v4  ;;  %v6467_v52 = vadd.f32 %v6466_v63, %v6465_v50 }
 0x38b   : > { %v6577_v56 = vpop.f32.mrf.mxu0  ;;  %v6468_v1 = vpop.f32.mrf.mxu1 }
 0x38c   : > { %v3897_v51 = vadd.f32 %v6467_v52, %v9416_v11  ;;  %v9625_v26 = vadd.f32 %v6576_v28, %v3892_v37 }
 0x38d   : > { %v6578_v34 = vpop.f32.mrf.mxu0  ;;  %v6469_v30 = vpop.f32.mrf.mxu1 }
 0x38e   : > { %v6579_v41 = vadd.f32 %v6578_v34, %v6577_v56  ;;  %v6470_v49 = vadd.f32 %v6469_v30, %v6468_v1 }
 0x38f   : > { %v6580_v15 = vpop.f32.mrf.mxu0  ;;  %v6471_v45 = vpop.f32.mrf.mxu1 }
 0x390   : > { %v3900_v17 = vadd.f32 %v6470_v49, %v9437_v24  ;;  %v9628_v53 = vadd.f32 %v6579_v41, %v3897_v51 }
 0x391   : > { %v6581_v0 = vpop.f32.mrf.mxu0  ;;  %v6472_v21 = vpop.f32.mrf.mxu1 }
 0x392   : > { %v6582_v2 = vadd.f32 %v6581_v0, %v6580_v15  ;;  %v6473_v59 = vadd.f32 %v6472_v21, %v6471_v45 }
 0x393   : > { %v6583_v13 = vpop.f32.mrf.mxu0  ;;  %v6474_v40 = vpop.f32.mrf.mxu1 }
 0x394   : > { %v3905_v11 = vadd.f32 %v6473_v59, %v9461_v62  ;;  %v9631_v12 = vadd.f32 %v6582_v2, %v3900_v17 }
 0x395   : > { %v6584_v44 = vpop.f32.mrf.mxu0  ;;  %v6475_v10 = vpop.f32.mrf.mxu1 }
 0x396   : > { %v6585_v5 = vadd.f32 %v6584_v44, %v6583_v13  ;;  %v6476_v61 = vadd.f32 %v6475_v10, %v6474_v40 }
 0x397   : > { %v6586_v25 = vpop.f32.mrf.mxu0  ;;  %v6477_v35 = vpop.f32.mrf.mxu1 }
 0x398   : > { %v3908_v24 = vadd.f32 %v6476_v61, %v9472_v43  ;;  %v9634_v4 = vadd.f32 %v6585_v5, %v3905_v11 }
 0x399   : > { %v6587_v50 = vpop.f32.mrf.mxu0  ;;  %v6478_v31 = vpop.f32.mrf.mxu1 }
 0x39a   : > { %v6588_v37 = vadd.f32 %v6587_v50, %v6586_v25  ;;  %v6479_v7 = vadd.f32 %v6478_v31, %v6477_v35 }
 0x39b   : > { %v6589_v63 = vpop.f32.mrf.mxu0  ;;  %v6480_v28 = vpop.f32.mrf.mxu1 }
 0x39c   : > { %v3913_v62 = vadd.f32 %v6479_v7, %v9488_v55  ;;  %v9637_v52 = vadd.f32 %v6588_v37, %v3908_v24 }
 0x39d   : > { %v6590_v56 = vpop.f32.mrf.mxu0  ;;  %v6481_v1 = vpop.f32.mrf.mxu1 }
 0x39e   : > { %v6591_v51 = vadd.f32 %v6590_v56, %v6589_v63  ;;  %v6482_v34 = vadd.f32 %v6481_v1, %v6480_v28 }
 0x39f   : > { %v6592_v30 = vpop.f32.mrf.mxu0  ;;  %v6483_v41 = vpop.f32.mrf.mxu1 }
 0x3a0   : > { %v3916_v43 = vadd.f32 %v6482_v34, %v9508_v33  ;;  %v9640_v49 = vadd.f32 %v6591_v51, %v3913_v62 }
 0x3a1   : > { %v6593_v15 = vpop.f32.mrf.mxu0  ;;  %v6484_v45 = vpop.f32.mrf.mxu1 }
 0x3a2   : > { %v6594_v17 = vadd.f32 %v6593_v15, %v6592_v30  ;;  %v6485_v0 = vadd.f32 %v6484_v45, %v6483_v41 }
 0x3a3   : > { %v6595_v21 = vpop.f32.mrf.mxu0  ;;  %v6486_v2 = vpop.f32.mrf.mxu1 }
 0x3a4   : > { %v3921_v55 = vadd.f32 %v6485_v0, %v9518_v29  ;;  %v9643_v59 = vadd.f32 %v6594_v17, %v3916_v43 }
 0x3a5   : > { %v6596_v13 = vpop.f32.mrf.mxu0  ;;  %v6487_v40 = vpop.f32.mrf.mxu1 }
 0x3a6   : > { %v6597_v11 = vadd.f32 %v6596_v13, %v6595_v21  ;;  %v6488_v44 = vadd.f32 %v6487_v40, %v6486_v2 }
 0x3a7   : > { %v6598_v10 = vpop.f32.mrf.mxu0  ;;  %v6489_v5 = vpop.f32.mrf.mxu1 }
 0x3a8   : > { %v3924_v33 = vadd.f32 %v6488_v44, %v9537_v46  ;;  %v9646_v61 = vadd.f32 %v6597_v11, %v3921_v55 }
 0x3a9   : > { %v6599_v25 = vpop.f32.mrf.mxu0  ;;  %v6490_v35 = vpop.f32.mrf.mxu1 }
 0x3aa   : > { %v6600_v24 = vadd.f32 %v6599_v25, %v6598_v10  ;;  %v6491_v50 = vadd.f32 %v6490_v35, %v6489_v5 }
 0x3ab   : > { %v6601_v31 = vpop.f32.mrf.mxu0  ;;  %v6492_v37 = vpop.f32.mrf.mxu1 }
 0x3ac   : > { %v3929_v29 = vadd.f32 %v6491_v50, %v9543_v8  ;;  %v9649_v7 = vadd.f32 %v6600_v24, %v3924_v33 }
 0x3ad   : > { %v6602_v63 = vpop.f32.mrf.mxu0  ;;  %v6493_v28 = vpop.f32.mrf.mxu1 }
 0x3ae   : > { %v6603_v62 = vadd.f32 %v6602_v63, %v6601_v31  ;;  %v6494_v56 = vadd.f32 %v6493_v28, %v6492_v37 }
 0x3af   : > { %v6604_v1 = vpop.f32.mrf.mxu0  ;;  %v6495_v51 = vpop.f32.mrf.mxu1 }
 0x3b0   : > { %v3932_v46 = vadd.f32 %v6494_v56, %v9550_v3  ;;  %v9652_v34 = vadd.f32 %v6603_v62, %v3929_v29 }
 0x3b1   : > { %v6605_v30 = vpop.f32.mrf.mxu0  ;;  %v6496_v41 = vpop.f32.mrf.mxu1 }
 0x3b2   : > { %v6606_v43 = vadd.f32 %v6605_v30, %v6604_v1  ;;  %v6497_v15 = vadd.f32 %v6496_v41, %v6495_v51 }
 0x3b3   : > { %v6607_v45 = vpop.f32.mrf.mxu0  ;;  %v6498_v17 = vpop.f32.mrf.mxu1 }
 0x3b4   : > { %v3937_v8 = vadd.f32 %v6497_v15, %v9560_v38  ;;  %v9655_v0 = vadd.f32 %v6606_v43, %v3932_v46 }
 0x3b5   : > { %v6608_v21 = vpop.f32.mrf.mxu0  ;;  %v6499_v2 = vpop.f32.mrf.mxu1 }
 0x3b6   : > { %v6609_v55 = vadd.f32 %v6608_v21, %v6607_v45  ;;  %v6500_v13 = vadd.f32 %v6499_v2, %v6498_v17  ;;  %v9685_v17 = vld [vmem:[%s9965_s5] ss:$0 sm:$0xff] }
 0x3b7   : > { %v6610_v40 = vpop.f32.mrf.mxu0  ;;  %v6501_v11 = vpop.f32.mrf.mxu1  ;;  %v9693_v2 = vld [vmem:[%s9966_s6] ss:$0 sm:$0xff] }
 0x3b8   : > { %v3940_v3 = vadd.f32 %v6500_v13, %v9563_v36  ;;  %v9658_v44 = vadd.f32 %v6609_v55, %v3937_v8  ;;  %v9698_v55 = vld [vmem:[%s9968_s8] ss:$0 sm:$0xff] }
 0x3b9   : > { %v6611_v10 = vpop.f32.mrf.mxu0  ;;  %v6502_v5 = vpop.f32.mrf.mxu1 }
 0x3ba   : > { %v6612_v33 = vadd.f32 %v6611_v10, %v6610_v40  ;;  %v6503_v25 = vadd.f32 %v6502_v5, %v6501_v11 }
 0x3bb   : > { %v6613_v35 = vpop.f32.mrf.mxu0  ;;  %v6504_v24 = vpop.f32.mrf.mxu1 }
 0x3bc   : > { %v3945_v38 = vadd.f32 %v6503_v25, %v9570_v20  ;;  %v9661_v50 = vadd.f32 %v6612_v33, %v3940_v3  ;;  %v9706_v3 = vld [vmem:[%s9969_s9] ss:$0 sm:$0xff] }
 0x3bd   : > { %v6614_v31 = vpop.f32.mrf.mxu0  ;;  %v6505_v37 = vpop.f32.mrf.mxu1 }
 0x3be   : > { %v6615_v29 = vadd.f32 %v6614_v31, %v6613_v35  ;;  %v6506_v63 = vadd.f32 %v6505_v37, %v6504_v24 }
 0x3bf   : > { %v6616_v28 = vpop.f32.mrf.mxu0  ;;  %v9663_v62 = vpop.f32.mrf.mxu1 }
 0x3c0   : > { %v3948_v36 = vadd.f32 %v6506_v63, %v9572_v22  ;;  %v9666_v56 = vadd.f32 %v6615_v29, %v3945_v38 }
 0x3c1   : > { %v6617_v1 = vpop.f32.mrf.mxu0  ;;  %v9668_v51 = vpop.f32.mrf.mxu1 }
 0x3c2   : > { %v6618_v46 = vadd.f32 %v6617_v1, %v6616_v28 }
 0x3c3   : > { %v9670_v30 = vpop.f32.mrf.mxu0  ;;  %v9672_v20 = vpop.f32.mrf.mxu1 }
 0x3c4   : > { %v9674_v41 = vadd.f32 %v6618_v46, %v3948_v36 }
 0x3c5   : > { %v9676_v43 = vpop.f32.mrf.mxu0  ;;  %v9678_v15 = vpop.f32.mrf.mxu1 }
 0x3c7   : > { %v9680_v45 = vpop.f32.mrf.mxu0  ;;  %v6739_v22 = vpop.f32.mrf.mxu1 }
 0x3c8   : > { %v4163_v8 = vadd.f32 %v6739_v22, %v9586_v47 }
 0x3c9   : > { %v9688_v21 = vpop.f32.mrf.mxu0  ;;  %v4154_v13 = vpop.f32.mrf.mxu1 }
 0x3ca   : > { %v4290_v40 = vmul.f32 %v9685_v17, %v4163_v8  ;;  %v4155_v11 = vadd.f32 %v4154_v13, %v9580_v32 }
 0x3cb   : > { %v6787_v47 = vpop.f32.mrf.mxu0  ;;  %v6740_v10 = vpop.f32.mrf.mxu1 }
 0x3cc   : > { %v4329_v5 = vadd.f32 %v9693_v2, %v4290_v40  ;;  %v5044_v33 = vmul.f32 %v6787_v47, %v9698_v55  ;;  %v4288_v25 = vmul.f32 %v9685_v17, %v4155_v11  ;;  %v4166_v35 = vadd.f32 %v6740_v10, %v9589_v48 }
 0x3cd   : > { %v4908_v24 = vpop.f32.mrf.mxu0  ;;  %v4157_v38 = vpop.f32.mrf.mxu1 }
 0x3ce   : > { %v5083_v32 = vadd.f32 %v9706_v3, %v5044_v33  ;;  %v4327_v31 = vadd.f32 %v9693_v2, %v4288_v25  ;;  %v5042_v37 = vmul.f32 %v9698_v55, %v4908_v24  ;;  %v4291_v29 = vmul.f32 %v9685_v17, %v4166_v35 }
 0x3cf   : > { %v6788_v63 = vpop.f32.mrf.mxu0  ;;  %v4158_v28 = vadd.f32 %v4157_v38, %v9583_v16  ;;  %v6743_v36 = vpop.f32.mrf.mxu1 }
 0x3d0   : > { %v5115_v1 = vadd.f32 %v5083_v32, %v4329_v5  ;;  %v5081_v46 = vadd.f32 %v9706_v3, %v5042_v37  ;;  %v4330_v48 = vadd.f32 %v9693_v2, %v4291_v29  ;;  %v5045_v22 = vmul.f32 %v6788_v63, %v9698_v55 }
 0x3d1   : > { %v4289_v8 = vmul.f32 %v9685_v17, %v4158_v28  ;;  %v4911_v13 = vpop.f32.mrf.mxu0  ;;  %v4179_v40 = vadd.f32 %v6743_v36, %v9598_v27  ;;  %v4170_v11 = vpop.f32.mrf.mxu1 }
 0x3d2   : > { %v5147_v47 = vmax.f32 %v5115_v1, 0.0  ;;  %v5113_v10 = vadd.f32 %v5081_v46, %v4327_v31  ;;  %v5084_v33 = vadd.f32 %v9706_v3, %v5045_v22  ;;  %v5043_v16 = vmul.f32 %v9698_v55, %v4911_v13 }
 0x3d3   : > { %v4328_v5 = vadd.f32 %v9693_v2, %v4289_v8  ;;  %v4294_v25 = vmul.f32 %v9685_v17, %v4179_v40  ;;  %v6791_v35 = vpop.f32.mrf.mxu0  ;;  %v4171_v24 = vadd.f32 %v4170_v11, %v9592_v9  ;;  %v6744_v38 = vpop.f32.mrf.mxu1 }
 0x3d4   : > { %5179 = vst [vmem:[%s9729_s28 + $0x10] sm:$0xff] %v5147_v47  ;;  %v5145_v27 = vmax.f32 %v5113_v10, 0.0  ;;  %v5116_v32 = vadd.f32 %v5084_v33, %v4330_v48  ;;  %v5082_v31 = vadd.f32 %v9706_v3, %v5043_v16  ;;  %v5048_v37 = vmul.f32 %v6791_v35, %v9698_v55 }
 0x3d5   : > { %v4333_v29 = vadd.f32 %v9693_v2, %v4294_v25  ;;  %v4292_v63 = vmul.f32 %v9685_v17, %v4171_v24  ;;  %v4924_v28 = vpop.f32.mrf.mxu0  ;;  %v4182_v9 = vadd.f32 %v6744_v38, %v9601_v39  ;;  %v4173_v36 = vpop.f32.mrf.mxu1 }
 0x3d6   : > { %5177 = vst [vmem:[%s9729_s28] sm:$0xff] %v5145_v27  ;;  %v5148_v1 = vmax.f32 %v5116_v32, 0.0  ;;  %v5114_v46 = vadd.f32 %v5082_v31, %v4328_v5  ;;  %v5087_v22 = vadd.f32 %v9706_v3, %v5048_v37  ;;  %v5046_v48 = vmul.f32 %v9698_v55, %v4924_v28 }
 0x3d7   : > { %v4331_v8 = vadd.f32 %v9693_v2, %v4292_v63  ;;  %v4295_v13 = vmul.f32 %v9685_v17, %v4182_v9  ;;  %v6792_v40 = vpop.f32.mrf.mxu0  ;;  %v4174_v11 = vadd.f32 %v4173_v36, %v9595_v6  ;;  %v6747_v47 = vpop.f32.mrf.mxu1 }
 0x3d8   : > { %5180 = vst [vmem:[%s9729_s28 + $0x18] sm:$0xff] %v5148_v1  ;;  %v5146_v10 = vmax.f32 %v5114_v46, 0.0  ;;  %v5119_v39 = vadd.f32 %v5087_v22, %v4333_v29  ;;  %v5085_v33 = vadd.f32 %v9706_v3, %v5046_v48  ;;  %v5049_v16 = vmul.f32 %v6792_v40, %v9698_v55 }
 0x3d9   : > { %v4334_v5 = vadd.f32 %v9693_v2, %v4295_v13  ;;  %v4293_v25 = vmul.f32 %v9685_v17, %v4174_v11  ;;  %v4927_v35 = vpop.f32.mrf.mxu0  ;;  %v4195_v24 = vadd.f32 %v6747_v47, %v9610_v60  ;;  %v4186_v38 = vpop.f32.mrf.mxu1 }
 0x3da   : > { %5178 = vst [vmem:[%s9729_s28 + $0x8] sm:$0xff] %v5146_v10  ;;  %v5151_v27 = vmax.f32 %v5119_v39, 0.0  ;;  %v5117_v6 = vadd.f32 %v5085_v33, %v4331_v8  ;;  %v5088_v32 = vadd.f32 %v9706_v3, %v5049_v16  ;;  %v5047_v31 = vmul.f32 %v9698_v55, %v4927_v35 }
 0x3db   : > { %v4332_v37 = vadd.f32 %v9693_v2, %v4293_v25  ;;  %v4298_v29 = vmul.f32 %v9685_v17, %v4195_v24  ;;  %v6795_v63 = vpop.f32.mrf.mxu0  ;;  %v4187_v28 = vadd.f32 %v4186_v38, %v9604_v57  ;;  %v6748_v9 = vpop.f32.mrf.mxu1 }
 0x3dc   : > { %5183 = vst [vmem:[%s9729_s28 + $0x30] sm:$0xff] %v5151_v27  ;;  %v5149_v36 = vmax.f32 %v5117_v6, 0.0  ;;  %v5120_v60 = vadd.f32 %v5088_v32, %v4334_v5  ;;  %v5086_v1 = vadd.f32 %v9706_v3, %v5047_v31  ;;  %v5052_v46 = vmul.f32 %v6795_v63, %v9698_v55 }
 0x3dd   : > { %v4337_v22 = vadd.f32 %v9693_v2, %v4298_v29  ;;  %v4296_v48 = vmul.f32 %v9685_v17, %v4187_v28  ;;  %v4940_v8 = vpop.f32.mrf.mxu0  ;;  %v4198_v13 = vadd.f32 %v6748_v9, %v9613_v54  ;;  %v4189_v40 = vpop.f32.mrf.mxu1 }
 0x3de   : > { %5181 = vst [vmem:[%s9729_s28 + $0x20] sm:$0xff] %v5149_v36  ;;  %v5152_v11 = vmax.f32 %v5120_v60, 0.0  ;;  %v5118_v57 = vadd.f32 %v5086_v1, %v4332_v37  ;;  %v5091_v47 = vadd.f32 %v9706_v3, %v5052_v46  ;;  %v5050_v10 = vmul.f32 %v9698_v55, %v4940_v8 }
 0x3df   : > { %v4335_v39 = vadd.f32 %v9693_v2, %v4296_v48  ;;  %v4299_v33 = vmul.f32 %v9685_v17, %v4198_v13  ;;  %v6796_v16 = vpop.f32.mrf.mxu0  ;;  %v4190_v5 = vadd.f32 %v4189_v40, %v9607_v23  ;;  %v6751_v25 = vpop.f32.mrf.mxu1 }
 0x3e0   : > { %5184 = vst [vmem:[%s9729_s28 + $0x38] sm:$0xff] %v5152_v11  ;;  %v5150_v35 = vmax.f32 %v5118_v57, 0.0  ;;  %v5123_v54 = vadd.f32 %v5091_v47, %v4337_v22  ;;  %v5089_v24 = vadd.f32 %v9706_v3, %v5050_v10  ;;  %v5053_v38 = vmul.f32 %v6796_v16, %v9698_v55 }
 0x3e1   : > { %v4338_v27 = vadd.f32 %v9693_v2, %v4299_v33  ;;  %v4297_v6 = vmul.f32 %v9685_v17, %v4190_v5  ;;  %v4943_v32 = vpop.f32.mrf.mxu0  ;;  %v4211_v31 = vadd.f32 %v6751_v25, %v9622_v18  ;;  %v4202_v37 = vpop.f32.mrf.mxu1 }
 0x3e2   : > { %5182 = vst [vmem:[%s9729_s28 + $0x28] sm:$0xff] %v5150_v35  ;;  %v5155_v29 = vmax.f32 %v5123_v54, 0.0  ;;  %v5121_v23 = vadd.f32 %v5089_v24, %v4335_v39  ;;  %v5092_v63 = vadd.f32 %v9706_v3, %v5053_v38  ;;  %v5051_v28 = vmul.f32 %v9698_v55, %v4943_v32 }
 0x3e3   : > { %v4336_v9 = vadd.f32 %v9693_v2, %v4297_v6  ;;  %v4302_v36 = vmul.f32 %v9685_v17, %v4211_v31  ;;  %v6799_v60 = vpop.f32.mrf.mxu0  ;;  %v4203_v1 = vadd.f32 %v4202_v37, %v9616_v19  ;;  %v6752_v46 = vpop.f32.mrf.mxu1 }
 0x3e4   : > { %5187 = vst [vmem:[%s9729_s28 + $0x50] sm:$0xff] %v5155_v29  ;;  %v5153_v22 = vmax.f32 %v5121_v23, 0.0  ;;  %v5124_v18 = vadd.f32 %v5092_v63, %v4338_v27  ;;  %v5090_v48 = vadd.f32 %v9706_v3, %v5051_v28  ;;  %v5056_v8 = vmul.f32 %v6799_v60, %v9698_v55 }
 0x3e5   : > { %v4341_v13 = vadd.f32 %v9693_v2, %v4302_v36  ;;  %v4300_v40 = vmul.f32 %v9685_v17, %v4203_v1  ;;  %v4956_v11 = vpop.f32.mrf.mxu0  ;;  %v4214_v57 = vadd.f32 %v6752_v46, %v9625_v26  ;;  %v4205_v47 = vpop.f32.mrf.mxu1 }
 0x3e6   : > { %5185 = vst [vmem:[%s9729_s28 + $0x40] sm:$0xff] %v5153_v22  ;;  %v5156_v10 = vmax.f32 %v5124_v18, 0.0  ;;  %v5122_v19 = vadd.f32 %v5090_v48, %v4336_v9  ;;  %v5095_v39 = vadd.f32 %v9706_v3, %v5056_v8  ;;  %v5054_v33 = vmul.f32 %v9698_v55, %v4956_v11 }
 0x3e7   : > { %v4339_v16 = vadd.f32 %v9693_v2, %v4300_v40  ;;  %v4303_v5 = vmul.f32 %v9685_v17, %v4214_v57  ;;  %v6800_v25 = vpop.f32.mrf.mxu0  ;;  %v4206_v35 = vadd.f32 %v4205_v47, %v9619_v58  ;;  %v6755_v54 = vpop.f32.mrf.mxu1 }
 0x3e8   : > { %5188 = vst [vmem:[%s9729_s28 + $0x58] sm:$0xff] %v5156_v10  ;;  %v5154_v24 = vmax.f32 %v5122_v19, 0.0  ;;  %v5127_v26 = vadd.f32 %v5095_v39, %v4341_v13  ;;  %v5093_v38 = vadd.f32 %v9706_v3, %v5054_v33  ;;  %v5057_v27 = vmul.f32 %v6800_v25, %v9698_v55 }
 0x3e9   : > { %v4342_v6 = vadd.f32 %v9693_v2, %v4303_v5  ;;  %v4301_v32 = vmul.f32 %v9685_v17, %v4206_v35  ;;  %v4959_v31 = vpop.f32.mrf.mxu0  ;;  %v4227_v37 = vadd.f32 %v6755_v54, %v9634_v4  ;;  %v4218_v29 = vpop.f32.mrf.mxu1 }
 0x3ea   : > { %5186 = vst [vmem:[%s9729_s28 + $0x48] sm:$0xff] %v5154_v24  ;;  %v5159_v23 = vmax.f32 %v5127_v26, 0.0  ;;  %v5125_v58 = vadd.f32 %v5093_v38, %v4339_v16  ;;  %v5096_v63 = vadd.f32 %v9706_v3, %v5057_v27  ;;  %v5055_v28 = vmul.f32 %v9698_v55, %v4959_v31 }
 0x3eb   : > { %v4340_v9 = vadd.f32 %v9693_v2, %v4301_v32  ;;  %v4306_v36 = vmul.f32 %v9685_v17, %v4227_v37  ;;  %v6803_v60 = vpop.f32.mrf.mxu0  ;;  %v4219_v1 = vadd.f32 %v4218_v29, %v9628_v53  ;;  %v6756_v46 = vpop.f32.mrf.mxu1  ;;  %v6509_v26 = vadd.f32 %v9668_v51, %v9663_v62 }
 0x3ec   : > { %5191 = vst [vmem:[%s9729_s28 + $0x70] sm:$0xff] %v5159_v23  ;;  %v5157_v22 = vmax.f32 %v5125_v58, 0.0  ;;  %v5128_v4 = vadd.f32 %v5096_v63, %v4342_v6  ;;  %v5094_v18 = vadd.f32 %v9706_v3, %v5055_v28  ;;  %v5060_v48 = vmul.f32 %v6803_v60, %v9698_v55 }
 0x3ed   : > { %v4345_v8 = vadd.f32 %v9693_v2, %v4306_v36  ;;  %v4304_v13 = vmul.f32 %v9685_v17, %v4219_v1  ;;  %v4972_v40 = vpop.f32.mrf.mxu0  ;;  %v4230_v11 = vadd.f32 %v6756_v46, %v9637_v52  ;;  %v4221_v57 = vpop.f32.mrf.mxu1  ;;  %v3953_v1 = vadd.f32 %v6509_v26, %v9574_v42 }
 0x3ee   : > { %5189 = vst [vmem:[%s9729_s28 + $0x60] sm:$0xff] %v5157_v22  ;;  %v5160_v47 = vmax.f32 %v5128_v4, 0.0  ;;  %v5126_v53 = vadd.f32 %v5094_v18, %v4340_v9  ;;  %v5099_v10 = vadd.f32 %v9706_v3, %v5060_v48  ;;  %v5058_v19 = vmul.f32 %v9698_v55, %v4972_v40 }
 0x3ef   : > { %v4343_v39 = vadd.f32 %v9693_v2, %v4304_v13  ;;  %v4307_v33 = vmul.f32 %v9685_v17, %v4230_v11  ;;  %v6804_v16 = vpop.f32.mrf.mxu0  ;;  %v4222_v5 = vadd.f32 %v4221_v57, %v9631_v12  ;;  %v6759_v25 = vpop.f32.mrf.mxu1  ;;  %v6512_v11 = vadd.f32 %v9678_v15, %v9672_v20 }
 0x3f0   : > { %5192 = vst [vmem:[%s9729_s28 + $0x78] sm:$0xff] %v5160_v47  ;;  %v5158_v35 = vmax.f32 %v5126_v53, 0.0  ;;  %v5131_v52 = vadd.f32 %v5099_v10, %v4345_v8  ;;  %v5097_v54 = vadd.f32 %v9706_v3, %v5058_v19  ;;  %v5061_v24 = vmul.f32 %v6804_v16, %v9698_v55 }
 0x3f1   : > { %v4346_v38 = vadd.f32 %v9693_v2, %v4307_v33  ;;  %v4305_v27 = vmul.f32 %v9685_v17, %v4222_v5  ;;  %v4975_v6 = vpop.f32.mrf.mxu0  ;;  %v4243_v32 = vadd.f32 %v6759_v25, %v9646_v61  ;;  %v4234_v12 = vpop.f32.mrf.mxu1  ;;  %v6621_v16 = vadd.f32 %v9676_v43, %v9670_v30 }
 0x3f2   : > { %5190 = vst [vmem:[%s9729_s28 + $0x68] sm:$0xff] %v5158_v35  ;;  %v5163_v31 = vmax.f32 %v5131_v52, 0.0  ;;  %v5129_v37 = vadd.f32 %v5097_v54, %v4343_v39  ;;  %v5100_v29 = vadd.f32 %v9706_v3, %v5061_v24  ;;  %v5059_v23 = vmul.f32 %v9698_v55, %v4975_v6 }
 0x3f3   : > { %v4344_v58 = vadd.f32 %v9693_v2, %v4305_v27  ;;  %v4310_v62 = vmul.f32 %v9685_v17, %v4243_v32  ;;  %v6807_v51 = vpop.f32.mrf.mxu0  ;;  %v4235_v63 = vadd.f32 %v4234_v12, %v9640_v49  ;;  %v6760_v28 = vpop.f32.mrf.mxu1  ;;  %v3956_v26 = vadd.f32 %v6512_v11, %v9576_v14 }
 0x3f4   : > { %5195 = vst [vmem:[%s9729_s28 + $0x90] sm:$0xff] %v5163_v31  ;;  %v5161_v9 = vmax.f32 %v5129_v37, 0.0  ;;  %v5132_v61 = vadd.f32 %v5100_v29, %v4346_v38  ;;  %v5098_v36 = vadd.f32 %v9706_v3, %v5059_v23  ;;  %v5064_v60 = vmul.f32 %v6807_v51, %v9698_v55 }
 0x3f5   : > { %v4349_v46 = vadd.f32 %v9693_v2, %v4310_v62  ;;  %v4308_v22 = vmul.f32 %v9685_v17, %v4235_v63  ;;  %v4988_v4 = vpop.f32.mrf.mxu0  ;;  %v4246_v18 = vadd.f32 %v6760_v28, %v9649_v7  ;;  %v4237_v48 = vpop.f32.mrf.mxu1  ;;  %v4114_v62 = vadd.f32 %v6621_v16, %v3953_v1 }
 0x3f6   : > { %5193 = vst [vmem:[%s9729_s28 + $0x80] sm:$0xff] %v5161_v9  ;;  %v5164_v49 = vmax.f32 %v5132_v61, 0.0  ;;  %v5130_v8 = vadd.f32 %v5098_v36, %v4344_v58  ;;  %v5103_v13 = vadd.f32 %v9706_v3, %v5064_v60  ;;  %v5062_v40 = vmul.f32 %v9698_v55, %v4988_v4 }
 0x3f7   : > { %v4347_v42 = vadd.f32 %v9693_v2, %v4308_v22  ;;  %v4311_v57 = vmul.f32 %v9685_v17, %v4246_v18  ;;  %v6808_v47 = vpop.f32.mrf.mxu0  ;;  %v4238_v53 = vadd.f32 %v4237_v48, %v9643_v59  ;;  %v6763_v7 = vpop.f32.mrf.mxu1  ;;  %v6624_v9 = vadd.f32 %v9688_v21, %v9680_v45 }
 0x3f8   : > { %5196 = vst [vmem:[%s9729_s28 + $0x98] sm:$0xff] %v5164_v49  ;;  %v5162_v10 = vmax.f32 %v5130_v8, 0.0  ;;  %v5135_v19 = vadd.f32 %v5103_v13, %v4349_v46  ;;  %v5101_v39 = vadd.f32 %v9706_v3, %v5062_v40  ;;  %v5065_v33 = vmul.f32 %v6808_v47, %v9698_v55 }
 0x3f9   : > { %v4350_v20 = vadd.f32 %v9693_v2, %v4311_v57  ;;  %v4309_v15 = vmul.f32 %v9685_v17, %v4238_v53  ;;  %v4991_v5 = vpop.f32.mrf.mxu0  ;;  %v4259_v25 = vadd.f32 %v6763_v7, %v9658_v44  ;;  %v4250_v59 = vpop.f32.mrf.mxu1  ;;  %v4117_v7 = vadd.f32 %v6624_v9, %v3956_v26 }
 0x3fa   : > { %5194 = vst [vmem:[%s9729_s28 + $0x88] sm:$0xff] %v5162_v10  ;;  %v5167_v35 = vmax.f32 %v5135_v19, 0.0  ;;  %v5133_v52 = vadd.f32 %v5101_v39, %v4347_v42  ;;  %v5104_v54 = vadd.f32 %v9706_v3, %v5065_v33  ;;  %v5063_v24 = vmul.f32 %v9698_v55, %v4991_v5 }
 0x3fb   : > { %v4348_v30 = vadd.f32 %v9693_v2, %v4309_v15  ;;  %v4314_v43 = vmul.f32 %v9685_v17, %v4259_v25  ;;  %v6811_v38 = vpop.f32.mrf.mxu0  ;;  %v4251_v27 = vadd.f32 %v4250_v59, %v9652_v34  ;;  %v6764_v6 = vpop.f32.mrf.mxu1 }
 0x3fc   : > { %5199 = vst [vmem:[%s9729_s28 + $0xb0] sm:$0xff] %v5167_v35  ;;  %v5165_v44 = vmax.f32 %v5133_v52, 0.0  ;;  %v5136_v32 = vadd.f32 %v5104_v54, %v4350_v20  ;;  %v5102_v12 = vadd.f32 %v9706_v3, %v5063_v24  ;;  %v5068_v31 = vmul.f32 %v6811_v38, %v9698_v55 }
 0x3fd   : > { %v4353_v37 = vadd.f32 %v9693_v2, %v4314_v43  ;;  %v4312_v14 = vmul.f32 %v9685_v17, %v4251_v27  ;;  %v5004_v29 = vpop.f32.mrf.mxu0  ;;  %v4262_v23 = vadd.f32 %v6764_v6, %v9661_v50  ;;  %v4253_v58 = vpop.f32.mrf.mxu1 }
 0x3fe   : > { %5197 = vst [vmem:[%s9729_s28 + $0xa0] sm:$0xff] %v5165_v44  ;;  %v5168_v34 = vmax.f32 %v5136_v32, 0.0  ;;  %v5134_v51 = vadd.f32 %v5102_v12, %v4348_v30  ;;  %v5107_v63 = vadd.f32 %v9706_v3, %v5068_v31  ;;  %v5066_v28 = vmul.f32 %v9698_v55, %v5004_v29 }
 0x3ff   : > { %v4351_v61 = vadd.f32 %v9693_v2, %v4312_v14  ;;  %v4315_v36 = vmul.f32 %v9685_v17, %v4262_v23  ;;  %v6812_v60 = vpop.f32.mrf.mxu0  ;;  %v4254_v50 = vadd.f32 %v4253_v58, %v9655_v0  ;;  %v6767_v46 = vpop.f32.mrf.mxu1 }
 0x400   : > { %5200 = vst [vmem:[%s9729_s28 + $0xb8] sm:$0xff] %v5168_v34  ;;  %v5166_v1 = vmax.f32 %v5134_v51, 0.0  ;;  %v5139_v22 = vadd.f32 %v5107_v63, %v4353_v37  ;;  %v5105_v4 = vadd.f32 %v9706_v3, %v5066_v28  ;;  %v5069_v18 = vmul.f32 %v6812_v60, %v9698_v55 }
 0x401   : > { %v4354_v48 = vadd.f32 %v9693_v2, %v4315_v36  ;;  %v4313_v45 = vmul.f32 %v9685_v17, %v4254_v50  ;;  %v5007_v21 = vpop.f32.mrf.mxu0  ;;  %v4275_v49 = vadd.f32 %v6767_v46, %v4114_v62  ;;  %v4266_v8 = vpop.f32.mrf.mxu1 }
 0x402   : > { %5198 = vst [vmem:[%s9729_s28 + $0xa8] sm:$0xff] %v5166_v1  ;;  %v5171_v13 = vmax.f32 %v5139_v22, 0.0  ;;  %v5137_v40 = vadd.f32 %v5105_v4, %v4351_v61  ;;  %v5108_v0 = vadd.f32 %v9706_v3, %v5069_v18  ;;  %v5067_v11 = vmul.f32 %v9698_v55, %v5007_v21 }
 0x403   : > { %v4352_v42 = vadd.f32 %v9693_v2, %v4313_v45  ;;  %v4318_v57 = vmul.f32 %v9685_v17, %v4275_v49  ;;  %v6815_v47 = vpop.f32.mrf.mxu0  ;;  %v4267_v53 = vadd.f32 %v4266_v8, %v9666_v56  ;;  %v6768_v10 = vpop.f32.mrf.mxu1 }
 0x404   : > { %5203 = vst [vmem:[%s9729_s28 + $0xd0] sm:$0xff] %v5171_v13  ;;  %v5169_v19 = vmax.f32 %v5137_v40, 0.0  ;;  %v5140_v39 = vadd.f32 %v5108_v0, %v4354_v48  ;;  %v5106_v33 = vadd.f32 %v9706_v3, %v5067_v11  ;;  %v5072_v16 = vmul.f32 %v6815_v47, %v9698_v55 }
 0x405   : > { %v4357_v20 = vadd.f32 %v9693_v2, %v4318_v57  ;;  %v4316_v15 = vmul.f32 %v9685_v17, %v4267_v53  ;;  %v5020_v5 = vpop.f32.mrf.mxu0  ;;  %v4278_v25 = vadd.f32 %v6768_v10, %v4117_v7  ;;  %v4269_v59 = vpop.f32.mrf.mxu1 }
 0x406   : > { %5201 = vst [vmem:[%s9729_s28 + $0xc0] sm:$0xff] %v5169_v19  ;;  %v5172_v35 = vmax.f32 %v5140_v39, 0.0  ;;  %v5138_v56 = vadd.f32 %v5106_v33, %v4352_v42  ;;  %v5111_v52 = vadd.f32 %v9706_v3, %v5072_v16  ;;  %v5070_v54 = vmul.f32 %v9698_v55, %v5020_v5 }
 0x407   : > { %v4355_v24 = vadd.f32 %v9693_v2, %v4316_v15  ;;  %v4319_v26 = vmul.f32 %v9685_v17, %v4278_v25  ;;  %v6816_v30 = vpop.f32.mrf.mxu0  ;;  %v4270_v43 = vadd.f32 %v4269_v59, %v9674_v41 }
 0x408   : > { %5204 = vst [vmem:[%s9729_s28 + $0xd8] sm:$0xff] %v5172_v35  ;;  %v5170_v38 = vmax.f32 %v5138_v56, 0.0  ;;  %v5143_v27 = vadd.f32 %v5111_v52, %v4357_v20  ;;  %v5109_v6 = vadd.f32 %v9706_v3, %v5070_v54  ;;  %v5073_v44 = vmul.f32 %v6816_v30, %v9698_v55 }
 0x409   : > { %v4358_v32 = vadd.f32 %v9693_v2, %v4319_v26  ;;  %v4317_v12 = vmul.f32 %v9685_v17, %v4270_v43  ;;  %v5023_v31 = vpop.f32.mrf.mxu0 }
 0x40a   : > { %5202 = vst [vmem:[%s9729_s28 + $0xc8] sm:$0xff] %v5170_v38  ;;  %v5175_v37 = vmax.f32 %v5143_v27, 0.0  ;;  %v5141_v14 = vadd.f32 %v5109_v6, %v4355_v24  ;;  %v5112_v41 = vadd.f32 %v9706_v3, %v5073_v44  ;;  %v5071_v29 = vmul.f32 %v9698_v55, %v5023_v31 }
 0x40b   : > { %v4356_v23 = vadd.f32 %v9693_v2, %v4317_v12 }
 0x40c   : > { %5207 = vst [vmem:[%s9729_s28 + $0xf0] sm:$0xff] %v5175_v37  ;;  %v5173_v58 = vmax.f32 %v5141_v14, 0.0  ;;  %v5144_v62 = vadd.f32 %v5112_v41, %v4358_v32  ;;  %v5110_v34 = vadd.f32 %v9706_v3, %v5071_v29 }
 0x40e   : > { %5205 = vst [vmem:[%s9729_s28 + $0xe0] sm:$0xff] %v5173_v58  ;;  %v5176_v17 = vmax.f32 %v5144_v62, 0.0  ;;  %v5142_v51 = vadd.f32 %v5110_v34, %v4356_v23 }
 0x410   : > { %5208 = vst [vmem:[%s9729_s28 + $0xf8] sm:$0xff] %v5176_v17  ;;  %v5174_v2 = vmax.f32 %v5142_v51, 0.0 }
 0x412   : > { %5206 = vst [vmem:[%s9729_s28 + $0xe8] sm:$0xff] %v5174_v2 }
 0x413   : > { %7163 = shalt.err (!%p7160_p0)
}
 0x414   : > { %s7164_s21 = scalar_lea.hbm %s9912_s18, 4096  ;;  %s7168_s30 = scalar_lea.hbm %s9970_s10, 8192 }
 0x415   : > { %p7165_p1 = scmp.ne.s32.totalorder %s9912_s18, %s7164_s21  ;;  %p7169_p4 = scmp.lt.s32.totalorder %s9912_s18, %s9970_s10 }
 0x416   : > { %p7170_p7 = scmp.lt.s32.totalorder %s7168_s30, %s7164_s21 }
 0x417   : > { %p7166_p2 = pnand %p7165_p1, %p7318_p5 }
 0x418   : > { %p7171_p6 = por %p7170_p7, %p7169_p4 }
 0x419   : > { %p7167_p3 = pneg %p7166_p2 }
 0x41b   : > { %p7172_p8 = pnand %p7171_p6, %p7167_p3 }
 0x41d   : > { %7175 = shalt.err (!%p7172_p8)
}
 0x41e   : > { %s7223_s17 = smov 128   ;;  %s7224_s27 = smov 8  }
 0x41f   : > { %6838 = dma.vmem_to_hbm [thread:$0]  (%p7318_p5), %s9914_s29, 4096, %s9912_s18, %s9920_s20, %s7223_s17, %s7223_s17, %s7224_s27  }
 0x420 PF: > { %p6850_p9 = scmp.ge.s32.totalorder %s7214_s16, 2  ;;  %s5238_s25 = sand.u32 1, %s7202_s13  }
 0x421   : > { %p10086_p10 = scmp.ne.s32.totalorder %s9999_s24, 0  ;;  %s5239_s21 = scalar_lea.sflag [#allocation4], %s5238_s25 }
 0x423   : > { %p6845_p11 = pnand %p6850_p9, %p10086_p10 }
 0x425   : > { %p6846_p12 = pneg %p6845_p11 }
 0x427   : > { %7197 = dma.done.wait (%p6846_p12), %s5239_s21, 4096  }
 0x428   : > { %7199 = vsyncadd (%p6846_p12), %s5239_s21, 4294963200  ;;  %p21_p13 = scmp.ge.s32.totalorder %s7305_s19, 4   ;;  %s10087_s13 = smov %s7206_s14 }
 0x429   : > { %s10088_s14 = smov %s7210_s15  ;;  %s10089_s15 = smov %s7316_s22 }
 0x42a   : > { %s10090_s16 = smov %s7305_s19  ;;  %23 = sbr.rel (!%p21_p13) target bundleno = 4 (0x4), region = 100 }
 0x42f   :  { %5244 = vsyncpa [#allocation3], 1 }
 0x430   :  { %5246 = vsyncpa [#allocation3 + $0x1], 1 }
 0x431   :  { %5247 = vsyncpa [#allocation4], 1 }
 0x432   :  { %5249 = vsyncpa [#allocation4 + $0x1], 1 }

</bundles_post_ra>
